<compile_context>
chip_gen: v7x
topology: tpu7x:2x2x1
jax: 0.10.0
libtpu: 0.0.40
codegen_flags: <defaults>
</compile_context>

<pallas_src>
import functools

import jax
import jax.numpy as jnp
from jax.experimental import pallas as pl
from jax.experimental.pallas import tpu as pltpu


def _round_up(n, m):
    return ((n + m - 1) // m) * m


# ----------------------------------------------------------------------------
# Pallas kernels
# ----------------------------------------------------------------------------
def _conv_bn_relu_kernel(p_ref, w_ref, b_ref, s_ref, t_ref, o_ref, *, Q, pool):
    """Conv-as-matmul + bias + ReLU + BN(eval) + ReLU [+ 2x2 maxpool].

    p_ref: (1, M, K)  bf16 im2col patches for one image
                      M = 4*Q (pool-window-major rows) if pool else Q
    w_ref: (K, Cn)    bf16 im2col weights (one Cout block)
    b_ref, s_ref, t_ref: (1, Cn) f32 conv bias / folded BN scale / shift
    o_ref: (1, Q, Cn) f32 output tile
    """
    acc = jnp.dot(p_ref[0], w_ref[...], preferred_element_type=jnp.float32)
    y = jnp.maximum(acc + b_ref[...], 0.0)                 # conv bias + ReLU
    y = jnp.maximum(y * s_ref[...] + t_ref[...], 0.0)      # BN (eval) + ReLU
    if pool:
        # Rows are ordered (window_pos k, pooled_pixel p): pooled pixel p is
        # the max over the 4 contiguous Q-row slices.
        y = jnp.maximum(jnp.maximum(y[0:Q], y[Q:2 * Q]),
                        jnp.maximum(y[2 * Q:3 * Q], y[3 * Q:4 * Q]))
    o_ref[0] = y


def _linear_kernel(x_ref, w_ref, b_ref, o_ref):
    o_ref[...] = (
        jnp.dot(x_ref[...], w_ref[...], preferred_element_type=jnp.float32)
        + b_ref[...]
    )


# ----------------------------------------------------------------------------
# Glue: im2col (layout only), weight prep, pallas_call wrappers
# ----------------------------------------------------------------------------
def _im2col(x, *, pool):
    """x: (B, H, W, Cin) f32 -> (B, M, Kp) bf16 patches.

    Column layout: col = (dy*3 + dx)*Cin + ci  (matches _prep_conv_weight).
    Row layout:    pool:  row = (ry*2 + rx)*Q + (ph*Wo + pw),  Q = Ho*Wo
                   else:  row = h*W + w
    K is zero-padded to a multiple of 128 for lane alignment.
    """
    B, H, W, Cin = x.shape
    xp = jnp.pad(x, ((0, 0), (1, 1), (1, 1), (0, 0)))       # spatial pad=1
    cols = [xp[:, dy:dy + H, dx:dx + W, :] for dy in range(3) for dx in range(3)]
    p = jnp.concatenate(cols, axis=-1)                       # (B, H, W, 9*Cin)
    K = 9 * Cin
    if pool:
        Ho, Wo = H // 2, W // 2
        p = p.reshape(B, Ho, 2, Wo, 2, K).transpose(0, 2, 4, 1, 3, 5)
        p = p.reshape(B, 4 * Ho * Wo, K)
    else:
        p = p.reshape(B, H * W, K)
    Kp = _round_up(K, 128)
    if Kp != K:
        p = jnp.pad(p, ((0, 0), (0, 0), (0, Kp - K)))
    return p.astype(jnp.bfloat16)


def _prep_conv_weight(w_oihw):
    """OIHW -> (Kp, Cout) bf16 im2col weights, rows tap-major ((dy*3+dx)*Cin+ci)."""
    o, i = w_oihw.shape[0], w_oihw.shape[1]
    wt = jnp.transpose(w_oihw, (2, 3, 1, 0)).reshape(9 * i, o)   # (9*Cin, Cout)
    K = 9 * i
    Kp = _round_up(K, 128)
    if Kp != K:
        wt = jnp.pad(wt, ((0, Kp - K), (0, 0)))
    return wt.astype(jnp.bfloat16)


def conv_bn_relu_block(x, w9, bias, scale, shift, *, pool, cout_block=512):
    """x: (B, H, W, Cin) f32; w9: (Kp, Cout) bf16.  Returns (B, Ho, Wo, Cout) f32."""
    B, H, W, _ = x.shape
    Kp, Cout = w9.shape
    Ho, Wo = (H // 2, W // 2) if pool else (H, W)
    Q = Ho * Wo
    patches = _im2col(x, pool=pool)                          # (B, M, Kp) bf16
    M = patches.shape[1]
    cn = min(cout_block, Cout)
    nc = Cout // cn

    kern = functools.partial(_conv_bn_relu_kernel, Q=Q, pool=pool)
    out = pl.pallas_call(
        kern,
        out_shape=jax.ShapeDtypeStruct((B, Q, Cout), jnp.float32),
        grid=(nc, B),
        in_specs=[
            pl.BlockSpec((1, M, Kp), lambda c, b: (b, 0, 0)),
            pl.BlockSpec((Kp, cn), lambda c, b: (0, c)),
            pl.BlockSpec((1, cn), lambda c, b: (0, c)),
            pl.BlockSpec((1, cn), lambda c, b: (0, c)),
            pl.BlockSpec((1, cn), lambda c, b: (0, c)),
        ],
        out_specs=pl.BlockSpec((1, Q, cn), lambda c, b: (b, 0, c)),
        compiler_params=pltpu.CompilerParams(
            dimension_semantics=("parallel", "parallel"),
        ),
    )(patches, w9, bias[None, :], scale[None, :], shift[None, :])
    return out.reshape(B, Ho, Wo, Cout)


def linear_pallas(x, w, b):
    """x: (B, K) bf16, w: (K, N) bf16, b: (N,) f32 -> (B, N) f32."""
    B, K = x.shape
    N = w.shape[1]
    return pl.pallas_call(
        _linear_kernel,
        out_shape=jax.ShapeDtypeStruct((B, N), jnp.float32),
        grid=(1,),
        in_specs=[
            pl.BlockSpec((B, K), lambda i: (0, 0)),
            pl.BlockSpec((K, N), lambda i: (0, 0)),
            pl.BlockSpec((1, N), lambda i: (0, 0)),
        ],
        out_specs=pl.BlockSpec((B, N), lambda i: (0, 0)),
    )(x, w, b[None, :])


# ----------------------------------------------------------------------------
# Parameters (deterministic, shapes from the PyTorch module __init__)
# ----------------------------------------------------------------------------
def init_params(key):
    ks = jax.random.split(key, 20)
    f32 = jnp.float32
    p = {}
    # conv1: Conv2d(195, 512, 3, padding=1) + BN(512)
    p["w1"] = 0.02 * jax.random.normal(ks[0], (512, 195, 3, 3), f32)
    p["b1"] = 0.10 * jax.random.normal(ks[1], (512,), f32)
    p["bn1_g"] = 1.0 + 0.1 * jax.random.normal(ks[2], (512,), f32)
    p["bn1_b"] = 0.10 * jax.random.normal(ks[3], (512,), f32)
    p["bn1_m"] = 0.10 * jax.random.normal(ks[4], (512,), f32)
    p["bn1_v"] = 0.5 + jax.random.uniform(ks[5], (512,), f32)
    # conv2: Conv2d(512, 512, 3, padding=1) + BN(512)
    p["w2"] = 0.02 * jax.random.normal(ks[6], (512, 512, 3, 3), f32)
    p["b2"] = 0.10 * jax.random.normal(ks[7], (512,), f32)
    p["bn2_g"] = 1.0 + 0.1 * jax.random.normal(ks[8], (512,), f32)
    p["bn2_b"] = 0.10 * jax.random.normal(ks[9], (512,), f32)
    p["bn2_m"] = 0.10 * jax.random.normal(ks[10], (512,), f32)
    p["bn2_v"] = 0.5 + jax.random.uniform(ks[11], (512,), f32)
    # conv3: Conv2d(512, 1024, 3, padding=1) + BN(1024)
    p["w3"] = 0.02 * jax.random.normal(ks[12], (1024, 512, 3, 3), f32)
    p["b3"] = 0.10 * jax.random.normal(ks[13], (1024,), f32)
    p["bn3_g"] = 1.0 + 0.1 * jax.random.normal(ks[14], (1024,), f32)
    p["bn3_b"] = 0.10 * jax.random.normal(ks[15], (1024,), f32)
    p["bn3_m"] = 0.10 * jax.random.normal(ks[16], (1024,), f32)
    p["bn3_v"] = 0.5 + jax.random.uniform(ks[17], (1024,), f32)
    # cls: Linear(1024*16, 37)
    p["fc_w"] = 0.01 * jax.random.normal(ks[18], (37, 1024 * 16), f32)
    p["fc_b"] = 0.10 * jax.random.normal(ks[19], (37,), f32)
    return p


_EPS = 1e-5


def _fold_bn(g, beta, mean, var):
    scale = g / jnp.sqrt(var + _EPS)
    shift = beta - mean * scale
    return scale, shift


# ----------------------------------------------------------------------------
# Forward passes
# ----------------------------------------------------------------------------
def character_recognition_branch_pallas(x_nchw, p):
    x = jnp.transpose(x_nchw, (0, 2, 3, 1)).astype(jnp.float32)   # NCHW -> NHWC

    s1, t1 = _fold_bn(p["bn1_g"], p["bn1_b"], p["bn1_m"], p["bn1_v"])
    s2, t2 = _fold_bn(p["bn2_g"], p["bn2_b"], p["bn2_m"], p["bn2_v"])
    s3, t3 = _fold_bn(p["bn3_g"], p["bn3_b"], p["bn3_m"], p["bn3_v"])

    y = conv_bn_relu_block(x, _prep_conv_weight(p["w1"]), p["b1"], s1, t1,
                           pool=True)                              # (B, 8, 8, 512)
    y = conv_bn_relu_block(y, _prep_conv_weight(p["w2"]), p["b2"], s2, t2,
                           pool=True)                              # (B, 4, 4, 512)
    y = conv_bn_relu_block(y, _prep_conv_weight(p["w3"]), p["b3"], s3, t3,
                           pool=False)                             # (B, 4, 4, 1024)

    B = y.shape[0]
    y_flat = y.reshape(B, -1).astype(jnp.bfloat16)                 # (h, w, c) order
    # Permute Linear weight (PyTorch flattens NCHW: index = c*16 + h*4 + w),
    # pad the 37-wide output to 128 lanes, cast to bf16.
    wfc = (p["fc_w"].reshape(37, 1024, 4, 4)
           .transpose(0, 2, 3, 1).reshape(37, -1).T)               # (16384, 37)
    wfc = jnp.pad(wfc, ((0, 0), (0, 128 - 37))).astype(jnp.bfloat16)
    bfc = jnp.pad(p["fc_b"], (0, 128 - 37))
    logits = linear_pallas(y_flat, wfc, bfc)                       # (B, 128)
    return logits[:, :37]


def character_recognition_branch_ref(x_nchw, p):
    """Pure-JAX NCHW reference mirroring the PyTorch forward (eval-mode BN)."""
    hi = jax.lax.Precision.HIGHEST

    def conv(x, w, b):
        y = jax.lax.conv_general_dilated(
            x, w, (1, 1), ((1, 1), (1, 1)),
            dimension_numbers=("NCHW", "OIHW", "NCHW"), precision=hi)
        return y + b[None, :, None, None]

    def bn(x, g, beta, m, v):
        s = g / jnp.sqrt(v + _EPS)
        return (x - m[None, :, None, None]) * s[None, :, None, None] \
            + beta[None, :, None, None]

    def pool(x):
        return jax.lax.reduce_window(x, -jnp.inf, jax.lax.max,
                                     (1, 1, 2, 2), (1, 1, 2, 2), "VALID")

    relu = lambda x: jnp.maximum(x, 0.0)

    y = pool(relu(bn(relu(conv(x_nchw, p["w1"], p["b1"])),
                     p["bn1_g"], p["bn1_b"], p["bn1_m"], p["bn1_v"])))
    y = pool(relu(bn(relu(conv(y, p["w2"], p["b2"])),
                     p["bn2_g"], p["bn2_b"], p["bn2_m"], p["bn2_v"])))
    y = relu(bn(relu(conv(y, p["w3"], p["b3"])),
                p["bn3_g"], p["bn3_b"], p["bn3_m"], p["bn3_v"]))
    y = y.reshape(y.shape[0], -1)
    return jnp.dot(y, p["fc_w"].T, precision=hi) + p["fc_b"]


# ----------------------------------------------------------------------------
if __name__ == "__main__":
    key = jax.random.PRNGKey(0)
    kx, kp = jax.random.split(key)
    params = init_params(kp)
    # Input like PyTorch: NCHW, 195 channels, 16x16 spatial (so flatten = 1024*16).
    x = jax.random.normal(kx, (2, 195, 16, 16), jnp.float32)

    out = character_recognition_branch_pallas(x, params)
    out = jax.block_until_ready(out)
    assert out.shape == (2, 37), out.shape

    ref = character_recognition_branch_ref(x, params)
    # Matmul operands are bf16 (MXU-native) with f32 accumulation; 3e-2 covers
    # the bf16 operand rounding over 3 conv layers + FC vs the f32 reference.
    if not bool(jnp.allclose(out, ref, rtol=3e-2, atol=3e-2)):
        raise AssertionError(
            f"Pallas/reference mismatch, max abs err = {jnp.max(jnp.abs(out - ref))}")

    print("KERNEL_OK")
</pallas_src>

<mosaic_0001>
module attributes {stable_mosaic.version = 11 : i64} {
  func.func @_conv_bn_relu_kernel(%arg0: i32, %arg1: i32, %arg2: memref<1x256x1792xbf16, #tpu.memory_space<vmem>>, %arg3: memref<1792x512xbf16, #tpu.memory_space<vmem>>, %arg4: memref<1x512xf32, #tpu.memory_space<vmem>>, %arg5: memref<1x512xf32, #tpu.memory_space<vmem>>, %arg6: memref<1x512xf32, #tpu.memory_space<vmem>>, %arg7: memref<1x64x512xf32, #tpu.memory_space<vmem>>) attributes {dimension_semantics = [#tpu.dimension_semantics<parallel>, #tpu.dimension_semantics<parallel>], iteration_bounds = array<i64: 1, 2>, scalar_prefetch = 0 : i64, scratch_operands = 0 : i64, tpu.core_type = #tpu.core_type<tc>, window_params = [{transform_indices = @transform_0, window_bounds = array<i64: 1, 256, 1792>}, {transform_indices = @transform_1, window_bounds = array<i64: 1792, 512>}, {transform_indices = @transform_2, window_bounds = array<i64: 1, 512>}, {transform_indices = @transform_3, window_bounds = array<i64: 1, 512>}, {transform_indices = @transform_4, window_bounds = array<i64: 1, 512>}, {transform_indices = @transform_5, window_bounds = array<i64: 1, 64, 512>}]} {
    %c0 = arith.constant 0 : index
    %c0_0 = arith.constant 0 : index
    %c0_1 = arith.constant 0 : index
    %0 = vector.load %arg2[%c0, %c0_0, %c0_1] : memref<1x256x1792xbf16, #tpu.memory_space<vmem>>, vector<1x256x1792xbf16>
    %1 = vector.shape_cast %0 : vector<1x256x1792xbf16> to vector<256x1792xbf16>
    %c0_2 = arith.constant 0 : index
    %c0_3 = arith.constant 0 : index
    %2 = vector.load %arg3[%c0_2, %c0_3] : memref<1792x512xbf16, #tpu.memory_space<vmem>>, vector<1792x512xbf16>
    %cst = arith.constant dense<0.000000e+00> : vector<256x512xf32>
    %3 = tpu.matmul %1, %2, %cst {dimension_numbers = #tpu.dot_dimension_numbers<[1], [0], [0], [1], [0, 0, 1, 1], [], []>} : vector<256x1792xbf16>, vector<1792x512xbf16>, vector<256x512xf32> -> vector<256x512xf32>
    %c0_4 = arith.constant 0 : index
    %c0_5 = arith.constant 0 : index
    %4 = vector.load %arg4[%c0_4, %c0_5] : memref<1x512xf32, #tpu.memory_space<vmem>>, vector<1x512xf32>
    %5 = vector.broadcast %4 : vector<1x512xf32> to vector<256x512xf32>
    %6 = arith.addf %3, %5 : vector<256x512xf32>
    %cst_6 = arith.constant 0.000000e+00 : f32
    %7 = vector.broadcast %cst_6 : f32 to vector<256x512xf32>
    %8 = arith.maximumf %6, %7 : vector<256x512xf32>
    %c0_7 = arith.constant 0 : index
    %c0_8 = arith.constant 0 : index
    %9 = vector.load %arg5[%c0_7, %c0_8] : memref<1x512xf32, #tpu.memory_space<vmem>>, vector<1x512xf32>
    %10 = vector.broadcast %9 : vector<1x512xf32> to vector<256x512xf32>
    %11 = arith.mulf %8, %10 : vector<256x512xf32>
    %c0_9 = arith.constant 0 : index
    %c0_10 = arith.constant 0 : index
    %12 = vector.load %arg6[%c0_9, %c0_10] : memref<1x512xf32, #tpu.memory_space<vmem>>, vector<1x512xf32>
    %13 = vector.broadcast %12 : vector<1x512xf32> to vector<256x512xf32>
    %14 = arith.addf %11, %13 : vector<256x512xf32>
    %cst_11 = arith.constant 0.000000e+00 : f32
    %15 = vector.broadcast %cst_11 : f32 to vector<256x512xf32>
    %16 = arith.maximumf %14, %15 : vector<256x512xf32>
    %17 = vector.extract_strided_slice %16 {offsets = [0, 0], sizes = [64, 512], strides = [1, 1]} : vector<256x512xf32> to vector<64x512xf32>
    %18 = vector.extract_strided_slice %16 {offsets = [64, 0], sizes = [64, 512], strides = [1, 1]} : vector<256x512xf32> to vector<64x512xf32>
    %19 = arith.maximumf %17, %18 : vector<64x512xf32>
    %20 = vector.extract_strided_slice %16 {offsets = [128, 0], sizes = [64, 512], strides = [1, 1]} : vector<256x512xf32> to vector<64x512xf32>
    %21 = vector.extract_strided_slice %16 {offsets = [192, 0], sizes = [64, 512], strides = [1, 1]} : vector<256x512xf32> to vector<64x512xf32>
    %22 = arith.maximumf %20, %21 : vector<64x512xf32>
    %23 = arith.maximumf %19, %22 : vector<64x512xf32>
    %c0_12 = arith.constant 0 : index
    %c0_13 = arith.constant 0 : index
    %c0_14 = arith.constant 0 : index
    %24 = vector.load %arg7[%c0_12, %c0_13, %c0_14] : memref<1x64x512xf32, #tpu.memory_space<vmem>>, vector<1x64x512xf32>
    %25 = vector.shape_cast %24 : vector<1x64x512xf32> to vector<64x512xf32>
    %26 = vector.shape_cast %23 : vector<64x512xf32> to vector<1x64x512xf32>
    tpu.vector_store %arg7[%c0_12, %c0_13, %c0_14], %26 {strides = array<i32>} : memref<1x64x512xf32, #tpu.memory_space<vmem>>, vector<1x64x512xf32>,
    return
  }
  func.func @transform_0(%arg0: i32, %arg1: i32) -> (i32, i32, i32) {
    %c0_i32 = arith.constant 0 : i32
    %c0_i32_0 = arith.constant 0 : i32
    %c0_i32_1 = arith.constant 0 : i32
    return %arg1, %c0_i32, %c0_i32_0 : i32, i32, i32
  }
  func.func @transform_1(%arg0: i32, %arg1: i32) -> (i32, i32) {
    %c0_i32 = arith.constant 0 : i32
    %c0_i32_0 = arith.constant 0 : i32
    return %c0_i32, %arg0 : i32, i32
  }
  func.func @transform_2(%arg0: i32, %arg1: i32) -> (i32, i32) {
    %c0_i32 = arith.constant 0 : i32
    %c0_i32_0 = arith.constant 0 : i32
    return %c0_i32, %arg0 : i32, i32
  }
  func.func @transform_3(%arg0: i32, %arg1: i32) -> (i32, i32) {
    %c0_i32 = arith.constant 0 : i32
    %c0_i32_0 = arith.constant 0 : i32
    return %c0_i32, %arg0 : i32, i32
  }
  func.func @transform_4(%arg0: i32, %arg1: i32) -> (i32, i32) {
    %c0_i32 = arith.constant 0 : i32
    %c0_i32_0 = arith.constant 0 : i32
    return %c0_i32, %arg0 : i32, i32
  }
  func.func @transform_5(%arg0: i32, %arg1: i32) -> (i32, i32, i32) {
    %c0_i32 = arith.constant 0 : i32
    %c0_i32_0 = arith.constant 0 : i32
    return %arg1, %c0_i32, %arg0 : i32, i32, i32
  }
}

</mosaic_0001>

<bundles_post_ra>
// kernel: tpu_custom_call.1
= control target key start
LH: loop header
LB: loop body
LE: loop exit
PB: predicated region body
PF: predicated region fallthrough
CT: control target
= control target key end

     0   :  { %10 = vsyncpa [#allocation3], 0  ;;  %s12551_s0 = inlined_call_operand.hbm [shape: bf16[2,256,1792], index: 0, kind: input, shape index: {}]   ;;  %s12552_s1 = inlined_call_operand.hbm [shape: bf16[1792,512], index: 1, kind: input, shape index: {}]   ;;  %s12553_s2 = inlined_call_operand.hbm [shape: f32[1,512], index: 2, kind: input, shape index: {}]   ;;  %s12554_s3 = inlined_call_operand.hbm [shape: f32[1,512], index: 3, kind: input, shape index: {}]   ;;  %s12555_s4 = inlined_call_operand.hbm [shape: f32[1,512], index: 4, kind: input, shape index: {}]   ;;  %s12556_s5 = inlined_call_operand.hbm [shape: f32[2,64,512], index: 5, kind: output, shape index: {}]  }
   0x1   :  { %12 = vsyncpa [#allocation3 + $0x1], 0 }
   0x2   :  { %13 = vsyncpa [#allocation6], 0 }
   0x3   :  { %14 = vsyncpa [#allocation9], 0 }
   0x4   :  { %15 = vsyncpa [#allocation4], 0 }
   0x5   :  { %17 = vsyncpa [#allocation4 + $0x1], 0  ;;  %s10917_s18 = smov 0   ;;  %s10919_s19 = smov 0  }
   0x6   :  { %s10921_s20 = smov 0   ;;  %s10923_s21 = smov 0  }
   0x7   :  { %s10925_s22 = smov 0   ;;  %s10927_s23 = smov 0  }
   0x8 LB: > { %12592 = sst [smem:[#allocation16_spill]] %s10853_s18  ;;  %s7932_s24 = sadd.s32 4294967295, %s10873_s23   ;;  %s10873_s23 = sphi %s10927_s23, %s23_s23   ;;  %s10869_s22 = sphi %s10925_s22, %s12823_s22   ;;  %s10865_s21 = sphi %s10923_s21, %s12822_s21   ;;  %s10861_s20 = sphi %s10921_s20, %s12821_s20   ;;  %s10857_s19 = sphi %s10919_s19, %s12820_s19   ;;  %s10853_s18 = sphi %s10917_s18, %s12819_s18  }
   0x9   : > { %s7933_s25 = sadd.s32 4294967294, %s10873_s23   ;;  %p55_p0 = scmp.ne.s32.totalorder %s10857_s19, %s10853_s18 }
   0xa   : > { %p10951_p1 = scmp.eq.s32.totalorder %s7932_s24, 0  ;;  %p10955_p2 = scmp.eq.s32.totalorder %s7932_s24, 1 }
   0xb   : > { %p191_p3 = scmp.eq.s32.totalorder %s7933_s25, 1  ;;  %p7934_p5 = scmp.ge.s32.totalorder %s10873_s23, 1 }
   0xc   : > { %s12593_s26 = scalar_select %p10951_p1, 1, 0 }
   0xd   : > { %s12594_s27 = scalar_select %p10955_p2, 1, 0 }
   0xe   : > { %p10961_p4 = por %p10951_p1, %p55_p0  ;;  %p10966_p6 = por %p191_p3, %p55_p0 }
   0xf   : > { %p198_p7 = scmp.lt.s32.totalorder %s10873_s23, 3  ;;  %s10875_s6 = smov [#allocation5]  }
  0x10   : > { %s12595_s28 = scalar_select %p10961_p4, 1, 0 }
  0x11   : > { %s12596_s29 = scalar_select %p10966_p6, 1, 0 }
  0x12   : > { %p10971_p8 = pnand %p7934_p5, %p198_p7  ;;  %s213_s7 = sshll.u32 %s10875_s6, 4  ;;  %s10975_s7 = int_to_ptr.vmem [resolvable:$true] %s213_s7 }
  0x13   : > { %12597 = sst [smem:[#allocation17_spill]] %s12596_s29  ;;  %s10876_s9 = smov [#allocation8]  }
  0x14   : > { %s12598_s30 = scalar_select %p10971_p8, 1, 0 }
  0x15   : > { %p9544_p9 = pneg %p10971_p8  ;;  %s244_s10 = sshll.u32 %s10876_s9, 4  ;;  %s10986_s10 = int_to_ptr.vmem [resolvable:$true] %s244_s10 }
  0x16   : > { %s10877_s11 = smov [#allocation7]   ;;  %s10641_s15 = scalar_lea.hbm %s12552_s1, 57344 }
  0x17   : > { %p10982_p11 = pnand %p9544_p9, %p10951_p1  ;;  %s10988_s12 = sshll.u32 %s10877_s11, 4  ;;  %s231_s12 = int_to_ptr.vmem [resolvable:$true] %s10988_s12 }
  0x18   : > { %p10642_p12 = scmp.ne.s32.totalorder %s12552_s1, %s10641_s15  ;;  %p10648_p5 = scmp.lt.u32.totalorder %s10641_s15, %s12552_s1 }
  0x19   : > { %p10998_p13 = pneg %p10982_p11 }
  0x1b   : > { %p10644_p0 = pnand %p10998_p13, %p10642_p12 }
  0x1d   : > { %p10645_p3 = pneg %p10644_p0 }
  0x1f   : > { %p10650_p7 = pnand %p10648_p5, %p10645_p3 }
  0x21   : > { %10653 = shalt.err (!%p10650_p7)
}
  0x22   : > { %s10654_s9 = scalar_lea.vmem %s10975_s7, 57344  ;;  %p10662_p1 = scmp.lt.s32.totalorder %s10975_s7, %s10975_s7 }
  0x23   : > { %p10655_p9 = scmp.ne.s32.totalorder %s10975_s7, %s10654_s9  ;;  %p10663_p4 = scmp.lt.s32.totalorder %s10654_s9, %s10654_s9 }
  0x25   : > { %p10657_p10 = pnand %p10655_p9, %p10998_p13  ;;  %p10664_p12 = por %p10663_p4, %p10662_p1 }
  0x27   : > { %p10658_p6 = pneg %p10657_p10 }
  0x29   : > { %p10665_p0 = pnand %p10664_p12, %p10658_p6 }
  0x2b   : > { %10668 = shalt.err (!%p10665_p0)
}
  0x2c   : > { %s10878_s11 = smov 256   ;;  %s10879_s13 = smov 16  }
  0x2d   : > { %9547 = dma.hbm_to_vmem [thread:$0]  (!%p10982_p11), %s12552_s1, 57344, %s10975_s7, [#allocation6], %s10878_s11, %s10878_s11, %s10879_s13  }
  0x2e   : > { %s10669_s25 = scalar_lea.hbm %s12554_s3, 64 }
  0x2f   : > { %p10670_p1 = scmp.ne.s32.totalorder %s12554_s3, %s10669_s25  ;;  %p10676_p10 = scmp.lt.u32.totalorder %s10669_s25, %s12554_s3 }
  0x31   : > { %p10672_p4 = pnand %p10670_p1, %p10998_p13 }
  0x33   : > { %p10673_p6 = pneg %p10672_p4 }
  0x35   : > { %p10678_p3 = pnand %p10676_p10, %p10673_p6 }
  0x37   : > { %10681 = shalt.err (!%p10678_p3)
}
  0x38   : > { %s10682_s7 = scalar_lea.vmem %s10986_s10, 64  ;;  %p10690_p12 = scmp.lt.s32.totalorder %s10986_s10, %s10986_s10 }
  0x39   : > { %p10683_p5 = scmp.ne.s32.totalorder %s10986_s10, %s10682_s7  ;;  %p10691_p0 = scmp.lt.s32.totalorder %s10682_s7, %s10682_s7 }
  0x3b   : > { %p10685_p7 = pnand %p10683_p5, %p10998_p13  ;;  %p10692_p1 = por %p10691_p0, %p10690_p12 }
  0x3d   : > { %p10686_p9 = pneg %p10685_p7 }
  0x3f   : > { %p10693_p4 = pnand %p10692_p1, %p10686_p9 }
  0x41   : > { %10696 = shalt.err (!%p10693_p4)
}
  0x42   : > { %9553 = dma.hbm_to_vmem [thread:$0]  (!%p10982_p11), %s12554_s3, 64, %s10986_s10, [#allocation9]  }
  0x43   : > { %s10697_s14 = scalar_lea.hbm %s12553_s2, 64 }
  0x44   : > { %p10698_p6 = scmp.ne.s32.totalorder %s12553_s2, %s10697_s14  ;;  %p10704_p5 = scmp.lt.u32.totalorder %s10697_s14, %s12553_s2 }
  0x46   : > { %p10700_p10 = pnand %p10698_p6, %p10998_p13 }
  0x48   : > { %p10701_p3 = pneg %p10700_p10 }
  0x4a   : > { %p10706_p7 = pnand %p10704_p5, %p10701_p3 }
  0x4c   : > { %10709 = shalt.err (!%p10706_p7)
}
  0x4d   : > { %s10710_s6 = scalar_lea.vmem %s231_s12, 64  ;;  %p10718_p1 = scmp.lt.s32.totalorder %s231_s12, %s231_s12 }
  0x4e   : > { %p10711_p9 = scmp.ne.s32.totalorder %s231_s12, %s10710_s6  ;;  %p10719_p4 = scmp.lt.s32.totalorder %s10710_s6, %s10710_s6 }
  0x50   : > { %p10713_p12 = pnand %p10711_p9, %p10998_p13  ;;  %p10720_p8 = por %p10719_p4, %p10718_p1 }
  0x52   : > { %p10714_p0 = pneg %p10713_p12 }
  0x54   : > { %p10721_p2 = pnand %p10720_p8, %p10714_p0 }
  0x56   : > { %10724 = shalt.err (!%p10721_p2)
}
  0x57   : > { %9550 = dma.hbm_to_vmem [thread:$0]  (!%p10982_p11), %s12553_s2, 64, %s231_s12, [#allocation6]  }
  0x58   : > { %s10880_s7 = smov [#allocation10]   ;;  %s10725_s13 = scalar_lea.hbm %s12555_s4, 64 }
  0x59   : > { %s258_s18 = sshll.u32 %s10880_s7, 4  ;;  %p10726_p6 = scmp.ne.s32.totalorder %s12555_s4, %s10725_s13  ;;  %s259_s18 = int_to_ptr.vmem [resolvable:$true] %s258_s18 }
  0x5a   : > { %p10732_p10 = scmp.lt.u32.totalorder %s10725_s13, %s12555_s4 }
  0x5b   : > { %p10728_p2 = pnand %p10726_p6, %p10998_p13 }
  0x5d   : > { %p10729_p8 = pneg %p10728_p2 }
  0x5f   : > { %p10734_p3 = pnand %p10732_p10, %p10729_p8 }
  0x61   : > { %10737 = shalt.err (!%p10734_p3)
}
  0x62   : > { %s10738_s12 = scalar_lea.vmem %s259_s18, 64  ;;  %p10746_p12 = scmp.lt.s32.totalorder %s259_s18, %s259_s18 }
  0x63   : > { %p10739_p5 = scmp.ne.s32.totalorder %s259_s18, %s10738_s12  ;;  %p10747_p0 = scmp.lt.s32.totalorder %s10738_s12, %s10738_s12 }
  0x65   : > { %p10741_p7 = pnand %p10739_p5, %p10998_p13  ;;  %p10748_p1 = por %p10747_p0, %p10746_p12 }
  0x67   : > { %p10742_p9 = pneg %p10741_p7 }
  0x69   : > { %p10749_p4 = pnand %p10748_p1, %p10742_p9 }
  0x6b   : > { %10752 = shalt.err (!%p10749_p4)
}
  0x6c   : > { %9556 = dma.hbm_to_vmem [thread:$0]  (!%p10982_p11), %s12555_s4, 64, %s259_s18, [#allocation9]  }
  0x6d   : > { %s32_s24 = sadd.s32 1, %s10869_s22  ;;  %s42_s10 = sadd.s32 1, %s10861_s20 }
  0x6e   : > { %p33_p13 = scmp.ge.s32.totalorder %s32_s24, 2  ;;  %p49_p6 = scmp.ne.s32.totalorder %s10861_s20, %s10857_s19 }
  0x6f   : > { %p50_p2 = scmp.eq.s32.totalorder %s10873_s23, 0  ;;  %p9569_p8 = scmp.lt.s32.totalorder %s10873_s23, 2 }
  0x70   : > { %s12825_s24 = smov (%p33_p13, %s32_s24), 0  ;;  %p12601_p3 = scmp.ne.s32.totalorder %s12594_s27, 0 }
  0x71   : > { %p51_p10 = por %p50_p2, %p49_p6  ;;  %s39_s9 = ssub.s32 %s10869_s22, %s12825_s24 }
  0x72   : > { %p11089_p5 = por %p12601_p3, %p49_p6  ;;  %s269_s7 = sand.u32 1, %s10861_s20  }
  0x73   : > { %p40_p7 = scmp.eq.s32.totalorder %s39_s9, 0  ;;  %s9521_s18 = smul.u32 1792, %s269_s7 }
  0x74   : > { %p11096_p11 = pnand %p9569_p8, %p51_p10  ;;  %s9522_s13 = smul.u32 28672, %s10869_s22 }
  0x75   : > { %s11101_s11 = scalar_select %p40_p7, %s10861_s20, %s42_s10  }
  0x76   : > { %s273_s14 = scalar_lea.vmem [#allocation2], %s9521_s18  ;;  %s11107_s17 = scalar_lea.hbm %s12551_s0, %s9522_s13 }
  0x77   : > { %s280_s15 = sshll.u32 %s273_s14, 4  ;;  %s11111_s12 = scalar_lea.sflag [#allocation3], %s269_s7  ;;  %s11109_s15 = int_to_ptr.vmem [resolvable:$true] %s280_s15 }
  0x78   : > { %s10753_s25 = scalar_lea.hbm %s11107_s17, 28672  ;;  %p10755_p12 = pneg %p11096_p11 }
  0x79   : > { %p10754_p9 = scmp.ne.s32.totalorder %s11107_s17, %s10753_s25  ;;  %s10758_s9 = scalar_lea.hbm %s12551_s0, 57344 }
  0x7a   : > { %p10759_p4 = scmp.lt.u32.totalorder %s11107_s17, %s12551_s0  ;;  %p10760_p13 = scmp.lt.u32.totalorder %s10758_s9, %s10753_s25 }
  0x7b   : > { %p10756_p0 = pnand %p10755_p12, %p10754_p9  ;;  %p10762_p2 = scmp.lt.u32.totalorder %s10753_s25, %s11107_s17 }
  0x7c   : > { %p10761_p6 = por %p10760_p13, %p10759_p4 }
  0x7d   : > { %p10757_p1 = pneg %p10756_p0 }
  0x7e   : > { %p10763_p8 = por %p10762_p2, %p10761_p6 }
  0x80   : > { %p10764_p10 = pnand %p10763_p8, %p10757_p1 }
  0x82   : > { %10767 = shalt.err (!%p10764_p10)
}
  0x83   : > { %s10768_s7 = scalar_lea.vmem %s11109_s15, 28672  ;;  %s10881_s14 = smov [#allocation2]  }
  0x84   : > { %p10769_p3 = scmp.ne.s32.totalorder %s11109_s15, %s10768_s7  ;;  %s10773_s27 = sshll.u32 %s10881_s14, 4  ;;  %s10774_s27 = int_to_ptr.vmem [resolvable:$false] %s10773_s27 }
  0x85   : > { %s10775_s16 = scalar_lea.vmem %s10774_s27, 57344  ;;  %p10776_p0 = scmp.lt.s32.totalorder %s11109_s15, %s10774_s27 }
  0x86   : > { %p10771_p7 = pnand %p10769_p3, %p10755_p12  ;;  %p10777_p4 = scmp.lt.s32.totalorder %s10775_s16, %s10768_s7 }
  0x88   : > { %p10772_p9 = pneg %p10771_p7  ;;  %p10778_p13 = por %p10777_p4, %p10776_p0 }
  0x8a   : > { %p10779_p6 = pnand %p10778_p13, %p10772_p9 }
  0x8c   : > { %10782 = shalt.err (!%p10779_p6)
}
  0x8d   : > { %s10882_s25 = smov 896   ;;  %s10883_s6 = smov 56  }
  0x8e   : > { %9560 = dma.hbm_to_vmem [thread:$0]  (!%p11096_p11), %s11107_s17, 28672, %s11109_s15, %s11111_s12, %s10882_s25, %s10882_s25, %s10883_s6  }
  0x8f   : > { %p12604_p12 = scmp.ne.s32.totalorder %s12598_s30, 0 }
  0x91   : > { %292 = sbr.rel (%p12604_p12) target bundleno = 1414 (0x586), region = 40 }
  0x98   : > { %s11142_s10 = sand.u32 1, %s10857_s19   ;;  %p12605_p1 = scmp.ne.s32.totalorder %s12595_s28, 0 }
  0x99   : > { %s9523_s9 = smul.u32 1792, %s11142_s10  ;;  %s295_s18 = scalar_lea.sflag [#allocation3], %s11142_s10 }
  0x9b   : > { %s11146_s13 = scalar_lea.vmem [#allocation2], %s9523_s9 }
  0x9c   : > { %10836 = dma.done.wait (%p12605_p1), %s295_s18, 28672  }
  0x9d   : > { %10838 = vsyncadd (%p12605_p1), %s295_s18, 4294938624  ;;  %p12606_p11 = scmp.ne.s32.totalorder %s12593_s26, 0 }
  0x9f   : > { %10840 = dma.done.wait (%p12606_p11), [#allocation6], 57408  }
  0xa0   : > { %10842 = vsyncadd (%p12606_p11), [#allocation6], 4294909888 }
  0xa1   : > { %10844 = dma.done.wait (%p12606_p11), [#allocation9], 128  }
  0xa2   : > { %10846 = vsyncadd (%p12606_p11), [#allocation9], 4294967168  ;;  %v9633_v0 = vld [vmem:[#allocation5 + $0x4] ss:$16 sps:$4 sm:$0xff]   ;;  %v9635_v1 = vld [vmem:[#allocation5 + $0xc] ss:$16 sps:$4 sm:$0xff]  }
  0xa3   : > { %4400 = vmatprep.subr.bf16.mxu0 %v9633_v0  ;;  %v9637_v2 = vld [vmem:[#allocation5] ss:$16 sps:$4 sm:$0xff]   ;;  %v9638_v3 = vld [vmem:[#allocation5 + $0x8] ss:$16 sps:$4 sm:$0xff]   ;;  %5751 = vmatprep.subr.bf16.mxu1 %v9635_v1  ;;  %v9639_v4 = vld [vmem:[#allocation5 + $0x24] ss:$16 sps:$4 sm:$0xff]  }
  0xa4   : > { %4401 = vmatpush1.bf16.msra.mxu0 %v9637_v2  ;;  %5752 = vmatpush1.bf16.msra.mxu1 %v9638_v3  ;;  %v9641_v5 = vld [vmem:[#allocation5 + $0x2c] ss:$16 sps:$4 sm:$0xff]   ;;  %v9643_v6 = vld [vmem:[#allocation5 + $0x20] ss:$16 sps:$4 sm:$0xff]   ;;  %v9644_v7 = vld [vmem:[#allocation5 + $0x28] ss:$16 sps:$4 sm:$0xff]  }
  0xa5   : > { %4402 = vmatprep.subr.bf16.mxu0 %v9639_v4  ;;  %5753 = vmatprep.subr.bf16.mxu1 %v9641_v5  ;;  %v9645_v8 = vld [vmem:[#allocation5 + $0x44] ss:$16 sps:$4 sm:$0xff]   ;;  %v9647_v9 = vld [vmem:[#allocation5 + $0x4c] ss:$16 sps:$4 sm:$0xff]   ;;  %v9649_v10 = vld [vmem:[#allocation5 + $0x40] ss:$16 sps:$4 sm:$0xff]  }
  0xa6   : > { %v9650_v11 = vld [vmem:[#allocation5 + $0x48] ss:$16 sps:$4 sm:$0xff]   ;;  %v9651_v12 = vld [vmem:[#allocation5 + $0x64] ss:$16 sps:$4 sm:$0xff]   ;;  %v9653_v13 = vld [vmem:[#allocation5 + $0x6c] ss:$16 sps:$4 sm:$0xff]  }
  0xa7   : > { %v9655_v14 = vld [vmem:[#allocation5 + $0x60] ss:$16 sps:$4 sm:$0xff]   ;;  %v9656_v15 = vld [vmem:[#allocation5 + $0x68] ss:$16 sps:$4 sm:$0xff]   ;;  %v9657_v16 = vld [vmem:[#allocation5 + $0x84] ss:$16 sps:$4 sm:$0xff]  }
  0xa8   : > { %4403 = vmatpush1.bf16.msra.mxu0 %v9643_v6  ;;  %5754 = vmatpush1.bf16.msra.mxu1 %v9644_v7  ;;  %v9659_v17 = vld [vmem:[#allocation5 + $0x8c] ss:$16 sps:$4 sm:$0xff]   ;;  %v9661_v18 = vld [vmem:[#allocation5 + $0x80] ss:$16 sps:$4 sm:$0xff]   ;;  %v9662_v19 = vld [vmem:[#allocation5 + $0x88] ss:$16 sps:$4 sm:$0xff]  }
  0xa9   : > { %4404 = vmatprep.subr.bf16.mxu0 %v9645_v8  ;;  %5755 = vmatprep.subr.bf16.mxu1 %v9647_v9  ;;  %v9663_v20 = vld [vmem:[#allocation5 + $0xa4] ss:$16 sps:$4 sm:$0xff]   ;;  %v9665_v21 = vld [vmem:[#allocation5 + $0xac] ss:$16 sps:$4 sm:$0xff]   ;;  %v9667_v22 = vld [vmem:[#allocation5 + $0xa0] ss:$16 sps:$4 sm:$0xff]  }
  0xaa   : > { %v9668_v23 = vld [vmem:[#allocation5 + $0xa8] ss:$16 sps:$4 sm:$0xff]   ;;  %v9669_v24 = vld [vmem:[#allocation5 + $0xc4] ss:$16 sps:$4 sm:$0xff]   ;;  %v9671_v25 = vld [vmem:[#allocation5 + $0xcc] ss:$16 sps:$4 sm:$0xff]  }
  0xab   : > { %v9673_v26 = vld [vmem:[#allocation5 + $0xc0] ss:$16 sps:$4 sm:$0xff]   ;;  %v9674_v27 = vld [vmem:[#allocation5 + $0xc8] ss:$16 sps:$4 sm:$0xff]   ;;  %v9675_v28 = vld [vmem:[#allocation5 + $0xe4] ss:$16 sps:$4 sm:$0xff]  }
  0xac   : > { %4405 = vmatpush1.bf16.msra.mxu0 %v9649_v10  ;;  %5756 = vmatpush1.bf16.msra.mxu1 %v9650_v11  ;;  %v9677_v29 = vld [vmem:[#allocation5 + $0xec] ss:$16 sps:$4 sm:$0xff]   ;;  %v9679_v30 = vld [vmem:[#allocation5 + $0xe0] ss:$16 sps:$4 sm:$0xff]   ;;  %v9680_v31 = vld [vmem:[#allocation5 + $0xe8] ss:$16 sps:$4 sm:$0xff]  }
  0xad   : > { %4406 = vmatprep.subr.bf16.mxu0 %v9651_v12  ;;  %5757 = vmatprep.subr.bf16.mxu1 %v9653_v13  ;;  %v9681_v32 = vld [vmem:[#allocation5 + $0x104] ss:$16 sps:$4 sm:$0xff]   ;;  %v9683_v33 = vld [vmem:[#allocation5 + $0x10c] ss:$16 sps:$4 sm:$0xff]   ;;  %v9685_v34 = vld [vmem:[#allocation5 + $0x100] ss:$16 sps:$4 sm:$0xff]  }
  0xae   : > { %v9686_v35 = vld [vmem:[#allocation5 + $0x108] ss:$16 sps:$4 sm:$0xff]   ;;  %v9687_v36 = vld [vmem:[#allocation5 + $0x124] ss:$16 sps:$4 sm:$0xff]   ;;  %v9689_v37 = vld [vmem:[#allocation5 + $0x12c] ss:$16 sps:$4 sm:$0xff]  }
  0xaf   : > { %v9691_v38 = vld [vmem:[#allocation5 + $0x120] ss:$16 sps:$4 sm:$0xff]   ;;  %v9692_v39 = vld [vmem:[#allocation5 + $0x128] ss:$16 sps:$4 sm:$0xff]   ;;  %v9693_v40 = vld [vmem:[#allocation5 + $0x144] ss:$16 sps:$4 sm:$0xff]  }
  0xb0   : > { %4407 = vmatpush1.bf16.msra.mxu0 %v9655_v14  ;;  %5758 = vmatpush1.bf16.msra.mxu1 %v9656_v15  ;;  %v9695_v41 = vld [vmem:[#allocation5 + $0x14c] ss:$16 sps:$4 sm:$0xff]   ;;  %v9697_v42 = vld [vmem:[#allocation5 + $0x140] ss:$16 sps:$4 sm:$0xff]   ;;  %v9698_v43 = vld [vmem:[#allocation5 + $0x148] ss:$16 sps:$4 sm:$0xff]  }
  0xb1   : > { %4408 = vmatprep.subr.bf16.mxu0 %v9657_v16  ;;  %5759 = vmatprep.subr.bf16.mxu1 %v9659_v17  ;;  %v9699_v44 = vld [vmem:[#allocation5 + $0x164] ss:$16 sps:$4 sm:$0xff]   ;;  %v9701_v45 = vld [vmem:[#allocation5 + $0x16c] ss:$16 sps:$4 sm:$0xff]   ;;  %v9703_v46 = vld [vmem:[#allocation5 + $0x160] ss:$16 sps:$4 sm:$0xff]  }
  0xb2   : > { %v9704_v47 = vld [vmem:[#allocation5 + $0x168] ss:$16 sps:$4 sm:$0xff]   ;;  %v9731_v48 = vld [vmem:[%s11146_s13 + $0x4] ss:$56 sps:$4 sm:$0xff]   ;;  %v9709_v51 = vld [vmem:[#allocation5 + $0x180] ss:$16 sps:$4 sm:$0xff]  }
  0xb3   : > { %v9705_v49 = vld [vmem:[#allocation5 + $0x184] ss:$16 sps:$4 sm:$0xff]   ;;  %v9707_v50 = vld [vmem:[#allocation5 + $0x18c] ss:$16 sps:$4 sm:$0xff]   ;;  %4432 = vmatprep.mubr.bf16.mxu0 %v9731_v48  ;;  %5783 = vmatprep.mubr.bf16.mxu1 %v9731_v48  ;;  %v9710_v52 = vld [vmem:[#allocation5 + $0x188] ss:$16 sps:$4 sm:$0xff]  }
  0xb4   : > { %4409 = vmatpush1.bf16.msra.mxu0 %v9661_v18  ;;  %5760 = vmatpush1.bf16.msra.mxu1 %v9662_v19  ;;  %v9711_v53 = vld [vmem:[#allocation5 + $0x1a4] ss:$16 sps:$4 sm:$0xff]   ;;  %v9713_v54 = vld [vmem:[#allocation5 + $0x1ac] ss:$16 sps:$4 sm:$0xff]   ;;  %v9715_v55 = vld [vmem:[#allocation5 + $0x1a0] ss:$16 sps:$4 sm:$0xff]  }
  0xb5   : > { %4410 = vmatprep.subr.bf16.mxu0 %v9663_v20  ;;  %5761 = vmatprep.subr.bf16.mxu1 %v9665_v21  ;;  %v9716_v56 = vld [vmem:[#allocation5 + $0x1a8] ss:$16 sps:$4 sm:$0xff]   ;;  %v9717_v57 = vld [vmem:[#allocation5 + $0x1c4] ss:$16 sps:$4 sm:$0xff]   ;;  %v9719_v58 = vld [vmem:[#allocation5 + $0x1cc] ss:$16 sps:$4 sm:$0xff]  }
  0xb6   : > { %v9721_v59 = vld [vmem:[#allocation5 + $0x1c0] ss:$16 sps:$4 sm:$0xff]   ;;  %v9722_v60 = vld [vmem:[#allocation5 + $0x1c8] ss:$16 sps:$4 sm:$0xff]   ;;  %v9723_v61 = vld [vmem:[#allocation5 + $0x1e4] ss:$16 sps:$4 sm:$0xff]  }
  0xb7   : > { %v9725_v62 = vld [vmem:[#allocation5 + $0x1ec] ss:$16 sps:$4 sm:$0xff]   ;;  %v9727_v63 = vld [vmem:[#allocation5 + $0x1e0] ss:$16 sps:$4 sm:$0xff]   ;;  %v9728_v0 = vld [vmem:[#allocation5 + $0x1e8] ss:$16 sps:$4 sm:$0xff]  }
  0xb8   : > { %4411 = vmatpush1.bf16.msra.mxu0 %v9667_v22  ;;  %5762 = vmatpush1.bf16.msra.mxu1 %v9668_v23  ;;  %v9734_v1 = vld [vmem:[#allocation5 + $0x204] ss:$16 sps:$4 sm:$0xff]   ;;  %v9737_v2 = vld [vmem:[#allocation5 + $0x20c] ss:$16 sps:$4 sm:$0xff]   ;;  %v9729_v3 = vld [vmem:[%s11146_s13] ss:$56 sps:$4 sm:$0xff]  }
  0xb9   : > { %4412 = vmatprep.subr.bf16.mxu0 %v9669_v24  ;;  %5763 = vmatprep.subr.bf16.mxu1 %v9671_v25  ;;  %v9732_v4 = vld [vmem:[#allocation5 + $0x200] ss:$16 sps:$4 sm:$0xff]   ;;  %v9735_v5 = vld [vmem:[#allocation5 + $0x208] ss:$16 sps:$4 sm:$0xff]   ;;  %v9738_v6 = vld [vmem:[%s11146_s13 + $0x74] ss:$56 sps:$4 sm:$0xff]  }
  0xba   : > { %v9743_v7 = vld [vmem:[#allocation5 + $0x224] ss:$16 sps:$4 sm:$0xff]   ;;  %v9746_v8 = vld [vmem:[#allocation5 + $0x22c] ss:$16 sps:$4 sm:$0xff]   ;;  %v9741_v9 = vld [vmem:[#allocation5 + $0x220] ss:$16 sps:$4 sm:$0xff]  }
  0xbb   : > { %v9744_v10 = vld [vmem:[#allocation5 + $0x228] ss:$16 sps:$4 sm:$0xff]   ;;  %v9752_v11 = vld [vmem:[#allocation5 + $0x244] ss:$16 sps:$4 sm:$0xff]   ;;  %v9755_v12 = vld [vmem:[#allocation5 + $0x24c] ss:$16 sps:$4 sm:$0xff]  }
  0xbc   : > { %4413 = vmatpush1.bf16.msra.mxu0 %v9673_v26  ;;  %5764 = vmatpush1.bf16.msra.mxu1 %v9674_v27  ;;  %v9740_v13 = vld [vmem:[%s11146_s13 + $0x70] ss:$56 sps:$4 sm:$0xff]   ;;  %v9747_v14 = vld [vmem:[%s11146_s13 + $0xe4] ss:$56 sps:$4 sm:$0xff]   ;;  %v9749_v23 = vld [vmem:[%s11146_s13 + $0xe0] ss:$56 sps:$4 sm:$0xff]  }
  0xbd   : > { %4414 = vmatprep.subr.bf16.mxu0 %v9675_v28  ;;  %5765 = vmatprep.subr.bf16.mxu1 %v9677_v29  ;;  %v9750_v15 = vld [vmem:[#allocation5 + $0x240] ss:$16 sps:$4 sm:$0xff]   ;;  %v9753_v16 = vld [vmem:[#allocation5 + $0x248] ss:$16 sps:$4 sm:$0xff]   ;;  %v9761_v17 = vld [vmem:[#allocation5 + $0x264] ss:$16 sps:$4 sm:$0xff]  }
  0xbe   : > { %v9764_v18 = vld [vmem:[#allocation5 + $0x26c] ss:$16 sps:$4 sm:$0xff]   ;;  %v9759_v19 = vld [vmem:[#allocation5 + $0x260] ss:$16 sps:$4 sm:$0xff]   ;;  %v9762_v20 = vld [vmem:[#allocation5 + $0x268] ss:$16 sps:$4 sm:$0xff]  }
  0xbf   : > { %v9770_v21 = vld [vmem:[#allocation5 + $0x284] ss:$16 sps:$4 sm:$0xff]   ;;  %v9773_v22 = vld [vmem:[#allocation5 + $0x28c] ss:$16 sps:$4 sm:$0xff]   ;;  %v9768_v25 = vld [vmem:[#allocation5 + $0x280] ss:$16 sps:$4 sm:$0xff]  }
  0xc0   : > { %4415 = vmatpush1.bf16.msra.mxu0 %v9679_v30  ;;  %5766 = vmatpush1.bf16.msra.mxu1 %v9680_v31  ;;  %v9756_v24 = vld [vmem:[%s11146_s13 + $0x154] ss:$56 sps:$4 sm:$0xff]   ;;  %v9771_v26 = vld [vmem:[#allocation5 + $0x288] ss:$16 sps:$4 sm:$0xff]   ;;  %v9777_v29 = vld [vmem:[#allocation5 + $0x2a0] ss:$16 sps:$4 sm:$0xff]  }
  0xc1   : > { %4416 = vmatprep.subr.bf16.mxu0 %v9681_v32  ;;  %5767 = vmatprep.subr.bf16.mxu1 %v9683_v33  ;;  %v9779_v27 = vld [vmem:[#allocation5 + $0x2a4] ss:$16 sps:$4 sm:$0xff]   ;;  %v9782_v28 = vld [vmem:[#allocation5 + $0x2ac] ss:$16 sps:$4 sm:$0xff]   ;;  %v9780_v30 = vld [vmem:[#allocation5 + $0x2a8] ss:$16 sps:$4 sm:$0xff]  }
  0xc2   : > { %v9788_v31 = vld [vmem:[#allocation5 + $0x2c4] ss:$16 sps:$4 sm:$0xff]   ;;  %v9791_v32 = vld [vmem:[#allocation5 + $0x2cc] ss:$16 sps:$4 sm:$0xff]   ;;  %v9758_v33 = vld [vmem:[%s11146_s13 + $0x150] ss:$56 sps:$4 sm:$0xff]  }
  0xc3   : > { %v9818_v48 = vld [vmem:[#allocation5 + $0x32c] ss:$16 sps:$4 sm:$0xff]   ;;  %s7946_s26 = sshll.u32 %s11142_s10, 8  ;;  %s8624_s30 = sshll.u32 %s10865_s21, 12 }
  0xc4   : > { %4417 = vmatpush1.bf16.msra.mxu0 %v9685_v34  ;;  %5768 = vmatpush1.bf16.msra.mxu1 %v9686_v35  ;;  %v9765_v34 = vld [vmem:[%s11146_s13 + $0x1c4] ss:$56 sps:$4 sm:$0xff]   ;;  %v9786_v35 = vld [vmem:[#allocation5 + $0x2c0] ss:$16 sps:$4 sm:$0xff]   ;;  %s12289_s28 = scalar_lea.vmem [#allocation11], %s7946_s26  ;;  %s12492_s17 = scalar_lea.hbm %s12556_s5, %s8624_s30 }
  0xc5   : > { %4418 = vmatprep.subr.bf16.mxu0 %v9687_v36  ;;  %5769 = vmatprep.subr.bf16.mxu1 %v9689_v37  ;;  %v9789_v36 = vld [vmem:[#allocation5 + $0x2c8] ss:$16 sps:$4 sm:$0xff]   ;;  %v9797_v37 = vld [vmem:[#allocation5 + $0x2e4] ss:$16 sps:$4 sm:$0xff]   ;;  %s7802_s29 = sshll.u32 %s12289_s28, 4  ;;  %s7787_s12 = scalar_lea.sflag [#allocation4], %s11142_s10  ;;  %s12494_s29 = int_to_ptr.vmem [resolvable:$true] %s7802_s29 }
  0xc6   : > { %s10783_s7 = scalar_lea.vmem %s12494_s29, 4096  ;;  %s10884_s14 = smov [#allocation11]  }
  0xc7   : > { %p10784_p2 = scmp.ne.s32.totalorder %s12494_s29, %s10783_s7  ;;  %s10787_s27 = sshll.u32 %s10884_s14, 4  ;;  %s10788_s27 = int_to_ptr.vmem [resolvable:$false] %s10787_s27 }
  0xc8   : > { %4419 = vmatpush1.bf16.msra.mxu0 %v9691_v38  ;;  %5770 = vmatpush1.bf16.msra.mxu1 %v9692_v39  ;;  %v9800_v38 = vld [vmem:[#allocation5 + $0x2ec] ss:$16 sps:$4 sm:$0xff]   ;;  %v9795_v39 = vld [vmem:[#allocation5 + $0x2e0] ss:$16 sps:$4 sm:$0xff]   ;;  %s10789_s16 = scalar_lea.vmem %s10788_s27, 8192  ;;  %p10790_p3 = scmp.lt.s32.totalorder %s12494_s29, %s10788_s27 }
  0xc9   : > { %4420 = vmatprep.subr.bf16.mxu0 %v9693_v40  ;;  %5771 = vmatprep.subr.bf16.mxu1 %v9695_v41  ;;  %v9798_v40 = vld [vmem:[#allocation5 + $0x2e8] ss:$16 sps:$4 sm:$0xff]   ;;  %v9806_v41 = vld [vmem:[#allocation5 + $0x304] ss:$16 sps:$4 sm:$0xff]   ;;  %p10785_p8 = pnand %p10784_p2, %p11089_p5  ;;  %p10791_p7 = scmp.lt.s32.totalorder %s10789_s16, %s10783_s7 }
  0xcb   : > { %p10786_p10 = pneg %p10785_p8  ;;  %p10792_p9 = por %p10791_p7, %p10790_p3 }
  0xcc   : > { %4421 = vmatpush1.bf16.msra.mxu0 %v9697_v42  ;;  %5772 = vmatpush1.bf16.msra.mxu1 %v9698_v43  ;;  %v9809_v42 = vld [vmem:[#allocation5 + $0x30c] ss:$16 sps:$4 sm:$0xff]   ;;  %v9767_v43 = vld [vmem:[%s11146_s13 + $0x1c0] ss:$56 sps:$4 sm:$0xff]  }
  0xcd   : > { %4422 = vmatprep.subr.bf16.mxu0 %v9699_v44  ;;  %5773 = vmatprep.subr.bf16.mxu1 %v9701_v45  ;;  %v9774_v44 = vld [vmem:[%s11146_s13 + $0x234] ss:$56 sps:$4 sm:$0xff]   ;;  %v9804_v45 = vld [vmem:[#allocation5 + $0x300] ss:$16 sps:$4 sm:$0xff]   ;;  %p10793_p0 = pnand %p10792_p9, %p10786_p10 }
  0xd0   : > { %4423 = vmatpush1.bf16.msra.mxu0 %v9703_v46  ;;  %5774 = vmatpush1.bf16.msra.mxu1 %v9704_v47  ;;  %v9807_v46 = vld [vmem:[#allocation5 + $0x308] ss:$16 sps:$4 sm:$0xff]   ;;  %v9815_v47 = vld [vmem:[#allocation5 + $0x324] ss:$16 sps:$4 sm:$0xff]  }
  0xd1   : > { %4424 = vmatprep.subr.bf16.mxu0 %v9705_v49  ;;  %5775 = vmatprep.subr.bf16.mxu1 %v9707_v50  ;;  %v9813_v49 = vld [vmem:[#allocation5 + $0x320] ss:$16 sps:$4 sm:$0xff]   ;;  %v9816_v50 = vld [vmem:[#allocation5 + $0x328] ss:$16 sps:$4 sm:$0xff]  }
  0xd4   : > { %4425 = vmatpush1.bf16.msra.mxu0 %v9709_v51  ;;  %5776 = vmatpush1.bf16.msra.mxu1 %v9710_v52  ;;  %v9824_v51 = vld [vmem:[#allocation5 + $0x344] ss:$16 sps:$4 sm:$0xff]   ;;  %v9827_v52 = vld [vmem:[#allocation5 + $0x34c] ss:$16 sps:$4 sm:$0xff]  }
  0xd5   : > { %4426 = vmatprep.subr.bf16.mxu0 %v9711_v53  ;;  %5777 = vmatprep.subr.bf16.mxu1 %v9713_v54  ;;  %v9776_v53 = vld [vmem:[%s11146_s13 + $0x230] ss:$56 sps:$4 sm:$0xff]   ;;  %v9783_v54 = vld [vmem:[%s11146_s13 + $0x2a4] ss:$56 sps:$4 sm:$0xff]  }
  0xd8   : > { %4427 = vmatpush1.bf16.msra.mxu0 %v9715_v55  ;;  %5778 = vmatpush1.bf16.msra.mxu1 %v9716_v56  ;;  %v9822_v55 = vld [vmem:[#allocation5 + $0x340] ss:$16 sps:$4 sm:$0xff]   ;;  %v9825_v56 = vld [vmem:[#allocation5 + $0x348] ss:$16 sps:$4 sm:$0xff]  }
  0xd9   : > { %4428 = vmatprep.subr.bf16.mxu0 %v9717_v57  ;;  %5779 = vmatprep.subr.bf16.mxu1 %v9719_v58  ;;  %v9833_v57 = vld [vmem:[#allocation5 + $0x364] ss:$16 sps:$4 sm:$0xff]   ;;  %v9836_v58 = vld [vmem:[#allocation5 + $0x36c] ss:$16 sps:$4 sm:$0xff]  }
  0xdc   : > { %4429 = vmatpush1.bf16.msra.mxu0 %v9721_v59  ;;  %5780 = vmatpush1.bf16.msra.mxu1 %v9722_v60  ;;  %v9831_v59 = vld [vmem:[#allocation5 + $0x360] ss:$16 sps:$4 sm:$0xff]   ;;  %v9834_v60 = vld [vmem:[#allocation5 + $0x368] ss:$16 sps:$4 sm:$0xff]  }
  0xdd   : > { %4430 = vmatprep.subr.bf16.mxu0 %v9723_v61  ;;  %5781 = vmatprep.subr.bf16.mxu1 %v9725_v62  ;;  %v9842_v61 = vld [vmem:[#allocation5 + $0x384] ss:$16 sps:$4 sm:$0xff]   ;;  %v9845_v62 = vld [vmem:[#allocation5 + $0x38c] ss:$16 sps:$4 sm:$0xff]  }
  0xe0   : > { %4431 = vmatpush1.bf16.msra.mxu0 %v9727_v63  ;;  %5782 = vmatpush1.bf16.msra.mxu1 %v9728_v0  ;;  %v9785_v63 = vld [vmem:[%s11146_s13 + $0x2a0] ss:$56 sps:$4 sm:$0xff]   ;;  %v9792_v0 = vld [vmem:[%s11146_s13 + $0x314] ss:$56 sps:$4 sm:$0xff]  }
  0xe1   : > { %4593 = vmatprep.subr.bf16.mxu0 %v9734_v1  ;;  %5944 = vmatprep.subr.bf16.mxu1 %v9737_v2  ;;  %v9840_v1 = vld [vmem:[#allocation5 + $0x380] ss:$16 sps:$4 sm:$0xff]   ;;  %v9843_v2 = vld [vmem:[#allocation5 + $0x388] ss:$16 sps:$4 sm:$0xff]  }
  0xe3   : > { %4433 = vmatmul.mubr.bf16.vlgmr.msra.gmra.mrb[0].mxu0 %v9729_v3  ;;  %5784 = vmatmul.mubr.bf16.vlgmr.msra.gmra.mrb[0].mxu1 %v9729_v3  ;;  %v9851_v3 = vld [vmem:[#allocation5 + $0x3a4] ss:$16 sps:$4 sm:$0xff]  }
  0xe4   : > { %4594 = vmatpush1.bf16.msra.mxu0 %v9732_v4  ;;  %5945 = vmatpush1.bf16.msra.mxu1 %v9735_v5  ;;  %v9854_v4 = vld [vmem:[#allocation5 + $0x3ac] ss:$16 sps:$4 sm:$0xff]   ;;  %v9849_v5 = vld [vmem:[#allocation5 + $0x3a0] ss:$16 sps:$4 sm:$0xff]  }
  0xe5   : > { %4442 = vmatprep.mubr.bf16.mxu0 %v9738_v6  ;;  %5793 = vmatprep.mubr.bf16.mxu1 %v9738_v6  ;;  %v9852_v6 = vld [vmem:[#allocation5 + $0x3a8] ss:$16 sps:$4 sm:$0xff]  }
  0xe6   : > { %4595 = vmatprep.subr.bf16.mxu0 %v9743_v7  ;;  %5946 = vmatprep.subr.bf16.mxu1 %v9746_v8  ;;  %v9860_v7 = vld [vmem:[#allocation5 + $0x3c4] ss:$16 sps:$4 sm:$0xff]   ;;  %v9863_v8 = vld [vmem:[#allocation5 + $0x3cc] ss:$16 sps:$4 sm:$0xff]  }
  0xe8   : > { %4596 = vmatpush1.bf16.msra.mxu0 %v9741_v9  ;;  %5947 = vmatpush1.bf16.msra.mxu1 %v9744_v10  ;;  %v9794_v9 = vld [vmem:[%s11146_s13 + $0x310] ss:$56 sps:$4 sm:$0xff]   ;;  %v9801_v10 = vld [vmem:[%s11146_s13 + $0x384] ss:$56 sps:$4 sm:$0xff]  }
  0xe9   : > { %4597 = vmatprep.subr.bf16.mxu0 %v9752_v11  ;;  %5948 = vmatprep.subr.bf16.mxu1 %v9755_v12  ;;  %v9858_v11 = vld [vmem:[#allocation5 + $0x3c0] ss:$16 sps:$4 sm:$0xff]   ;;  %v9861_v12 = vld [vmem:[#allocation5 + $0x3c8] ss:$16 sps:$4 sm:$0xff]  }
  0xeb   : > { %4443 = vmatmul.mubr.bf16.gmra.mrb[4].mxu0 %v9740_v13  ;;  %5794 = vmatmul.mubr.bf16.gmra.mrb[4].mxu1 %v9740_v13  ;;  %v9869_v13 = vld [vmem:[#allocation5 + $0x3e4] ss:$16 sps:$4 sm:$0xff]  }
  0xec   : > { %4452 = vmatprep.mubr.bf16.mxu0 %v9747_v14  ;;  %5803 = vmatprep.mubr.bf16.mxu1 %v9747_v14  ;;  %v9872_v14 = vld [vmem:[#allocation5 + $0x3ec] ss:$16 sps:$4 sm:$0xff]  }
  0xed   : > { %4598 = vmatpush1.bf16.msra.mxu0 %v9750_v15  ;;  %5949 = vmatpush1.bf16.msra.mxu1 %v9753_v16  ;;  %v9867_v15 = vld [vmem:[#allocation5 + $0x3e0] ss:$16 sps:$4 sm:$0xff]   ;;  %v9870_v16 = vld [vmem:[#allocation5 + $0x3e8] ss:$16 sps:$4 sm:$0xff]  }
  0xee   : > { %4599 = vmatprep.subr.bf16.mxu0 %v9761_v17  ;;  %5950 = vmatprep.subr.bf16.mxu1 %v9764_v18  ;;  %v9878_v17 = vld [vmem:[#allocation5 + $0x404] ss:$16 sps:$4 sm:$0xff]   ;;  %v9881_v18 = vld [vmem:[#allocation5 + $0x40c] ss:$16 sps:$4 sm:$0xff]  }
  0xf1   : > { %4600 = vmatpush1.bf16.msra.mxu0 %v9759_v19  ;;  %5951 = vmatpush1.bf16.msra.mxu1 %v9762_v20  ;;  %v9803_v19 = vld [vmem:[%s11146_s13 + $0x380] ss:$56 sps:$4 sm:$0xff]   ;;  %v9810_v20 = vld [vmem:[%s11146_s13 + $0x3f4] ss:$56 sps:$4 sm:$0xff]  }
  0xf2   : > { %4601 = vmatprep.subr.bf16.mxu0 %v9770_v21  ;;  %5952 = vmatprep.subr.bf16.mxu1 %v9773_v22  ;;  %v9812_v21 = vld [vmem:[%s11146_s13 + $0x3f0] ss:$56 sps:$4 sm:$0xff]   ;;  %v9819_v22 = vld [vmem:[%s11146_s13 + $0x464] ss:$56 sps:$4 sm:$0xff]  }
  0xf3   : > { %4453 = vmatmul.mubr.bf16.gmra.mrb[8].mxu0 %v9749_v23  ;;  %5804 = vmatmul.mubr.bf16.gmra.mrb[8].mxu1 %v9749_v23  ;;  %v9821_v23 = vld [vmem:[%s11146_s13 + $0x460] ss:$56 sps:$4 sm:$0xff]  }
  0xf4   : > { %4462 = vmatprep.mubr.bf16.mxu0 %v9756_v24  ;;  %5813 = vmatprep.mubr.bf16.mxu1 %v9756_v24  ;;  %v9828_v24 = vld [vmem:[%s11146_s13 + $0x4d4] ss:$56 sps:$4 sm:$0xff]  }
  0xf5   : > { %4602 = vmatpush1.bf16.msra.mxu0 %v9768_v25  ;;  %5953 = vmatpush1.bf16.msra.mxu1 %v9771_v26  ;;  %v9830_v25 = vld [vmem:[%s11146_s13 + $0x4d0] ss:$56 sps:$4 sm:$0xff]   ;;  %v9837_v26 = vld [vmem:[%s11146_s13 + $0x544] ss:$56 sps:$4 sm:$0xff]  }
  0xf6   : > { %4603 = vmatprep.subr.bf16.mxu0 %v9779_v27  ;;  %5954 = vmatprep.subr.bf16.mxu1 %v9782_v28  ;;  %v9839_v27 = vld [vmem:[%s11146_s13 + $0x540] ss:$56 sps:$4 sm:$0xff]   ;;  %v9846_v28 = vld [vmem:[%s11146_s13 + $0x5b4] ss:$56 sps:$4 sm:$0xff]  }
  0xf9   : > { %4604 = vmatpush1.bf16.msra.mxu0 %v9777_v29  ;;  %5955 = vmatpush1.bf16.msra.mxu1 %v9780_v30  ;;  %v9848_v29 = vld [vmem:[%s11146_s13 + $0x5b0] ss:$56 sps:$4 sm:$0xff]   ;;  %v9855_v30 = vld [vmem:[%s11146_s13 + $0x624] ss:$56 sps:$4 sm:$0xff]  }
  0xfa   : > { %4605 = vmatprep.subr.bf16.mxu0 %v9788_v31  ;;  %5956 = vmatprep.subr.bf16.mxu1 %v9791_v32  ;;  %v9857_v31 = vld [vmem:[%s11146_s13 + $0x620] ss:$56 sps:$4 sm:$0xff]   ;;  %v9864_v32 = vld [vmem:[%s11146_s13 + $0x694] ss:$56 sps:$4 sm:$0xff]  }
  0xfb   : > { %4463 = vmatmul.mubr.bf16.gmra.mrb[12].mxu0 %v9758_v33  ;;  %5814 = vmatmul.mubr.bf16.gmra.mrb[12].mxu1 %v9758_v33  ;;  %v9866_v33 = vld [vmem:[%s11146_s13 + $0x690] ss:$56 sps:$4 sm:$0xff]  }
  0xfc   : > { %4472 = vmatprep.mubr.bf16.mxu0 %v9765_v34  ;;  %5823 = vmatprep.mubr.bf16.mxu1 %v9765_v34  ;;  %v9875_v34 = vld [vmem:[%s11146_s13 + $0xc] ss:$56 sps:$4 sm:$0xff]  }
  0xfd   : > { %4606 = vmatpush1.bf16.msra.mxu0 %v9786_v35  ;;  %5957 = vmatpush1.bf16.msra.mxu1 %v9789_v36  ;;  %v9873_v35 = vld [vmem:[%s11146_s13 + $0x8] ss:$56 sps:$4 sm:$0xff]  }
  0xfe   : > { %4607 = vmatprep.subr.bf16.mxu0 %v9797_v37  ;;  %5958 = vmatprep.subr.bf16.mxu1 %v9800_v38  ;;  %v9876_v36 = vld [vmem:[#allocation5 + $0x400] ss:$16 sps:$4 sm:$0xff]   ;;  %v9879_v37 = vld [vmem:[#allocation5 + $0x408] ss:$16 sps:$4 sm:$0xff]   ;;  %v9882_v38 = vld [vmem:[%s11146_s13 + $0x7c] ss:$56 sps:$4 sm:$0xff]  }
 0x101   : > { %4608 = vmatpush1.bf16.msra.mxu0 %v9795_v39  ;;  %5959 = vmatpush1.bf16.msra.mxu1 %v9798_v40  ;;  %v9887_v39 = vld [vmem:[#allocation5 + $0x424] ss:$16 sps:$4 sm:$0xff]   ;;  %v9890_v40 = vld [vmem:[#allocation5 + $0x42c] ss:$16 sps:$4 sm:$0xff]  }
 0x102   : > { %4609 = vmatprep.subr.bf16.mxu0 %v9806_v41  ;;  %5960 = vmatprep.subr.bf16.mxu1 %v9809_v42  ;;  %v9885_v41 = vld [vmem:[#allocation5 + $0x420] ss:$16 sps:$4 sm:$0xff]   ;;  %v9888_v42 = vld [vmem:[#allocation5 + $0x428] ss:$16 sps:$4 sm:$0xff]  }
 0x103   : > { %4473 = vmatmul.mubr.bf16.gmra.mrb[16].mxu0 %v9767_v43  ;;  %5824 = vmatmul.mubr.bf16.gmra.mrb[16].mxu1 %v9767_v43  ;;  %v9896_v43 = vld [vmem:[#allocation5 + $0x444] ss:$16 sps:$4 sm:$0xff]  }
 0x104   : > { %4482 = vmatprep.mubr.bf16.mxu0 %v9774_v44  ;;  %5833 = vmatprep.mubr.bf16.mxu1 %v9774_v44  ;;  %v9884_v44 = vld [vmem:[%s11146_s13 + $0x78] ss:$56 sps:$4 sm:$0xff]  }
 0x105   : > { %4610 = vmatpush1.bf16.msra.mxu0 %v9804_v45  ;;  %5961 = vmatpush1.bf16.msra.mxu1 %v9807_v46  ;;  %v9899_v45 = vld [vmem:[#allocation5 + $0x44c] ss:$16 sps:$4 sm:$0xff]  }
 0x106   : > { %4611 = vmatprep.subr.bf16.mxu0 %v9815_v47  ;;  %5962 = vmatprep.subr.bf16.mxu1 %v9818_v48  ;;  %v9891_v46 = vld [vmem:[%s11146_s13 + $0xec] ss:$56 sps:$4 sm:$0xff]   ;;  %v9894_v47 = vld [vmem:[#allocation5 + $0x440] ss:$16 sps:$4 sm:$0xff]   ;;  %v9897_v48 = vld [vmem:[#allocation5 + $0x448] ss:$16 sps:$4 sm:$0xff]  }
 0x109   : > { %4612 = vmatpush1.bf16.msra.mxu0 %v9813_v49  ;;  %5963 = vmatpush1.bf16.msra.mxu1 %v9816_v50  ;;  %v9905_v49 = vld [vmem:[#allocation5 + $0x464] ss:$16 sps:$4 sm:$0xff]   ;;  %v9908_v50 = vld [vmem:[#allocation5 + $0x46c] ss:$16 sps:$4 sm:$0xff]  }
 0x10a   : > { %4613 = vmatprep.subr.bf16.mxu0 %v9824_v51  ;;  %5964 = vmatprep.subr.bf16.mxu1 %v9827_v52  ;;  %v9903_v51 = vld [vmem:[#allocation5 + $0x460] ss:$16 sps:$4 sm:$0xff]   ;;  %v9906_v52 = vld [vmem:[#allocation5 + $0x468] ss:$16 sps:$4 sm:$0xff]  }
 0x10b   : > { %4483 = vmatmul.mubr.bf16.gmra.mrb[20].mxu0 %v9776_v53  ;;  %5834 = vmatmul.mubr.bf16.gmra.mrb[20].mxu1 %v9776_v53  ;;  %v9914_v53 = vld [vmem:[#allocation5 + $0x484] ss:$16 sps:$4 sm:$0xff]  }
 0x10c   : > { %4492 = vmatprep.mubr.bf16.mxu0 %v9783_v54  ;;  %5843 = vmatprep.mubr.bf16.mxu1 %v9783_v54  ;;  %v9917_v54 = vld [vmem:[#allocation5 + $0x48c] ss:$16 sps:$4 sm:$0xff]  }
 0x10d   : > { %4614 = vmatpush1.bf16.msra.mxu0 %v9822_v55  ;;  %5965 = vmatpush1.bf16.msra.mxu1 %v9825_v56  ;;  %v9893_v55 = vld [vmem:[%s11146_s13 + $0xe8] ss:$56 sps:$4 sm:$0xff]   ;;  %v9900_v56 = vld [vmem:[%s11146_s13 + $0x15c] ss:$56 sps:$4 sm:$0xff]  }
 0x10e   : > { %4615 = vmatprep.subr.bf16.mxu0 %v9833_v57  ;;  %5966 = vmatprep.subr.bf16.mxu1 %v9836_v58  ;;  %v9912_v57 = vld [vmem:[#allocation5 + $0x480] ss:$16 sps:$4 sm:$0xff]   ;;  %v9915_v58 = vld [vmem:[#allocation5 + $0x488] ss:$16 sps:$4 sm:$0xff]  }
 0x111   : > { %4616 = vmatpush1.bf16.msra.mxu0 %v9831_v59  ;;  %5967 = vmatpush1.bf16.msra.mxu1 %v9834_v60  ;;  %v9923_v59 = vld [vmem:[#allocation5 + $0x4a4] ss:$16 sps:$4 sm:$0xff]   ;;  %v9926_v60 = vld [vmem:[#allocation5 + $0x4ac] ss:$16 sps:$4 sm:$0xff]  }
 0x112   : > { %4617 = vmatprep.subr.bf16.mxu0 %v9842_v61  ;;  %5968 = vmatprep.subr.bf16.mxu1 %v9845_v62  ;;  %v9921_v61 = vld [vmem:[#allocation5 + $0x4a0] ss:$16 sps:$4 sm:$0xff]   ;;  %v9924_v62 = vld [vmem:[#allocation5 + $0x4a8] ss:$16 sps:$4 sm:$0xff]  }
 0x113   : > { %4493 = vmatmul.mubr.bf16.gmra.mrb[24].mxu0 %v9785_v63  ;;  %5844 = vmatmul.mubr.bf16.gmra.mrb[24].mxu1 %v9785_v63  ;;  %v9932_v63 = vld [vmem:[#allocation5 + $0x4c4] ss:$16 sps:$4 sm:$0xff]  }
 0x114   : > { %4502 = vmatprep.mubr.bf16.mxu0 %v9792_v0  ;;  %5853 = vmatprep.mubr.bf16.mxu1 %v9792_v0  ;;  %v9935_v0 = vld [vmem:[#allocation5 + $0x4cc] ss:$16 sps:$4 sm:$0xff]  }
 0x115   : > { %4618 = vmatpush1.bf16.msra.mxu0 %v9840_v1  ;;  %5969 = vmatpush1.bf16.msra.mxu1 %v9843_v2  ;;  %v9902_v1 = vld [vmem:[%s11146_s13 + $0x158] ss:$56 sps:$4 sm:$0xff]   ;;  %v9909_v2 = vld [vmem:[%s11146_s13 + $0x1cc] ss:$56 sps:$4 sm:$0xff]  }
 0x116   : > { %4619 = vmatprep.subr.bf16.mxu0 %v9851_v3  ;;  %5970 = vmatprep.subr.bf16.mxu1 %v9854_v4  ;;  %v9930_v3 = vld [vmem:[#allocation5 + $0x4c0] ss:$16 sps:$4 sm:$0xff]   ;;  %v9933_v4 = vld [vmem:[#allocation5 + $0x4c8] ss:$16 sps:$4 sm:$0xff]  }
 0x119   : > { %4620 = vmatpush1.bf16.msra.mxu0 %v9849_v5  ;;  %5971 = vmatpush1.bf16.msra.mxu1 %v9852_v6  ;;  %v9941_v5 = vld [vmem:[#allocation5 + $0x4e4] ss:$16 sps:$4 sm:$0xff]   ;;  %v9944_v6 = vld [vmem:[#allocation5 + $0x4ec] ss:$16 sps:$4 sm:$0xff]  }
 0x11a   : > { %4621 = vmatprep.subr.bf16.mxu0 %v9860_v7  ;;  %5972 = vmatprep.subr.bf16.mxu1 %v9863_v8  ;;  %v9939_v7 = vld [vmem:[#allocation5 + $0x4e0] ss:$16 sps:$4 sm:$0xff]   ;;  %v9942_v8 = vld [vmem:[#allocation5 + $0x4e8] ss:$16 sps:$4 sm:$0xff]  }
 0x11b   : > { %4503 = vmatmul.mubr.bf16.gmra.mrb[28].mxu0 %v9794_v9  ;;  %5854 = vmatmul.mubr.bf16.gmra.mrb[28].mxu1 %v9794_v9  ;;  %v9950_v9 = vld [vmem:[#allocation5 + $0x504] ss:$16 sps:$4 sm:$0xff]  }
 0x11c   : > { %4512 = vmatprep.mubr.bf16.mxu0 %v9801_v10  ;;  %5863 = vmatprep.mubr.bf16.mxu1 %v9801_v10  ;;  %v9953_v10 = vld [vmem:[#allocation5 + $0x50c] ss:$16 sps:$4 sm:$0xff]  }
 0x11d   : > { %4622 = vmatpush1.bf16.msra.mxu0 %v9858_v11  ;;  %5973 = vmatpush1.bf16.msra.mxu1 %v9861_v12  ;;  %v9911_v11 = vld [vmem:[%s11146_s13 + $0x1c8] ss:$56 sps:$4 sm:$0xff]   ;;  %v9918_v12 = vld [vmem:[%s11146_s13 + $0x23c] ss:$56 sps:$4 sm:$0xff]  }
 0x11e   : > { %4623 = vmatprep.subr.bf16.mxu0 %v9869_v13  ;;  %5974 = vmatprep.subr.bf16.mxu1 %v9872_v14  ;;  %v9948_v13 = vld [vmem:[#allocation5 + $0x500] ss:$16 sps:$4 sm:$0xff]   ;;  %v9951_v14 = vld [vmem:[#allocation5 + $0x508] ss:$16 sps:$4 sm:$0xff]  }
 0x121   : > { %4624 = vmatpush1.bf16.msra.mxu0 %v9867_v15  ;;  %5975 = vmatpush1.bf16.msra.mxu1 %v9870_v16  ;;  %v9959_v15 = vld [vmem:[#allocation5 + $0x524] ss:$16 sps:$4 sm:$0xff]   ;;  %v9962_v16 = vld [vmem:[#allocation5 + $0x52c] ss:$16 sps:$4 sm:$0xff]  }
 0x122   : > { %4786 = vmatprep.subr.bf16.mxu0 %v9878_v17  ;;  %6137 = vmatprep.subr.bf16.mxu1 %v9881_v18  ;;  %v9957_v17 = vld [vmem:[#allocation5 + $0x520] ss:$16 sps:$4 sm:$0xff]   ;;  %v9960_v18 = vld [vmem:[#allocation5 + $0x528] ss:$16 sps:$4 sm:$0xff]  }
 0x123   : > { %4513 = vmatmul.mubr.bf16.gmra.mrb[32].mxu0 %v9803_v19  ;;  %5864 = vmatmul.mubr.bf16.gmra.mrb[32].mxu1 %v9803_v19  ;;  %v9968_v19 = vld [vmem:[#allocation5 + $0x544] ss:$16 sps:$4 sm:$0xff]  }
 0x124   : > { %4522 = vmatprep.mubr.bf16.mxu0 %v9810_v20  ;;  %5873 = vmatprep.mubr.bf16.mxu1 %v9810_v20  ;;  %v9971_v20 = vld [vmem:[#allocation5 + $0x54c] ss:$16 sps:$4 sm:$0xff]  }
 0x12b   : > { %4523 = vmatmul.mubr.bf16.gmra.mrb[36].mxu0 %v9812_v21  ;;  %5874 = vmatmul.mubr.bf16.gmra.mrb[36].mxu1 %v9812_v21  ;;  %v9920_v21 = vld [vmem:[%s11146_s13 + $0x238] ss:$56 sps:$4 sm:$0xff]  }
 0x12c   : > { %4532 = vmatprep.mubr.bf16.mxu0 %v9819_v22  ;;  %5883 = vmatprep.mubr.bf16.mxu1 %v9819_v22  ;;  %v9927_v22 = vld [vmem:[%s11146_s13 + $0x2ac] ss:$56 sps:$4 sm:$0xff]  }
 0x133   : > { %4533 = vmatmul.mubr.bf16.gmra.mrb[40].mxu0 %v9821_v23  ;;  %5884 = vmatmul.mubr.bf16.gmra.mrb[40].mxu1 %v9821_v23  ;;  %v9966_v23 = vld [vmem:[#allocation5 + $0x540] ss:$16 sps:$4 sm:$0xff]  }
 0x134   : > { %4542 = vmatprep.mubr.bf16.mxu0 %v9828_v24  ;;  %5893 = vmatprep.mubr.bf16.mxu1 %v9828_v24  ;;  %v9969_v24 = vld [vmem:[#allocation5 + $0x548] ss:$16 sps:$4 sm:$0xff]  }
 0x13b   : > { %4543 = vmatmul.mubr.bf16.gmra.mrb[44].mxu0 %v9830_v25  ;;  %5894 = vmatmul.mubr.bf16.gmra.mrb[44].mxu1 %v9830_v25  ;;  %v9977_v25 = vld [vmem:[#allocation5 + $0x564] ss:$16 sps:$4 sm:$0xff]  }
 0x13c   : > { %4552 = vmatprep.mubr.bf16.mxu0 %v9837_v26  ;;  %5903 = vmatprep.mubr.bf16.mxu1 %v9837_v26  ;;  %v9980_v26 = vld [vmem:[#allocation5 + $0x56c] ss:$16 sps:$4 sm:$0xff]  }
 0x143   : > { %4553 = vmatmul.mubr.bf16.gmra.mrb[48].mxu0 %v9839_v27  ;;  %5904 = vmatmul.mubr.bf16.gmra.mrb[48].mxu1 %v9839_v27  ;;  %v9975_v27 = vld [vmem:[#allocation5 + $0x560] ss:$16 sps:$4 sm:$0xff]  }
 0x144   : > { %4562 = vmatprep.mubr.bf16.mxu0 %v9846_v28  ;;  %5913 = vmatprep.mubr.bf16.mxu1 %v9846_v28  ;;  %v9978_v28 = vld [vmem:[#allocation5 + $0x568] ss:$16 sps:$4 sm:$0xff]  }
 0x14b   : > { %4563 = vmatmul.mubr.bf16.gmra.mrb[52].mxu0 %v9848_v29  ;;  %5914 = vmatmul.mubr.bf16.gmra.mrb[52].mxu1 %v9848_v29  ;;  %v9986_v29 = vld [vmem:[#allocation5 + $0x584] ss:$16 sps:$4 sm:$0xff]  }
 0x14c   : > { %4572 = vmatprep.mubr.bf16.mxu0 %v9855_v30  ;;  %5923 = vmatprep.mubr.bf16.mxu1 %v9855_v30  ;;  %v9989_v30 = vld [vmem:[#allocation5 + $0x58c] ss:$16 sps:$4 sm:$0xff]  }
 0x153   : > { %4573 = vmatmul.mubr.bf16.gmra.mrb[56].mxu0 %v9857_v31  ;;  %5924 = vmatmul.mubr.bf16.gmra.mrb[56].mxu1 %v9857_v31  ;;  %v9929_v31 = vld [vmem:[%s11146_s13 + $0x2a8] ss:$56 sps:$4 sm:$0xff]  }
 0x154   : > { %4582 = vmatprep.mubr.bf16.mxu0 %v9864_v32  ;;  %5933 = vmatprep.mubr.bf16.mxu1 %v9864_v32  ;;  %v9936_v32 = vld [vmem:[%s11146_s13 + $0x31c] ss:$56 sps:$4 sm:$0xff]  }
 0x15b   : > { %4583 = vmatmul.mubr.bf16.gmra.mrb[60].mxu0 %v9866_v33  ;;  %5934 = vmatmul.mubr.bf16.gmra.mrb[60].mxu1 %v9866_v33  ;;  %v9984_v33 = vld [vmem:[#allocation5 + $0x580] ss:$16 sps:$4 sm:$0xff]  }
 0x15c   : > { %4625 = vmatprep.mubr.bf16.mxu0 %v9875_v34  ;;  %5976 = vmatprep.mubr.bf16.mxu1 %v9875_v34  ;;  %v9987_v34 = vld [vmem:[#allocation5 + $0x588] ss:$16 sps:$4 sm:$0xff]  }
 0x163   : > { %4626 = vmatmul.mubr.bf16.vlgmr.msra.gmra.mrb[0].mxu0 %v9873_v35  ;;  %5977 = vmatmul.mubr.bf16.vlgmr.msra.gmra.mrb[0].mxu1 %v9873_v35  ;;  %v9995_v35 = vld [vmem:[#allocation5 + $0x5a4] ss:$16 sps:$4 sm:$0xff]  }
 0x164   : > { %4787 = vmatpush1.bf16.msra.mxu0 %v9876_v36  ;;  %6138 = vmatpush1.bf16.msra.mxu1 %v9879_v37  ;;  %v9998_v36 = vld [vmem:[#allocation5 + $0x5ac] ss:$16 sps:$4 sm:$0xff]   ;;  %v9993_v37 = vld [vmem:[#allocation5 + $0x5a0] ss:$16 sps:$4 sm:$0xff]  }
 0x165   : > { %4635 = vmatprep.mubr.bf16.mxu0 %v9882_v38  ;;  %5986 = vmatprep.mubr.bf16.mxu1 %v9882_v38  ;;  %v9996_v38 = vld [vmem:[#allocation5 + $0x5a8] ss:$16 sps:$4 sm:$0xff]  }
 0x166   : > { %4788 = vmatprep.subr.bf16.mxu0 %v9887_v39  ;;  %6139 = vmatprep.subr.bf16.mxu1 %v9890_v40  ;;  %v10004_v39 = vld [vmem:[#allocation5 + $0x5c4] ss:$16 sps:$4 sm:$0xff]   ;;  %v10007_v40 = vld [vmem:[#allocation5 + $0x5cc] ss:$16 sps:$4 sm:$0xff]  }
 0x168   : > { %4789 = vmatpush1.bf16.msra.mxu0 %v9885_v41  ;;  %6140 = vmatpush1.bf16.msra.mxu1 %v9888_v42  ;;  %v9938_v41 = vld [vmem:[%s11146_s13 + $0x318] ss:$56 sps:$4 sm:$0xff]   ;;  %v9945_v42 = vld [vmem:[%s11146_s13 + $0x38c] ss:$56 sps:$4 sm:$0xff]  }
 0x169   : > { %4790 = vmatprep.subr.bf16.mxu0 %v9896_v43  ;;  %6141 = vmatprep.subr.bf16.mxu1 %v9899_v45  ;;  %v10002_v43 = vld [vmem:[#allocation5 + $0x5c0] ss:$16 sps:$4 sm:$0xff]   ;;  %v10013_v45 = vld [vmem:[#allocation5 + $0x5e4] ss:$16 sps:$4 sm:$0xff]  }
 0x16b   : > { %4636 = vmatmul.mubr.bf16.gmra.mrb[4].mxu0 %v9884_v44  ;;  %5987 = vmatmul.mubr.bf16.gmra.mrb[4].mxu1 %v9884_v44  ;;  %v10005_v44 = vld [vmem:[#allocation5 + $0x5c8] ss:$16 sps:$4 sm:$0xff]  }
 0x16c   : > { %4645 = vmatprep.mubr.bf16.mxu0 %v9891_v46  ;;  %5996 = vmatprep.mubr.bf16.mxu1 %v9891_v46  ;;  %v10016_v46 = vld [vmem:[#allocation5 + $0x5ec] ss:$16 sps:$4 sm:$0xff]  }
 0x16d   : > { %4791 = vmatpush1.bf16.msra.mxu0 %v9894_v47  ;;  %6142 = vmatpush1.bf16.msra.mxu1 %v9897_v48  ;;  %v10011_v47 = vld [vmem:[#allocation5 + $0x5e0] ss:$16 sps:$4 sm:$0xff]   ;;  %v10014_v48 = vld [vmem:[#allocation5 + $0x5e8] ss:$16 sps:$4 sm:$0xff]  }
 0x16e   : > { %4792 = vmatprep.subr.bf16.mxu0 %v9905_v49  ;;  %6143 = vmatprep.subr.bf16.mxu1 %v9908_v50  ;;  %v10022_v49 = vld [vmem:[#allocation5 + $0x604] ss:$16 sps:$4 sm:$0xff]   ;;  %v10025_v50 = vld [vmem:[#allocation5 + $0x60c] ss:$16 sps:$4 sm:$0xff]  }
 0x171   : > { %4793 = vmatpush1.bf16.msra.mxu0 %v9903_v51  ;;  %6144 = vmatpush1.bf16.msra.mxu1 %v9906_v52  ;;  %v9947_v51 = vld [vmem:[%s11146_s13 + $0x388] ss:$56 sps:$4 sm:$0xff]   ;;  %v9954_v52 = vld [vmem:[%s11146_s13 + $0x3fc] ss:$56 sps:$4 sm:$0xff]  }
 0x172   : > { %4794 = vmatprep.subr.bf16.mxu0 %v9914_v53  ;;  %6145 = vmatprep.subr.bf16.mxu1 %v9917_v54  ;;  %v9956_v53 = vld [vmem:[%s11146_s13 + $0x3f8] ss:$56 sps:$4 sm:$0xff]   ;;  %v9963_v54 = vld [vmem:[%s11146_s13 + $0x46c] ss:$56 sps:$4 sm:$0xff]  }
 0x173   : > { %4646 = vmatmul.mubr.bf16.gmra.mrb[8].mxu0 %v9893_v55  ;;  %5997 = vmatmul.mubr.bf16.gmra.mrb[8].mxu1 %v9893_v55  ;;  %v9965_v55 = vld [vmem:[%s11146_s13 + $0x468] ss:$56 sps:$4 sm:$0xff]  }
 0x174   : > { %4655 = vmatprep.mubr.bf16.mxu0 %v9900_v56  ;;  %6006 = vmatprep.mubr.bf16.mxu1 %v9900_v56  ;;  %v9972_v56 = vld [vmem:[%s11146_s13 + $0x4dc] ss:$56 sps:$4 sm:$0xff]  }
 0x175   : > { %4795 = vmatpush1.bf16.msra.mxu0 %v9912_v57  ;;  %6146 = vmatpush1.bf16.msra.mxu1 %v9915_v58  ;;  %v9974_v57 = vld [vmem:[%s11146_s13 + $0x4d8] ss:$56 sps:$4 sm:$0xff]   ;;  %v9981_v58 = vld [vmem:[%s11146_s13 + $0x54c] ss:$56 sps:$4 sm:$0xff]  }
 0x176   : > { %4796 = vmatprep.subr.bf16.mxu0 %v9923_v59  ;;  %6147 = vmatprep.subr.bf16.mxu1 %v9926_v60  ;;  %v9983_v59 = vld [vmem:[%s11146_s13 + $0x548] ss:$56 sps:$4 sm:$0xff]   ;;  %v9990_v60 = vld [vmem:[%s11146_s13 + $0x5bc] ss:$56 sps:$4 sm:$0xff]  }
 0x179   : > { %4797 = vmatpush1.bf16.msra.mxu0 %v9921_v61  ;;  %6148 = vmatpush1.bf16.msra.mxu1 %v9924_v62  ;;  %v9992_v61 = vld [vmem:[%s11146_s13 + $0x5b8] ss:$56 sps:$4 sm:$0xff]   ;;  %v9999_v62 = vld [vmem:[%s11146_s13 + $0x62c] ss:$56 sps:$4 sm:$0xff]  }
 0x17a   : > { %4798 = vmatprep.subr.bf16.mxu0 %v9932_v63  ;;  %6149 = vmatprep.subr.bf16.mxu1 %v9935_v0  ;;  %v10001_v63 = vld [vmem:[%s11146_s13 + $0x628] ss:$56 sps:$4 sm:$0xff]   ;;  %v10008_v0 = vld [vmem:[%s11146_s13 + $0x69c] ss:$56 sps:$4 sm:$0xff]  }
 0x17b   : > { %4656 = vmatmul.mubr.bf16.gmra.mrb[12].mxu0 %v9902_v1  ;;  %6007 = vmatmul.mubr.bf16.gmra.mrb[12].mxu1 %v9902_v1  ;;  %v10010_v1 = vld [vmem:[%s11146_s13 + $0x698] ss:$56 sps:$4 sm:$0xff]  }
 0x17c   : > { %4665 = vmatprep.mubr.bf16.mxu0 %v9909_v2  ;;  %6016 = vmatprep.mubr.bf16.mxu1 %v9909_v2  ;;  %v10019_v2 = vld [vmem:[%s11146_s13 + $0x14] ss:$56 sps:$4 sm:$0xff]  }
 0x17d   : > { %4799 = vmatpush1.bf16.msra.mxu0 %v9930_v3  ;;  %6150 = vmatpush1.bf16.msra.mxu1 %v9933_v4  ;;  %v10017_v3 = vld [vmem:[%s11146_s13 + $0x10] ss:$56 sps:$4 sm:$0xff]  }
 0x17e   : > { %4800 = vmatprep.subr.bf16.mxu0 %v9941_v5  ;;  %6151 = vmatprep.subr.bf16.mxu1 %v9944_v6  ;;  %v10020_v4 = vld [vmem:[#allocation5 + $0x600] ss:$16 sps:$4 sm:$0xff]   ;;  %v10023_v5 = vld [vmem:[#allocation5 + $0x608] ss:$16 sps:$4 sm:$0xff]   ;;  %v10026_v6 = vld [vmem:[%s11146_s13 + $0x84] ss:$56 sps:$4 sm:$0xff]  }
 0x181   : > { %4801 = vmatpush1.bf16.msra.mxu0 %v9939_v7  ;;  %6152 = vmatpush1.bf16.msra.mxu1 %v9942_v8  ;;  %v10031_v7 = vld [vmem:[#allocation5 + $0x624] ss:$16 sps:$4 sm:$0xff]   ;;  %v10034_v8 = vld [vmem:[#allocation5 + $0x62c] ss:$16 sps:$4 sm:$0xff]  }
 0x182   : > { %4802 = vmatprep.subr.bf16.mxu0 %v9950_v9  ;;  %6153 = vmatprep.subr.bf16.mxu1 %v9953_v10  ;;  %v10029_v9 = vld [vmem:[#allocation5 + $0x620] ss:$16 sps:$4 sm:$0xff]   ;;  %v10032_v10 = vld [vmem:[#allocation5 + $0x628] ss:$16 sps:$4 sm:$0xff]  }
 0x183   : > { %4666 = vmatmul.mubr.bf16.gmra.mrb[16].mxu0 %v9911_v11  ;;  %6017 = vmatmul.mubr.bf16.gmra.mrb[16].mxu1 %v9911_v11  ;;  %v10040_v11 = vld [vmem:[#allocation5 + $0x644] ss:$16 sps:$4 sm:$0xff]  }
 0x184   : > { %4675 = vmatprep.mubr.bf16.mxu0 %v9918_v12  ;;  %6026 = vmatprep.mubr.bf16.mxu1 %v9918_v12  ;;  %v10028_v12 = vld [vmem:[%s11146_s13 + $0x80] ss:$56 sps:$4 sm:$0xff]  }
 0x185   : > { %4803 = vmatpush1.bf16.msra.mxu0 %v9948_v13  ;;  %6154 = vmatpush1.bf16.msra.mxu1 %v9951_v14  ;;  %v10043_v13 = vld [vmem:[#allocation5 + $0x64c] ss:$16 sps:$4 sm:$0xff]  }
 0x186   : > { %4804 = vmatprep.subr.bf16.mxu0 %v9959_v15  ;;  %6155 = vmatprep.subr.bf16.mxu1 %v9962_v16  ;;  %v10035_v14 = vld [vmem:[%s11146_s13 + $0xf4] ss:$56 sps:$4 sm:$0xff]   ;;  %v10038_v15 = vld [vmem:[#allocation5 + $0x640] ss:$16 sps:$4 sm:$0xff]   ;;  %v10041_v16 = vld [vmem:[#allocation5 + $0x648] ss:$16 sps:$4 sm:$0xff]  }
 0x189   : > { %4805 = vmatpush1.bf16.msra.mxu0 %v9957_v17  ;;  %6156 = vmatpush1.bf16.msra.mxu1 %v9960_v18  ;;  %v10049_v17 = vld [vmem:[#allocation5 + $0x664] ss:$16 sps:$4 sm:$0xff]   ;;  %v10052_v18 = vld [vmem:[#allocation5 + $0x66c] ss:$16 sps:$4 sm:$0xff]  }
 0x18a   : > { %4806 = vmatprep.subr.bf16.mxu0 %v9968_v19  ;;  %6157 = vmatprep.subr.bf16.mxu1 %v9971_v20  ;;  %v10047_v19 = vld [vmem:[#allocation5 + $0x660] ss:$16 sps:$4 sm:$0xff]   ;;  %v10050_v20 = vld [vmem:[#allocation5 + $0x668] ss:$16 sps:$4 sm:$0xff]  }
 0x18b   : > { %4676 = vmatmul.mubr.bf16.gmra.mrb[20].mxu0 %v9920_v21  ;;  %6027 = vmatmul.mubr.bf16.gmra.mrb[20].mxu1 %v9920_v21  ;;  %v10058_v21 = vld [vmem:[#allocation5 + $0x684] ss:$16 sps:$4 sm:$0xff]  }
 0x18c   : > { %4685 = vmatprep.mubr.bf16.mxu0 %v9927_v22  ;;  %6036 = vmatprep.mubr.bf16.mxu1 %v9927_v22  ;;  %v10061_v22 = vld [vmem:[#allocation5 + $0x68c] ss:$16 sps:$4 sm:$0xff]  }
 0x18d   : > { %4807 = vmatpush1.bf16.msra.mxu0 %v9966_v23  ;;  %6158 = vmatpush1.bf16.msra.mxu1 %v9969_v24  ;;  %v10037_v23 = vld [vmem:[%s11146_s13 + $0xf0] ss:$56 sps:$4 sm:$0xff]   ;;  %v10044_v24 = vld [vmem:[%s11146_s13 + $0x164] ss:$56 sps:$4 sm:$0xff]  }
 0x18e   : > { %4808 = vmatprep.subr.bf16.mxu0 %v9977_v25  ;;  %6159 = vmatprep.subr.bf16.mxu1 %v9980_v26  ;;  %v10056_v25 = vld [vmem:[#allocation5 + $0x680] ss:$16 sps:$4 sm:$0xff]   ;;  %v10059_v26 = vld [vmem:[#allocation5 + $0x688] ss:$16 sps:$4 sm:$0xff]  }
 0x191   : > { %4809 = vmatpush1.bf16.msra.mxu0 %v9975_v27  ;;  %6160 = vmatpush1.bf16.msra.mxu1 %v9978_v28  ;;  %v10067_v27 = vld [vmem:[#allocation5 + $0x6a4] ss:$16 sps:$4 sm:$0xff]   ;;  %v10070_v28 = vld [vmem:[#allocation5 + $0x6ac] ss:$16 sps:$4 sm:$0xff]  }
 0x192   : > { %4810 = vmatprep.subr.bf16.mxu0 %v9986_v29  ;;  %6161 = vmatprep.subr.bf16.mxu1 %v9989_v30  ;;  %v10065_v29 = vld [vmem:[#allocation5 + $0x6a0] ss:$16 sps:$4 sm:$0xff]   ;;  %v10068_v30 = vld [vmem:[#allocation5 + $0x6a8] ss:$16 sps:$4 sm:$0xff]  }
 0x193   : > { %4686 = vmatmul.mubr.bf16.gmra.mrb[24].mxu0 %v9929_v31  ;;  %6037 = vmatmul.mubr.bf16.gmra.mrb[24].mxu1 %v9929_v31  ;;  %v10076_v31 = vld [vmem:[#allocation5 + $0x6c4] ss:$16 sps:$4 sm:$0xff]  }
 0x194   : > { %4695 = vmatprep.mubr.bf16.mxu0 %v9936_v32  ;;  %6046 = vmatprep.mubr.bf16.mxu1 %v9936_v32  ;;  %v10079_v32 = vld [vmem:[#allocation5 + $0x6cc] ss:$16 sps:$4 sm:$0xff]  }
 0x195   : > { %4811 = vmatpush1.bf16.msra.mxu0 %v9984_v33  ;;  %6162 = vmatpush1.bf16.msra.mxu1 %v9987_v34  ;;  %v10046_v33 = vld [vmem:[%s11146_s13 + $0x160] ss:$56 sps:$4 sm:$0xff]   ;;  %v10053_v34 = vld [vmem:[%s11146_s13 + $0x1d4] ss:$56 sps:$4 sm:$0xff]  }
 0x196   : > { %4812 = vmatprep.subr.bf16.mxu0 %v9995_v35  ;;  %6163 = vmatprep.subr.bf16.mxu1 %v9998_v36  ;;  %v10074_v35 = vld [vmem:[#allocation5 + $0x6c0] ss:$16 sps:$4 sm:$0xff]   ;;  %v10077_v36 = vld [vmem:[#allocation5 + $0x6c8] ss:$16 sps:$4 sm:$0xff]  }
 0x199   : > { %4813 = vmatpush1.bf16.msra.mxu0 %v9993_v37  ;;  %6164 = vmatpush1.bf16.msra.mxu1 %v9996_v38  ;;  %v10085_v37 = vld [vmem:[#allocation5 + $0x6e4] ss:$16 sps:$4 sm:$0xff]   ;;  %v10088_v38 = vld [vmem:[#allocation5 + $0x6ec] ss:$16 sps:$4 sm:$0xff]  }
 0x19a   : > { %4814 = vmatprep.subr.bf16.mxu0 %v10004_v39  ;;  %6165 = vmatprep.subr.bf16.mxu1 %v10007_v40  ;;  %v10083_v39 = vld [vmem:[#allocation5 + $0x6e0] ss:$16 sps:$4 sm:$0xff]   ;;  %v10086_v40 = vld [vmem:[#allocation5 + $0x6e8] ss:$16 sps:$4 sm:$0xff]  }
 0x19b   : > { %4696 = vmatmul.mubr.bf16.gmra.mrb[28].mxu0 %v9938_v41  ;;  %6047 = vmatmul.mubr.bf16.gmra.mrb[28].mxu1 %v9938_v41  ;;  %v10094_v41 = vld [vmem:[#allocation5 + $0x704] ss:$16 sps:$4 sm:$0xff]  }
 0x19c   : > { %4705 = vmatprep.mubr.bf16.mxu0 %v9945_v42  ;;  %6056 = vmatprep.mubr.bf16.mxu1 %v9945_v42  ;;  %v10097_v42 = vld [vmem:[#allocation5 + $0x70c] ss:$16 sps:$4 sm:$0xff]  }
 0x19d   : > { %4815 = vmatpush1.bf16.msra.mxu0 %v10002_v43  ;;  %6166 = vmatpush1.bf16.msra.mxu1 %v10005_v44  ;;  %v10055_v43 = vld [vmem:[%s11146_s13 + $0x1d0] ss:$56 sps:$4 sm:$0xff]   ;;  %v10062_v44 = vld [vmem:[%s11146_s13 + $0x244] ss:$56 sps:$4 sm:$0xff]  }
 0x19e   : > { %4816 = vmatprep.subr.bf16.mxu0 %v10013_v45  ;;  %6167 = vmatprep.subr.bf16.mxu1 %v10016_v46  ;;  %v10092_v45 = vld [vmem:[#allocation5 + $0x700] ss:$16 sps:$4 sm:$0xff]   ;;  %v10095_v46 = vld [vmem:[#allocation5 + $0x708] ss:$16 sps:$4 sm:$0xff]  }
 0x1a1   : > { %4817 = vmatpush1.bf16.msra.mxu0 %v10011_v47  ;;  %6168 = vmatpush1.bf16.msra.mxu1 %v10014_v48  ;;  %v10103_v47 = vld [vmem:[#allocation5 + $0x724] ss:$16 sps:$4 sm:$0xff]   ;;  %v10106_v48 = vld [vmem:[#allocation5 + $0x72c] ss:$16 sps:$4 sm:$0xff]  }
 0x1a2   : > { %4979 = vmatprep.subr.bf16.mxu0 %v10022_v49  ;;  %6330 = vmatprep.subr.bf16.mxu1 %v10025_v50  ;;  %v10101_v49 = vld [vmem:[#allocation5 + $0x720] ss:$16 sps:$4 sm:$0xff]   ;;  %v10104_v50 = vld [vmem:[#allocation5 + $0x728] ss:$16 sps:$4 sm:$0xff]  }
 0x1a3   : > { %4706 = vmatmul.mubr.bf16.gmra.mrb[32].mxu0 %v9947_v51  ;;  %6057 = vmatmul.mubr.bf16.gmra.mrb[32].mxu1 %v9947_v51  ;;  %v10112_v51 = vld [vmem:[#allocation5 + $0x744] ss:$16 sps:$4 sm:$0xff]  }
 0x1a4   : > { %4715 = vmatprep.mubr.bf16.mxu0 %v9954_v52  ;;  %6066 = vmatprep.mubr.bf16.mxu1 %v9954_v52  ;;  %v10115_v52 = vld [vmem:[#allocation5 + $0x74c] ss:$16 sps:$4 sm:$0xff]  }
 0x1ab   : > { %4716 = vmatmul.mubr.bf16.gmra.mrb[36].mxu0 %v9956_v53  ;;  %6067 = vmatmul.mubr.bf16.gmra.mrb[36].mxu1 %v9956_v53  ;;  %v10064_v53 = vld [vmem:[%s11146_s13 + $0x240] ss:$56 sps:$4 sm:$0xff]  }
 0x1ac   : > { %4725 = vmatprep.mubr.bf16.mxu0 %v9963_v54  ;;  %6076 = vmatprep.mubr.bf16.mxu1 %v9963_v54  ;;  %v10071_v54 = vld [vmem:[%s11146_s13 + $0x2b4] ss:$56 sps:$4 sm:$0xff]  }
 0x1b3   : > { %4726 = vmatmul.mubr.bf16.gmra.mrb[40].mxu0 %v9965_v55  ;;  %6077 = vmatmul.mubr.bf16.gmra.mrb[40].mxu1 %v9965_v55  ;;  %v10110_v55 = vld [vmem:[#allocation5 + $0x740] ss:$16 sps:$4 sm:$0xff]  }
 0x1b4   : > { %4735 = vmatprep.mubr.bf16.mxu0 %v9972_v56  ;;  %6086 = vmatprep.mubr.bf16.mxu1 %v9972_v56  ;;  %v10113_v56 = vld [vmem:[#allocation5 + $0x748] ss:$16 sps:$4 sm:$0xff]  }
 0x1bb   : > { %4736 = vmatmul.mubr.bf16.gmra.mrb[44].mxu0 %v9974_v57  ;;  %6087 = vmatmul.mubr.bf16.gmra.mrb[44].mxu1 %v9974_v57  ;;  %v10121_v57 = vld [vmem:[#allocation5 + $0x764] ss:$16 sps:$4 sm:$0xff]  }
 0x1bc   : > { %4745 = vmatprep.mubr.bf16.mxu0 %v9981_v58  ;;  %6096 = vmatprep.mubr.bf16.mxu1 %v9981_v58  ;;  %v10124_v58 = vld [vmem:[#allocation5 + $0x76c] ss:$16 sps:$4 sm:$0xff]  }
 0x1c3   : > { %4746 = vmatmul.mubr.bf16.gmra.mrb[48].mxu0 %v9983_v59  ;;  %6097 = vmatmul.mubr.bf16.gmra.mrb[48].mxu1 %v9983_v59  ;;  %v10119_v59 = vld [vmem:[#allocation5 + $0x760] ss:$16 sps:$4 sm:$0xff]  }
 0x1c4   : > { %4755 = vmatprep.mubr.bf16.mxu0 %v9990_v60  ;;  %6106 = vmatprep.mubr.bf16.mxu1 %v9990_v60  ;;  %v10122_v60 = vld [vmem:[#allocation5 + $0x768] ss:$16 sps:$4 sm:$0xff]  }
 0x1cb   : > { %4756 = vmatmul.mubr.bf16.gmra.mrb[52].mxu0 %v9992_v61  ;;  %6107 = vmatmul.mubr.bf16.gmra.mrb[52].mxu1 %v9992_v61  ;;  %v10130_v61 = vld [vmem:[#allocation5 + $0x784] ss:$16 sps:$4 sm:$0xff]  }
 0x1cc   : > { %4765 = vmatprep.mubr.bf16.mxu0 %v9999_v62  ;;  %6116 = vmatprep.mubr.bf16.mxu1 %v9999_v62  ;;  %v10133_v62 = vld [vmem:[#allocation5 + $0x78c] ss:$16 sps:$4 sm:$0xff]  }
 0x1d3   : > { %4766 = vmatmul.mubr.bf16.gmra.mrb[56].mxu0 %v10001_v63  ;;  %6117 = vmatmul.mubr.bf16.gmra.mrb[56].mxu1 %v10001_v63  ;;  %v10073_v63 = vld [vmem:[%s11146_s13 + $0x2b0] ss:$56 sps:$4 sm:$0xff]  }
 0x1d4   : > { %4775 = vmatprep.mubr.bf16.mxu0 %v10008_v0  ;;  %6126 = vmatprep.mubr.bf16.mxu1 %v10008_v0  ;;  %v10080_v0 = vld [vmem:[%s11146_s13 + $0x324] ss:$56 sps:$4 sm:$0xff]  }
 0x1db   : > { %4776 = vmatmul.mubr.bf16.gmra.mrb[60].mxu0 %v10010_v1  ;;  %6127 = vmatmul.mubr.bf16.gmra.mrb[60].mxu1 %v10010_v1  ;;  %v10128_v1 = vld [vmem:[#allocation5 + $0x780] ss:$16 sps:$4 sm:$0xff]  }
 0x1dc   : > { %4818 = vmatprep.mubr.bf16.mxu0 %v10019_v2  ;;  %6169 = vmatprep.mubr.bf16.mxu1 %v10019_v2  ;;  %v10131_v2 = vld [vmem:[#allocation5 + $0x788] ss:$16 sps:$4 sm:$0xff]  }
 0x1e3   : > { %4819 = vmatmul.mubr.bf16.vlgmr.msra.gmra.mrb[0].mxu0 %v10017_v3  ;;  %6170 = vmatmul.mubr.bf16.vlgmr.msra.gmra.mrb[0].mxu1 %v10017_v3  ;;  %v10139_v3 = vld [vmem:[#allocation5 + $0x7a4] ss:$16 sps:$4 sm:$0xff]  }
 0x1e4   : > { %4980 = vmatpush1.bf16.msra.mxu0 %v10020_v4  ;;  %6331 = vmatpush1.bf16.msra.mxu1 %v10023_v5  ;;  %v10142_v4 = vld [vmem:[#allocation5 + $0x7ac] ss:$16 sps:$4 sm:$0xff]   ;;  %v10137_v5 = vld [vmem:[#allocation5 + $0x7a0] ss:$16 sps:$4 sm:$0xff]  }
 0x1e5   : > { %4828 = vmatprep.mubr.bf16.mxu0 %v10026_v6  ;;  %6179 = vmatprep.mubr.bf16.mxu1 %v10026_v6  ;;  %v10140_v6 = vld [vmem:[#allocation5 + $0x7a8] ss:$16 sps:$4 sm:$0xff]  }
 0x1e6   : > { %4981 = vmatprep.subr.bf16.mxu0 %v10031_v7  ;;  %6332 = vmatprep.subr.bf16.mxu1 %v10034_v8  ;;  %v10148_v7 = vld [vmem:[#allocation5 + $0x7c4] ss:$16 sps:$4 sm:$0xff]   ;;  %v10151_v8 = vld [vmem:[#allocation5 + $0x7cc] ss:$16 sps:$4 sm:$0xff]  }
 0x1e8   : > { %4982 = vmatpush1.bf16.msra.mxu0 %v10029_v9  ;;  %6333 = vmatpush1.bf16.msra.mxu1 %v10032_v10  ;;  %v10082_v9 = vld [vmem:[%s11146_s13 + $0x320] ss:$56 sps:$4 sm:$0xff]   ;;  %v10089_v10 = vld [vmem:[%s11146_s13 + $0x394] ss:$56 sps:$4 sm:$0xff]  }
 0x1e9   : > { %4983 = vmatprep.subr.bf16.mxu0 %v10040_v11  ;;  %6334 = vmatprep.subr.bf16.mxu1 %v10043_v13  ;;  %v10146_v11 = vld [vmem:[#allocation5 + $0x7c0] ss:$16 sps:$4 sm:$0xff]   ;;  %v10157_v13 = vld [vmem:[#allocation5 + $0x7e4] ss:$16 sps:$4 sm:$0xff]  }
 0x1eb   : > { %4829 = vmatmul.mubr.bf16.gmra.mrb[4].mxu0 %v10028_v12  ;;  %6180 = vmatmul.mubr.bf16.gmra.mrb[4].mxu1 %v10028_v12  ;;  %v10149_v12 = vld [vmem:[#allocation5 + $0x7c8] ss:$16 sps:$4 sm:$0xff]  }
 0x1ec   : > { %4838 = vmatprep.mubr.bf16.mxu0 %v10035_v14  ;;  %6189 = vmatprep.mubr.bf16.mxu1 %v10035_v14  ;;  %v10160_v14 = vld [vmem:[#allocation5 + $0x7ec] ss:$16 sps:$4 sm:$0xff]  }
 0x1ed   : > { %4984 = vmatpush1.bf16.msra.mxu0 %v10038_v15  ;;  %6335 = vmatpush1.bf16.msra.mxu1 %v10041_v16  ;;  %v10155_v15 = vld [vmem:[#allocation5 + $0x7e0] ss:$16 sps:$4 sm:$0xff]   ;;  %v10158_v16 = vld [vmem:[#allocation5 + $0x7e8] ss:$16 sps:$4 sm:$0xff]  }
 0x1ee   : > { %4985 = vmatprep.subr.bf16.mxu0 %v10049_v17  ;;  %6336 = vmatprep.subr.bf16.mxu1 %v10052_v18  ;;  %v10166_v17 = vld [vmem:[#allocation5 + $0x804] ss:$16 sps:$4 sm:$0xff]   ;;  %v10169_v18 = vld [vmem:[#allocation5 + $0x80c] ss:$16 sps:$4 sm:$0xff]  }
 0x1f1   : > { %4986 = vmatpush1.bf16.msra.mxu0 %v10047_v19  ;;  %6337 = vmatpush1.bf16.msra.mxu1 %v10050_v20  ;;  %v10091_v19 = vld [vmem:[%s11146_s13 + $0x390] ss:$56 sps:$4 sm:$0xff]   ;;  %v10098_v20 = vld [vmem:[%s11146_s13 + $0x404] ss:$56 sps:$4 sm:$0xff]  }
 0x1f2   : > { %4987 = vmatprep.subr.bf16.mxu0 %v10058_v21  ;;  %6338 = vmatprep.subr.bf16.mxu1 %v10061_v22  ;;  %v10100_v21 = vld [vmem:[%s11146_s13 + $0x400] ss:$56 sps:$4 sm:$0xff]   ;;  %v10107_v22 = vld [vmem:[%s11146_s13 + $0x474] ss:$56 sps:$4 sm:$0xff]  }
 0x1f3   : > { %4839 = vmatmul.mubr.bf16.gmra.mrb[8].mxu0 %v10037_v23  ;;  %6190 = vmatmul.mubr.bf16.gmra.mrb[8].mxu1 %v10037_v23  ;;  %v10109_v23 = vld [vmem:[%s11146_s13 + $0x470] ss:$56 sps:$4 sm:$0xff]  }
 0x1f4   : > { %4848 = vmatprep.mubr.bf16.mxu0 %v10044_v24  ;;  %6199 = vmatprep.mubr.bf16.mxu1 %v10044_v24  ;;  %v10116_v24 = vld [vmem:[%s11146_s13 + $0x4e4] ss:$56 sps:$4 sm:$0xff]  }
 0x1f5   : > { %4988 = vmatpush1.bf16.msra.mxu0 %v10056_v25  ;;  %6339 = vmatpush1.bf16.msra.mxu1 %v10059_v26  ;;  %v10118_v25 = vld [vmem:[%s11146_s13 + $0x4e0] ss:$56 sps:$4 sm:$0xff]   ;;  %v10125_v26 = vld [vmem:[%s11146_s13 + $0x554] ss:$56 sps:$4 sm:$0xff]  }
 0x1f6   : > { %4989 = vmatprep.subr.bf16.mxu0 %v10067_v27  ;;  %6340 = vmatprep.subr.bf16.mxu1 %v10070_v28  ;;  %v10127_v27 = vld [vmem:[%s11146_s13 + $0x550] ss:$56 sps:$4 sm:$0xff]   ;;  %v10134_v28 = vld [vmem:[%s11146_s13 + $0x5c4] ss:$56 sps:$4 sm:$0xff]  }
 0x1f9   : > { %4990 = vmatpush1.bf16.msra.mxu0 %v10065_v29  ;;  %6341 = vmatpush1.bf16.msra.mxu1 %v10068_v30  ;;  %v10136_v29 = vld [vmem:[%s11146_s13 + $0x5c0] ss:$56 sps:$4 sm:$0xff]   ;;  %v10143_v30 = vld [vmem:[%s11146_s13 + $0x634] ss:$56 sps:$4 sm:$0xff]  }
 0x1fa   : > { %4991 = vmatprep.subr.bf16.mxu0 %v10076_v31  ;;  %6342 = vmatprep.subr.bf16.mxu1 %v10079_v32  ;;  %v10145_v31 = vld [vmem:[%s11146_s13 + $0x630] ss:$56 sps:$4 sm:$0xff]   ;;  %v10152_v32 = vld [vmem:[%s11146_s13 + $0x6a4] ss:$56 sps:$4 sm:$0xff]  }
 0x1fb   : > { %4849 = vmatmul.mubr.bf16.gmra.mrb[12].mxu0 %v10046_v33  ;;  %6200 = vmatmul.mubr.bf16.gmra.mrb[12].mxu1 %v10046_v33  ;;  %v10154_v33 = vld [vmem:[%s11146_s13 + $0x6a0] ss:$56 sps:$4 sm:$0xff]  }
 0x1fc   : > { %4858 = vmatprep.mubr.bf16.mxu0 %v10053_v34  ;;  %6209 = vmatprep.mubr.bf16.mxu1 %v10053_v34  ;;  %v10163_v34 = vld [vmem:[%s11146_s13 + $0x1c] ss:$56 sps:$4 sm:$0xff]  }
 0x1fd   : > { %4992 = vmatpush1.bf16.msra.mxu0 %v10074_v35  ;;  %6343 = vmatpush1.bf16.msra.mxu1 %v10077_v36  ;;  %v10161_v35 = vld [vmem:[%s11146_s13 + $0x18] ss:$56 sps:$4 sm:$0xff]  }
 0x1fe   : > { %4993 = vmatprep.subr.bf16.mxu0 %v10085_v37  ;;  %6344 = vmatprep.subr.bf16.mxu1 %v10088_v38  ;;  %v10164_v36 = vld [vmem:[#allocation5 + $0x800] ss:$16 sps:$4 sm:$0xff]   ;;  %v10167_v37 = vld [vmem:[#allocation5 + $0x808] ss:$16 sps:$4 sm:$0xff]   ;;  %v10170_v38 = vld [vmem:[%s11146_s13 + $0x8c] ss:$56 sps:$4 sm:$0xff]  }
 0x201   : > { %4994 = vmatpush1.bf16.msra.mxu0 %v10083_v39  ;;  %6345 = vmatpush1.bf16.msra.mxu1 %v10086_v40  ;;  %v10175_v39 = vld [vmem:[#allocation5 + $0x824] ss:$16 sps:$4 sm:$0xff]   ;;  %v10178_v40 = vld [vmem:[#allocation5 + $0x82c] ss:$16 sps:$4 sm:$0xff]  }
 0x202   : > { %4995 = vmatprep.subr.bf16.mxu0 %v10094_v41  ;;  %6346 = vmatprep.subr.bf16.mxu1 %v10097_v42  ;;  %v10173_v41 = vld [vmem:[#allocation5 + $0x820] ss:$16 sps:$4 sm:$0xff]   ;;  %v10176_v42 = vld [vmem:[#allocation5 + $0x828] ss:$16 sps:$4 sm:$0xff]  }
 0x203   : > { %4859 = vmatmul.mubr.bf16.gmra.mrb[16].mxu0 %v10055_v43  ;;  %6210 = vmatmul.mubr.bf16.gmra.mrb[16].mxu1 %v10055_v43  ;;  %v10184_v43 = vld [vmem:[#allocation5 + $0x844] ss:$16 sps:$4 sm:$0xff]  }
 0x204   : > { %4868 = vmatprep.mubr.bf16.mxu0 %v10062_v44  ;;  %6219 = vmatprep.mubr.bf16.mxu1 %v10062_v44  ;;  %v10187_v44 = vld [vmem:[#allocation5 + $0x84c] ss:$16 sps:$4 sm:$0xff]  }
 0x205   : > { %4996 = vmatpush1.bf16.msra.mxu0 %v10092_v45  ;;  %6347 = vmatpush1.bf16.msra.mxu1 %v10095_v46  ;;  %v10172_v45 = vld [vmem:[%s11146_s13 + $0x88] ss:$56 sps:$4 sm:$0xff]   ;;  %v10179_v46 = vld [vmem:[%s11146_s13 + $0xfc] ss:$56 sps:$4 sm:$0xff]  }
 0x206   : > { %4997 = vmatprep.subr.bf16.mxu0 %v10103_v47  ;;  %6348 = vmatprep.subr.bf16.mxu1 %v10106_v48  ;;  %v10182_v47 = vld [vmem:[#allocation5 + $0x840] ss:$16 sps:$4 sm:$0xff]   ;;  %v10185_v48 = vld [vmem:[#allocation5 + $0x848] ss:$16 sps:$4 sm:$0xff]  }
 0x209   : > { %4998 = vmatpush1.bf16.msra.mxu0 %v10101_v49  ;;  %6349 = vmatpush1.bf16.msra.mxu1 %v10104_v50  ;;  %v10193_v49 = vld [vmem:[#allocation5 + $0x864] ss:$16 sps:$4 sm:$0xff]   ;;  %v10196_v50 = vld [vmem:[#allocation5 + $0x86c] ss:$16 sps:$4 sm:$0xff]  }
 0x20a   : > { %4999 = vmatprep.subr.bf16.mxu0 %v10112_v51  ;;  %6350 = vmatprep.subr.bf16.mxu1 %v10115_v52  ;;  %v10191_v51 = vld [vmem:[#allocation5 + $0x860] ss:$16 sps:$4 sm:$0xff]   ;;  %v10194_v52 = vld [vmem:[#allocation5 + $0x868] ss:$16 sps:$4 sm:$0xff]  }
 0x20b   : > { %4869 = vmatmul.mubr.bf16.gmra.mrb[20].mxu0 %v10064_v53  ;;  %6220 = vmatmul.mubr.bf16.gmra.mrb[20].mxu1 %v10064_v53  ;;  %v10202_v53 = vld [vmem:[#allocation5 + $0x884] ss:$16 sps:$4 sm:$0xff]  }
 0x20c   : > { %4878 = vmatprep.mubr.bf16.mxu0 %v10071_v54  ;;  %6229 = vmatprep.mubr.bf16.mxu1 %v10071_v54  ;;  %v10205_v54 = vld [vmem:[#allocation5 + $0x88c] ss:$16 sps:$4 sm:$0xff]  }
 0x20d   : > { %5000 = vmatpush1.bf16.msra.mxu0 %v10110_v55  ;;  %6351 = vmatpush1.bf16.msra.mxu1 %v10113_v56  ;;  %v10181_v55 = vld [vmem:[%s11146_s13 + $0xf8] ss:$56 sps:$4 sm:$0xff]   ;;  %v10188_v56 = vld [vmem:[%s11146_s13 + $0x16c] ss:$56 sps:$4 sm:$0xff]  }
 0x20e   : > { %5001 = vmatprep.subr.bf16.mxu0 %v10121_v57  ;;  %6352 = vmatprep.subr.bf16.mxu1 %v10124_v58  ;;  %v10200_v57 = vld [vmem:[#allocation5 + $0x880] ss:$16 sps:$4 sm:$0xff]   ;;  %v10203_v58 = vld [vmem:[#allocation5 + $0x888] ss:$16 sps:$4 sm:$0xff]  }
 0x211   : > { %5002 = vmatpush1.bf16.msra.mxu0 %v10119_v59  ;;  %6353 = vmatpush1.bf16.msra.mxu1 %v10122_v60  ;;  %v10211_v59 = vld [vmem:[#allocation5 + $0x8a4] ss:$16 sps:$4 sm:$0xff]   ;;  %v10214_v60 = vld [vmem:[#allocation5 + $0x8ac] ss:$16 sps:$4 sm:$0xff]  }
 0x212   : > { %5003 = vmatprep.subr.bf16.mxu0 %v10130_v61  ;;  %6354 = vmatprep.subr.bf16.mxu1 %v10133_v62  ;;  %v10209_v61 = vld [vmem:[#allocation5 + $0x8a0] ss:$16 sps:$4 sm:$0xff]   ;;  %v10212_v62 = vld [vmem:[#allocation5 + $0x8a8] ss:$16 sps:$4 sm:$0xff]  }
 0x213   : > { %4879 = vmatmul.mubr.bf16.gmra.mrb[24].mxu0 %v10073_v63  ;;  %6230 = vmatmul.mubr.bf16.gmra.mrb[24].mxu1 %v10073_v63  ;;  %v10220_v63 = vld [vmem:[#allocation5 + $0x8c4] ss:$16 sps:$4 sm:$0xff]  }
 0x214   : > { %4888 = vmatprep.mubr.bf16.mxu0 %v10080_v0  ;;  %6239 = vmatprep.mubr.bf16.mxu1 %v10080_v0  ;;  %v10223_v0 = vld [vmem:[#allocation5 + $0x8cc] ss:$16 sps:$4 sm:$0xff]  }
 0x215   : > { %5004 = vmatpush1.bf16.msra.mxu0 %v10128_v1  ;;  %6355 = vmatpush1.bf16.msra.mxu1 %v10131_v2  ;;  %v10190_v1 = vld [vmem:[%s11146_s13 + $0x168] ss:$56 sps:$4 sm:$0xff]   ;;  %v10197_v2 = vld [vmem:[%s11146_s13 + $0x1dc] ss:$56 sps:$4 sm:$0xff]  }
 0x216   : > { %5005 = vmatprep.subr.bf16.mxu0 %v10139_v3  ;;  %6356 = vmatprep.subr.bf16.mxu1 %v10142_v4  ;;  %v10218_v3 = vld [vmem:[#allocation5 + $0x8c0] ss:$16 sps:$4 sm:$0xff]   ;;  %v10221_v4 = vld [vmem:[#allocation5 + $0x8c8] ss:$16 sps:$4 sm:$0xff]  }
 0x219   : > { %5006 = vmatpush1.bf16.msra.mxu0 %v10137_v5  ;;  %6357 = vmatpush1.bf16.msra.mxu1 %v10140_v6  ;;  %v10229_v5 = vld [vmem:[#allocation5 + $0x8e4] ss:$16 sps:$4 sm:$0xff]   ;;  %v10232_v6 = vld [vmem:[#allocation5 + $0x8ec] ss:$16 sps:$4 sm:$0xff]  }
 0x21a   : > { %5007 = vmatprep.subr.bf16.mxu0 %v10148_v7  ;;  %6358 = vmatprep.subr.bf16.mxu1 %v10151_v8  ;;  %v10227_v7 = vld [vmem:[#allocation5 + $0x8e0] ss:$16 sps:$4 sm:$0xff]   ;;  %v10230_v8 = vld [vmem:[#allocation5 + $0x8e8] ss:$16 sps:$4 sm:$0xff]  }
 0x21b   : > { %4889 = vmatmul.mubr.bf16.gmra.mrb[28].mxu0 %v10082_v9  ;;  %6240 = vmatmul.mubr.bf16.gmra.mrb[28].mxu1 %v10082_v9  ;;  %v10238_v9 = vld [vmem:[#allocation5 + $0x904] ss:$16 sps:$4 sm:$0xff]  }
 0x21c   : > { %4898 = vmatprep.mubr.bf16.mxu0 %v10089_v10  ;;  %6249 = vmatprep.mubr.bf16.mxu1 %v10089_v10  ;;  %v10241_v10 = vld [vmem:[#allocation5 + $0x90c] ss:$16 sps:$4 sm:$0xff]  }
 0x21d   : > { %5008 = vmatpush1.bf16.msra.mxu0 %v10146_v11  ;;  %6359 = vmatpush1.bf16.msra.mxu1 %v10149_v12  ;;  %v10199_v11 = vld [vmem:[%s11146_s13 + $0x1d8] ss:$56 sps:$4 sm:$0xff]   ;;  %v10206_v12 = vld [vmem:[%s11146_s13 + $0x24c] ss:$56 sps:$4 sm:$0xff]  }
 0x21e   : > { %5009 = vmatprep.subr.bf16.mxu0 %v10157_v13  ;;  %6360 = vmatprep.subr.bf16.mxu1 %v10160_v14  ;;  %v10236_v13 = vld [vmem:[#allocation5 + $0x900] ss:$16 sps:$4 sm:$0xff]   ;;  %v10239_v14 = vld [vmem:[#allocation5 + $0x908] ss:$16 sps:$4 sm:$0xff]  }
 0x221   : > { %5010 = vmatpush1.bf16.msra.mxu0 %v10155_v15  ;;  %6361 = vmatpush1.bf16.msra.mxu1 %v10158_v16  ;;  %v10247_v15 = vld [vmem:[#allocation5 + $0x924] ss:$16 sps:$4 sm:$0xff]   ;;  %v10250_v16 = vld [vmem:[#allocation5 + $0x92c] ss:$16 sps:$4 sm:$0xff]  }
 0x222   : > { %5172 = vmatprep.subr.bf16.mxu0 %v10166_v17  ;;  %6523 = vmatprep.subr.bf16.mxu1 %v10169_v18  ;;  %v10245_v17 = vld [vmem:[#allocation5 + $0x920] ss:$16 sps:$4 sm:$0xff]   ;;  %v10248_v18 = vld [vmem:[#allocation5 + $0x928] ss:$16 sps:$4 sm:$0xff]  }
 0x223   : > { %4899 = vmatmul.mubr.bf16.gmra.mrb[32].mxu0 %v10091_v19  ;;  %6250 = vmatmul.mubr.bf16.gmra.mrb[32].mxu1 %v10091_v19  ;;  %v10256_v19 = vld [vmem:[#allocation5 + $0x944] ss:$16 sps:$4 sm:$0xff]  }
 0x224   : > { %4908 = vmatprep.mubr.bf16.mxu0 %v10098_v20  ;;  %6259 = vmatprep.mubr.bf16.mxu1 %v10098_v20  ;;  %v10259_v20 = vld [vmem:[#allocation5 + $0x94c] ss:$16 sps:$4 sm:$0xff]  }
 0x22b   : > { %4909 = vmatmul.mubr.bf16.gmra.mrb[36].mxu0 %v10100_v21  ;;  %6260 = vmatmul.mubr.bf16.gmra.mrb[36].mxu1 %v10100_v21  ;;  %v10208_v21 = vld [vmem:[%s11146_s13 + $0x248] ss:$56 sps:$4 sm:$0xff]  }
 0x22c   : > { %4918 = vmatprep.mubr.bf16.mxu0 %v10107_v22  ;;  %6269 = vmatprep.mubr.bf16.mxu1 %v10107_v22  ;;  %v10215_v22 = vld [vmem:[%s11146_s13 + $0x2bc] ss:$56 sps:$4 sm:$0xff]  }
 0x233   : > { %4919 = vmatmul.mubr.bf16.gmra.mrb[40].mxu0 %v10109_v23  ;;  %6270 = vmatmul.mubr.bf16.gmra.mrb[40].mxu1 %v10109_v23  ;;  %v10254_v23 = vld [vmem:[#allocation5 + $0x940] ss:$16 sps:$4 sm:$0xff]  }
 0x234   : > { %4928 = vmatprep.mubr.bf16.mxu0 %v10116_v24  ;;  %6279 = vmatprep.mubr.bf16.mxu1 %v10116_v24  ;;  %v10257_v24 = vld [vmem:[#allocation5 + $0x948] ss:$16 sps:$4 sm:$0xff]  }
 0x23b   : > { %4929 = vmatmul.mubr.bf16.gmra.mrb[44].mxu0 %v10118_v25  ;;  %6280 = vmatmul.mubr.bf16.gmra.mrb[44].mxu1 %v10118_v25  ;;  %v10265_v25 = vld [vmem:[#allocation5 + $0x964] ss:$16 sps:$4 sm:$0xff]  }
 0x23c   : > { %4938 = vmatprep.mubr.bf16.mxu0 %v10125_v26  ;;  %6289 = vmatprep.mubr.bf16.mxu1 %v10125_v26  ;;  %v10268_v26 = vld [vmem:[#allocation5 + $0x96c] ss:$16 sps:$4 sm:$0xff]  }
 0x243   : > { %4939 = vmatmul.mubr.bf16.gmra.mrb[48].mxu0 %v10127_v27  ;;  %6290 = vmatmul.mubr.bf16.gmra.mrb[48].mxu1 %v10127_v27  ;;  %v10263_v27 = vld [vmem:[#allocation5 + $0x960] ss:$16 sps:$4 sm:$0xff]  }
 0x244   : > { %4948 = vmatprep.mubr.bf16.mxu0 %v10134_v28  ;;  %6299 = vmatprep.mubr.bf16.mxu1 %v10134_v28  ;;  %v10266_v28 = vld [vmem:[#allocation5 + $0x968] ss:$16 sps:$4 sm:$0xff]  }
 0x24b   : > { %4949 = vmatmul.mubr.bf16.gmra.mrb[52].mxu0 %v10136_v29  ;;  %6300 = vmatmul.mubr.bf16.gmra.mrb[52].mxu1 %v10136_v29  ;;  %v10274_v29 = vld [vmem:[#allocation5 + $0x984] ss:$16 sps:$4 sm:$0xff]  }
 0x24c   : > { %4958 = vmatprep.mubr.bf16.mxu0 %v10143_v30  ;;  %6309 = vmatprep.mubr.bf16.mxu1 %v10143_v30  ;;  %v10277_v30 = vld [vmem:[#allocation5 + $0x98c] ss:$16 sps:$4 sm:$0xff]  }
 0x253   : > { %4959 = vmatmul.mubr.bf16.gmra.mrb[56].mxu0 %v10145_v31  ;;  %6310 = vmatmul.mubr.bf16.gmra.mrb[56].mxu1 %v10145_v31  ;;  %v10217_v31 = vld [vmem:[%s11146_s13 + $0x2b8] ss:$56 sps:$4 sm:$0xff]  }
 0x254   : > { %4968 = vmatprep.mubr.bf16.mxu0 %v10152_v32  ;;  %6319 = vmatprep.mubr.bf16.mxu1 %v10152_v32  ;;  %v10224_v32 = vld [vmem:[%s11146_s13 + $0x32c] ss:$56 sps:$4 sm:$0xff]  }
 0x25b   : > { %4969 = vmatmul.mubr.bf16.gmra.mrb[60].mxu0 %v10154_v33  ;;  %6320 = vmatmul.mubr.bf16.gmra.mrb[60].mxu1 %v10154_v33  ;;  %v10272_v33 = vld [vmem:[#allocation5 + $0x980] ss:$16 sps:$4 sm:$0xff]  }
 0x25c   : > { %5011 = vmatprep.mubr.bf16.mxu0 %v10163_v34  ;;  %6362 = vmatprep.mubr.bf16.mxu1 %v10163_v34  ;;  %v10275_v34 = vld [vmem:[#allocation5 + $0x988] ss:$16 sps:$4 sm:$0xff]  }
 0x263   : > { %5012 = vmatmul.mubr.bf16.vlgmr.msra.gmra.mrb[0].mxu0 %v10161_v35  ;;  %6363 = vmatmul.mubr.bf16.vlgmr.msra.gmra.mrb[0].mxu1 %v10161_v35  ;;  %v10283_v35 = vld [vmem:[#allocation5 + $0x9a4] ss:$16 sps:$4 sm:$0xff]  }
 0x264   : > { %5173 = vmatpush1.bf16.msra.mxu0 %v10164_v36  ;;  %6524 = vmatpush1.bf16.msra.mxu1 %v10167_v37  ;;  %v10286_v36 = vld [vmem:[#allocation5 + $0x9ac] ss:$16 sps:$4 sm:$0xff]   ;;  %v10281_v37 = vld [vmem:[#allocation5 + $0x9a0] ss:$16 sps:$4 sm:$0xff]  }
 0x265   : > { %5021 = vmatprep.mubr.bf16.mxu0 %v10170_v38  ;;  %6372 = vmatprep.mubr.bf16.mxu1 %v10170_v38  ;;  %v10284_v38 = vld [vmem:[#allocation5 + $0x9a8] ss:$16 sps:$4 sm:$0xff]  }
 0x266   : > { %5174 = vmatprep.subr.bf16.mxu0 %v10175_v39  ;;  %6525 = vmatprep.subr.bf16.mxu1 %v10178_v40  ;;  %v10292_v39 = vld [vmem:[#allocation5 + $0x9c4] ss:$16 sps:$4 sm:$0xff]   ;;  %v10295_v40 = vld [vmem:[#allocation5 + $0x9cc] ss:$16 sps:$4 sm:$0xff]  }
 0x268   : > { %5175 = vmatpush1.bf16.msra.mxu0 %v10173_v41  ;;  %6526 = vmatpush1.bf16.msra.mxu1 %v10176_v42  ;;  %v10226_v41 = vld [vmem:[%s11146_s13 + $0x328] ss:$56 sps:$4 sm:$0xff]   ;;  %v10233_v42 = vld [vmem:[%s11146_s13 + $0x39c] ss:$56 sps:$4 sm:$0xff]  }
 0x269   : > { %5176 = vmatprep.subr.bf16.mxu0 %v10184_v43  ;;  %6527 = vmatprep.subr.bf16.mxu1 %v10187_v44  ;;  %v10290_v43 = vld [vmem:[#allocation5 + $0x9c0] ss:$16 sps:$4 sm:$0xff]   ;;  %v10293_v44 = vld [vmem:[#allocation5 + $0x9c8] ss:$16 sps:$4 sm:$0xff]  }
 0x26b   : > { %5022 = vmatmul.mubr.bf16.gmra.mrb[4].mxu0 %v10172_v45  ;;  %6373 = vmatmul.mubr.bf16.gmra.mrb[4].mxu1 %v10172_v45  ;;  %v10301_v45 = vld [vmem:[#allocation5 + $0x9e4] ss:$16 sps:$4 sm:$0xff]  }
 0x26c   : > { %5031 = vmatprep.mubr.bf16.mxu0 %v10179_v46  ;;  %6382 = vmatprep.mubr.bf16.mxu1 %v10179_v46  ;;  %v10304_v46 = vld [vmem:[#allocation5 + $0x9ec] ss:$16 sps:$4 sm:$0xff]  }
 0x26d   : > { %5177 = vmatpush1.bf16.msra.mxu0 %v10182_v47  ;;  %6528 = vmatpush1.bf16.msra.mxu1 %v10185_v48  ;;  %v10299_v47 = vld [vmem:[#allocation5 + $0x9e0] ss:$16 sps:$4 sm:$0xff]   ;;  %v10302_v48 = vld [vmem:[#allocation5 + $0x9e8] ss:$16 sps:$4 sm:$0xff]  }
 0x26e   : > { %5178 = vmatprep.subr.bf16.mxu0 %v10193_v49  ;;  %6529 = vmatprep.subr.bf16.mxu1 %v10196_v50  ;;  %v10310_v49 = vld [vmem:[#allocation5 + $0xa04] ss:$16 sps:$4 sm:$0xff]   ;;  %v10313_v50 = vld [vmem:[#allocation5 + $0xa0c] ss:$16 sps:$4 sm:$0xff]  }
 0x271   : > { %5179 = vmatpush1.bf16.msra.mxu0 %v10191_v51  ;;  %6530 = vmatpush1.bf16.msra.mxu1 %v10194_v52  ;;  %v10235_v51 = vld [vmem:[%s11146_s13 + $0x398] ss:$56 sps:$4 sm:$0xff]   ;;  %v10242_v52 = vld [vmem:[%s11146_s13 + $0x40c] ss:$56 sps:$4 sm:$0xff]  }
 0x272   : > { %5180 = vmatprep.subr.bf16.mxu0 %v10202_v53  ;;  %6531 = vmatprep.subr.bf16.mxu1 %v10205_v54  ;;  %v10244_v53 = vld [vmem:[%s11146_s13 + $0x408] ss:$56 sps:$4 sm:$0xff]   ;;  %v10251_v54 = vld [vmem:[%s11146_s13 + $0x47c] ss:$56 sps:$4 sm:$0xff]  }
 0x273   : > { %5032 = vmatmul.mubr.bf16.gmra.mrb[8].mxu0 %v10181_v55  ;;  %6383 = vmatmul.mubr.bf16.gmra.mrb[8].mxu1 %v10181_v55  ;;  %v10253_v55 = vld [vmem:[%s11146_s13 + $0x478] ss:$56 sps:$4 sm:$0xff]  }
 0x274   : > { %5041 = vmatprep.mubr.bf16.mxu0 %v10188_v56  ;;  %6392 = vmatprep.mubr.bf16.mxu1 %v10188_v56  ;;  %v10260_v56 = vld [vmem:[%s11146_s13 + $0x4ec] ss:$56 sps:$4 sm:$0xff]  }
 0x275   : > { %5181 = vmatpush1.bf16.msra.mxu0 %v10200_v57  ;;  %6532 = vmatpush1.bf16.msra.mxu1 %v10203_v58  ;;  %v10262_v57 = vld [vmem:[%s11146_s13 + $0x4e8] ss:$56 sps:$4 sm:$0xff]   ;;  %v10269_v58 = vld [vmem:[%s11146_s13 + $0x55c] ss:$56 sps:$4 sm:$0xff]  }
 0x276   : > { %5182 = vmatprep.subr.bf16.mxu0 %v10211_v59  ;;  %6533 = vmatprep.subr.bf16.mxu1 %v10214_v60  ;;  %v10271_v59 = vld [vmem:[%s11146_s13 + $0x558] ss:$56 sps:$4 sm:$0xff]   ;;  %v10278_v60 = vld [vmem:[%s11146_s13 + $0x5cc] ss:$56 sps:$4 sm:$0xff]  }
 0x279   : > { %5183 = vmatpush1.bf16.msra.mxu0 %v10209_v61  ;;  %6534 = vmatpush1.bf16.msra.mxu1 %v10212_v62  ;;  %v10280_v61 = vld [vmem:[%s11146_s13 + $0x5c8] ss:$56 sps:$4 sm:$0xff]   ;;  %v10287_v62 = vld [vmem:[%s11146_s13 + $0x63c] ss:$56 sps:$4 sm:$0xff]  }
 0x27a   : > { %5184 = vmatprep.subr.bf16.mxu0 %v10220_v63  ;;  %6535 = vmatprep.subr.bf16.mxu1 %v10223_v0  ;;  %v10289_v63 = vld [vmem:[%s11146_s13 + $0x638] ss:$56 sps:$4 sm:$0xff]   ;;  %v10296_v0 = vld [vmem:[%s11146_s13 + $0x6ac] ss:$56 sps:$4 sm:$0xff]  }
 0x27b   : > { %5042 = vmatmul.mubr.bf16.gmra.mrb[12].mxu0 %v10190_v1  ;;  %6393 = vmatmul.mubr.bf16.gmra.mrb[12].mxu1 %v10190_v1  ;;  %v10298_v1 = vld [vmem:[%s11146_s13 + $0x6a8] ss:$56 sps:$4 sm:$0xff]  }
 0x27c   : > { %5051 = vmatprep.mubr.bf16.mxu0 %v10197_v2  ;;  %6402 = vmatprep.mubr.bf16.mxu1 %v10197_v2  ;;  %v10307_v2 = vld [vmem:[%s11146_s13 + $0x24] ss:$56 sps:$4 sm:$0xff]  }
 0x27d   : > { %5185 = vmatpush1.bf16.msra.mxu0 %v10218_v3  ;;  %6536 = vmatpush1.bf16.msra.mxu1 %v10221_v4  ;;  %v10305_v3 = vld [vmem:[%s11146_s13 + $0x20] ss:$56 sps:$4 sm:$0xff]  }
 0x27e   : > { %5186 = vmatprep.subr.bf16.mxu0 %v10229_v5  ;;  %6537 = vmatprep.subr.bf16.mxu1 %v10232_v6  ;;  %v10308_v4 = vld [vmem:[#allocation5 + $0xa00] ss:$16 sps:$4 sm:$0xff]   ;;  %v10311_v5 = vld [vmem:[#allocation5 + $0xa08] ss:$16 sps:$4 sm:$0xff]   ;;  %v10314_v6 = vld [vmem:[%s11146_s13 + $0x94] ss:$56 sps:$4 sm:$0xff]  }
 0x281   : > { %5187 = vmatpush1.bf16.msra.mxu0 %v10227_v7  ;;  %6538 = vmatpush1.bf16.msra.mxu1 %v10230_v8  ;;  %v10319_v7 = vld [vmem:[#allocation5 + $0xa24] ss:$16 sps:$4 sm:$0xff]   ;;  %v10322_v8 = vld [vmem:[#allocation5 + $0xa2c] ss:$16 sps:$4 sm:$0xff]  }
 0x282   : > { %5188 = vmatprep.subr.bf16.mxu0 %v10238_v9  ;;  %6539 = vmatprep.subr.bf16.mxu1 %v10241_v10  ;;  %v10317_v9 = vld [vmem:[#allocation5 + $0xa20] ss:$16 sps:$4 sm:$0xff]   ;;  %v10320_v10 = vld [vmem:[#allocation5 + $0xa28] ss:$16 sps:$4 sm:$0xff]  }
 0x283   : > { %5052 = vmatmul.mubr.bf16.gmra.mrb[16].mxu0 %v10199_v11  ;;  %6403 = vmatmul.mubr.bf16.gmra.mrb[16].mxu1 %v10199_v11  ;;  %v10328_v11 = vld [vmem:[#allocation5 + $0xa44] ss:$16 sps:$4 sm:$0xff]  }
 0x284   : > { %5061 = vmatprep.mubr.bf16.mxu0 %v10206_v12  ;;  %6412 = vmatprep.mubr.bf16.mxu1 %v10206_v12  ;;  %v10331_v12 = vld [vmem:[#allocation5 + $0xa4c] ss:$16 sps:$4 sm:$0xff]  }
 0x285   : > { %5189 = vmatpush1.bf16.msra.mxu0 %v10236_v13  ;;  %6540 = vmatpush1.bf16.msra.mxu1 %v10239_v14  ;;  %v10316_v13 = vld [vmem:[%s11146_s13 + $0x90] ss:$56 sps:$4 sm:$0xff]   ;;  %v10323_v14 = vld [vmem:[%s11146_s13 + $0x104] ss:$56 sps:$4 sm:$0xff]  }
 0x286   : > { %5190 = vmatprep.subr.bf16.mxu0 %v10247_v15  ;;  %6541 = vmatprep.subr.bf16.mxu1 %v10250_v16  ;;  %v10326_v15 = vld [vmem:[#allocation5 + $0xa40] ss:$16 sps:$4 sm:$0xff]   ;;  %v10329_v16 = vld [vmem:[#allocation5 + $0xa48] ss:$16 sps:$4 sm:$0xff]  }
 0x289   : > { %5191 = vmatpush1.bf16.msra.mxu0 %v10245_v17  ;;  %6542 = vmatpush1.bf16.msra.mxu1 %v10248_v18  ;;  %v10337_v17 = vld [vmem:[#allocation5 + $0xa64] ss:$16 sps:$4 sm:$0xff]   ;;  %v10340_v18 = vld [vmem:[#allocation5 + $0xa6c] ss:$16 sps:$4 sm:$0xff]  }
 0x28a   : > { %5192 = vmatprep.subr.bf16.mxu0 %v10256_v19  ;;  %6543 = vmatprep.subr.bf16.mxu1 %v10259_v20  ;;  %v10335_v19 = vld [vmem:[#allocation5 + $0xa60] ss:$16 sps:$4 sm:$0xff]   ;;  %v10338_v20 = vld [vmem:[#allocation5 + $0xa68] ss:$16 sps:$4 sm:$0xff]  }
 0x28b   : > { %5062 = vmatmul.mubr.bf16.gmra.mrb[20].mxu0 %v10208_v21  ;;  %6413 = vmatmul.mubr.bf16.gmra.mrb[20].mxu1 %v10208_v21  ;;  %v10346_v21 = vld [vmem:[#allocation5 + $0xa84] ss:$16 sps:$4 sm:$0xff]  }
 0x28c   : > { %5071 = vmatprep.mubr.bf16.mxu0 %v10215_v22  ;;  %6422 = vmatprep.mubr.bf16.mxu1 %v10215_v22  ;;  %v10349_v22 = vld [vmem:[#allocation5 + $0xa8c] ss:$16 sps:$4 sm:$0xff]  }
 0x28d   : > { %5193 = vmatpush1.bf16.msra.mxu0 %v10254_v23  ;;  %6544 = vmatpush1.bf16.msra.mxu1 %v10257_v24  ;;  %v10325_v23 = vld [vmem:[%s11146_s13 + $0x100] ss:$56 sps:$4 sm:$0xff]   ;;  %v10332_v24 = vld [vmem:[%s11146_s13 + $0x174] ss:$56 sps:$4 sm:$0xff]  }
 0x28e   : > { %5194 = vmatprep.subr.bf16.mxu0 %v10265_v25  ;;  %6545 = vmatprep.subr.bf16.mxu1 %v10268_v26  ;;  %v10344_v25 = vld [vmem:[#allocation5 + $0xa80] ss:$16 sps:$4 sm:$0xff]   ;;  %v10347_v26 = vld [vmem:[#allocation5 + $0xa88] ss:$16 sps:$4 sm:$0xff]  }
 0x291   : > { %5195 = vmatpush1.bf16.msra.mxu0 %v10263_v27  ;;  %6546 = vmatpush1.bf16.msra.mxu1 %v10266_v28  ;;  %v10355_v27 = vld [vmem:[#allocation5 + $0xaa4] ss:$16 sps:$4 sm:$0xff]   ;;  %v10358_v28 = vld [vmem:[#allocation5 + $0xaac] ss:$16 sps:$4 sm:$0xff]  }
 0x292   : > { %5196 = vmatprep.subr.bf16.mxu0 %v10274_v29  ;;  %6547 = vmatprep.subr.bf16.mxu1 %v10277_v30  ;;  %v10353_v29 = vld [vmem:[#allocation5 + $0xaa0] ss:$16 sps:$4 sm:$0xff]   ;;  %v10356_v30 = vld [vmem:[#allocation5 + $0xaa8] ss:$16 sps:$4 sm:$0xff]  }
 0x293   : > { %5072 = vmatmul.mubr.bf16.gmra.mrb[24].mxu0 %v10217_v31  ;;  %6423 = vmatmul.mubr.bf16.gmra.mrb[24].mxu1 %v10217_v31  ;;  %v10364_v31 = vld [vmem:[#allocation5 + $0xac4] ss:$16 sps:$4 sm:$0xff]  }
 0x294   : > { %5081 = vmatprep.mubr.bf16.mxu0 %v10224_v32  ;;  %6432 = vmatprep.mubr.bf16.mxu1 %v10224_v32  ;;  %v10367_v32 = vld [vmem:[#allocation5 + $0xacc] ss:$16 sps:$4 sm:$0xff]  }
 0x295   : > { %5197 = vmatpush1.bf16.msra.mxu0 %v10272_v33  ;;  %6548 = vmatpush1.bf16.msra.mxu1 %v10275_v34  ;;  %v10334_v33 = vld [vmem:[%s11146_s13 + $0x170] ss:$56 sps:$4 sm:$0xff]   ;;  %v10341_v34 = vld [vmem:[%s11146_s13 + $0x1e4] ss:$56 sps:$4 sm:$0xff]  }
 0x296   : > { %5198 = vmatprep.subr.bf16.mxu0 %v10283_v35  ;;  %6549 = vmatprep.subr.bf16.mxu1 %v10286_v36  ;;  %v10362_v35 = vld [vmem:[#allocation5 + $0xac0] ss:$16 sps:$4 sm:$0xff]   ;;  %v10365_v36 = vld [vmem:[#allocation5 + $0xac8] ss:$16 sps:$4 sm:$0xff]  }
 0x299   : > { %5199 = vmatpush1.bf16.msra.mxu0 %v10281_v37  ;;  %6550 = vmatpush1.bf16.msra.mxu1 %v10284_v38  ;;  %v10373_v37 = vld [vmem:[#allocation5 + $0xae4] ss:$16 sps:$4 sm:$0xff]   ;;  %v10376_v38 = vld [vmem:[#allocation5 + $0xaec] ss:$16 sps:$4 sm:$0xff]  }
 0x29a   : > { %5200 = vmatprep.subr.bf16.mxu0 %v10292_v39  ;;  %6551 = vmatprep.subr.bf16.mxu1 %v10295_v40  ;;  %v10371_v39 = vld [vmem:[#allocation5 + $0xae0] ss:$16 sps:$4 sm:$0xff]   ;;  %v10374_v40 = vld [vmem:[#allocation5 + $0xae8] ss:$16 sps:$4 sm:$0xff]  }
 0x29b   : > { %5082 = vmatmul.mubr.bf16.gmra.mrb[28].mxu0 %v10226_v41  ;;  %6433 = vmatmul.mubr.bf16.gmra.mrb[28].mxu1 %v10226_v41  ;;  %v10382_v41 = vld [vmem:[#allocation5 + $0xb04] ss:$16 sps:$4 sm:$0xff]  }
 0x29c   : > { %5091 = vmatprep.mubr.bf16.mxu0 %v10233_v42  ;;  %6442 = vmatprep.mubr.bf16.mxu1 %v10233_v42  ;;  %v10385_v42 = vld [vmem:[#allocation5 + $0xb0c] ss:$16 sps:$4 sm:$0xff]  }
 0x29d   : > { %5201 = vmatpush1.bf16.msra.mxu0 %v10290_v43  ;;  %6552 = vmatpush1.bf16.msra.mxu1 %v10293_v44  ;;  %v10343_v43 = vld [vmem:[%s11146_s13 + $0x1e0] ss:$56 sps:$4 sm:$0xff]   ;;  %v10350_v44 = vld [vmem:[%s11146_s13 + $0x254] ss:$56 sps:$4 sm:$0xff]  }
 0x29e   : > { %5202 = vmatprep.subr.bf16.mxu0 %v10301_v45  ;;  %6553 = vmatprep.subr.bf16.mxu1 %v10304_v46  ;;  %v10380_v45 = vld [vmem:[#allocation5 + $0xb00] ss:$16 sps:$4 sm:$0xff]   ;;  %v10383_v46 = vld [vmem:[#allocation5 + $0xb08] ss:$16 sps:$4 sm:$0xff]  }
 0x2a1   : > { %5203 = vmatpush1.bf16.msra.mxu0 %v10299_v47  ;;  %6554 = vmatpush1.bf16.msra.mxu1 %v10302_v48  ;;  %v10391_v47 = vld [vmem:[#allocation5 + $0xb24] ss:$16 sps:$4 sm:$0xff]   ;;  %v10394_v48 = vld [vmem:[#allocation5 + $0xb2c] ss:$16 sps:$4 sm:$0xff]  }
 0x2a2   : > { %5365 = vmatprep.subr.bf16.mxu0 %v10310_v49  ;;  %6716 = vmatprep.subr.bf16.mxu1 %v10313_v50  ;;  %v10389_v49 = vld [vmem:[#allocation5 + $0xb20] ss:$16 sps:$4 sm:$0xff]   ;;  %v10392_v50 = vld [vmem:[#allocation5 + $0xb28] ss:$16 sps:$4 sm:$0xff]  }
 0x2a3   : > { %5092 = vmatmul.mubr.bf16.gmra.mrb[32].mxu0 %v10235_v51  ;;  %6443 = vmatmul.mubr.bf16.gmra.mrb[32].mxu1 %v10235_v51  ;;  %v10400_v51 = vld [vmem:[#allocation5 + $0xb44] ss:$16 sps:$4 sm:$0xff]  }
 0x2a4   : > { %5101 = vmatprep.mubr.bf16.mxu0 %v10242_v52  ;;  %6452 = vmatprep.mubr.bf16.mxu1 %v10242_v52  ;;  %v10403_v52 = vld [vmem:[#allocation5 + $0xb4c] ss:$16 sps:$4 sm:$0xff]  }
 0x2ab   : > { %5102 = vmatmul.mubr.bf16.gmra.mrb[36].mxu0 %v10244_v53  ;;  %6453 = vmatmul.mubr.bf16.gmra.mrb[36].mxu1 %v10244_v53  ;;  %v10352_v53 = vld [vmem:[%s11146_s13 + $0x250] ss:$56 sps:$4 sm:$0xff]  }
 0x2ac   : > { %5111 = vmatprep.mubr.bf16.mxu0 %v10251_v54  ;;  %6462 = vmatprep.mubr.bf16.mxu1 %v10251_v54  ;;  %v10359_v54 = vld [vmem:[%s11146_s13 + $0x2c4] ss:$56 sps:$4 sm:$0xff]  }
 0x2b3   : > { %5112 = vmatmul.mubr.bf16.gmra.mrb[40].mxu0 %v10253_v55  ;;  %6463 = vmatmul.mubr.bf16.gmra.mrb[40].mxu1 %v10253_v55  ;;  %v10398_v55 = vld [vmem:[#allocation5 + $0xb40] ss:$16 sps:$4 sm:$0xff]  }
 0x2b4   : > { %5121 = vmatprep.mubr.bf16.mxu0 %v10260_v56  ;;  %6472 = vmatprep.mubr.bf16.mxu1 %v10260_v56  ;;  %v10401_v56 = vld [vmem:[#allocation5 + $0xb48] ss:$16 sps:$4 sm:$0xff]  }
 0x2bb   : > { %5122 = vmatmul.mubr.bf16.gmra.mrb[44].mxu0 %v10262_v57  ;;  %6473 = vmatmul.mubr.bf16.gmra.mrb[44].mxu1 %v10262_v57  ;;  %v10409_v57 = vld [vmem:[#allocation5 + $0xb64] ss:$16 sps:$4 sm:$0xff]  }
 0x2bc   : > { %5131 = vmatprep.mubr.bf16.mxu0 %v10269_v58  ;;  %6482 = vmatprep.mubr.bf16.mxu1 %v10269_v58  ;;  %v10412_v58 = vld [vmem:[#allocation5 + $0xb6c] ss:$16 sps:$4 sm:$0xff]  }
 0x2c3   : > { %5132 = vmatmul.mubr.bf16.gmra.mrb[48].mxu0 %v10271_v59  ;;  %6483 = vmatmul.mubr.bf16.gmra.mrb[48].mxu1 %v10271_v59  ;;  %v10407_v59 = vld [vmem:[#allocation5 + $0xb60] ss:$16 sps:$4 sm:$0xff]  }
 0x2c4   : > { %5141 = vmatprep.mubr.bf16.mxu0 %v10278_v60  ;;  %6492 = vmatprep.mubr.bf16.mxu1 %v10278_v60  ;;  %v10410_v60 = vld [vmem:[#allocation5 + $0xb68] ss:$16 sps:$4 sm:$0xff]  }
 0x2cb   : > { %5142 = vmatmul.mubr.bf16.gmra.mrb[52].mxu0 %v10280_v61  ;;  %6493 = vmatmul.mubr.bf16.gmra.mrb[52].mxu1 %v10280_v61  ;;  %v10418_v61 = vld [vmem:[#allocation5 + $0xb84] ss:$16 sps:$4 sm:$0xff]  }
 0x2cc   : > { %5151 = vmatprep.mubr.bf16.mxu0 %v10287_v62  ;;  %6502 = vmatprep.mubr.bf16.mxu1 %v10287_v62  ;;  %v10421_v62 = vld [vmem:[#allocation5 + $0xb8c] ss:$16 sps:$4 sm:$0xff]  }
 0x2d3   : > { %5152 = vmatmul.mubr.bf16.gmra.mrb[56].mxu0 %v10289_v63  ;;  %6503 = vmatmul.mubr.bf16.gmra.mrb[56].mxu1 %v10289_v63  ;;  %v10361_v63 = vld [vmem:[%s11146_s13 + $0x2c0] ss:$56 sps:$4 sm:$0xff]  }
 0x2d4   : > { %5161 = vmatprep.mubr.bf16.mxu0 %v10296_v0  ;;  %6512 = vmatprep.mubr.bf16.mxu1 %v10296_v0  ;;  %v10368_v0 = vld [vmem:[%s11146_s13 + $0x334] ss:$56 sps:$4 sm:$0xff]  }
 0x2db   : > { %5162 = vmatmul.mubr.bf16.gmra.mrb[60].mxu0 %v10298_v1  ;;  %6513 = vmatmul.mubr.bf16.gmra.mrb[60].mxu1 %v10298_v1  ;;  %v10416_v1 = vld [vmem:[#allocation5 + $0xb80] ss:$16 sps:$4 sm:$0xff]  }
 0x2dc   : > { %5204 = vmatprep.mubr.bf16.mxu0 %v10307_v2  ;;  %6555 = vmatprep.mubr.bf16.mxu1 %v10307_v2  ;;  %v10419_v2 = vld [vmem:[#allocation5 + $0xb88] ss:$16 sps:$4 sm:$0xff]  }
 0x2e3   : > { %5205 = vmatmul.mubr.bf16.vlgmr.msra.gmra.mrb[0].mxu0 %v10305_v3  ;;  %6556 = vmatmul.mubr.bf16.vlgmr.msra.gmra.mrb[0].mxu1 %v10305_v3  ;;  %v10427_v3 = vld [vmem:[#allocation5 + $0xba4] ss:$16 sps:$4 sm:$0xff]  }
 0x2e4   : > { %5366 = vmatpush1.bf16.msra.mxu0 %v10308_v4  ;;  %6717 = vmatpush1.bf16.msra.mxu1 %v10311_v5  ;;  %v10430_v4 = vld [vmem:[#allocation5 + $0xbac] ss:$16 sps:$4 sm:$0xff]   ;;  %v10425_v5 = vld [vmem:[#allocation5 + $0xba0] ss:$16 sps:$4 sm:$0xff]  }
 0x2e5   : > { %5214 = vmatprep.mubr.bf16.mxu0 %v10314_v6  ;;  %6565 = vmatprep.mubr.bf16.mxu1 %v10314_v6  ;;  %v10428_v6 = vld [vmem:[#allocation5 + $0xba8] ss:$16 sps:$4 sm:$0xff]  }
 0x2e6   : > { %5367 = vmatprep.subr.bf16.mxu0 %v10319_v7  ;;  %6718 = vmatprep.subr.bf16.mxu1 %v10322_v8  ;;  %v10436_v7 = vld [vmem:[#allocation5 + $0xbc4] ss:$16 sps:$4 sm:$0xff]   ;;  %v10439_v8 = vld [vmem:[#allocation5 + $0xbcc] ss:$16 sps:$4 sm:$0xff]  }
 0x2e8   : > { %5368 = vmatpush1.bf16.msra.mxu0 %v10317_v9  ;;  %6719 = vmatpush1.bf16.msra.mxu1 %v10320_v10  ;;  %v10370_v9 = vld [vmem:[%s11146_s13 + $0x330] ss:$56 sps:$4 sm:$0xff]   ;;  %v10377_v10 = vld [vmem:[%s11146_s13 + $0x3a4] ss:$56 sps:$4 sm:$0xff]  }
 0x2e9   : > { %5369 = vmatprep.subr.bf16.mxu0 %v10328_v11  ;;  %6720 = vmatprep.subr.bf16.mxu1 %v10331_v12  ;;  %v10434_v11 = vld [vmem:[#allocation5 + $0xbc0] ss:$16 sps:$4 sm:$0xff]   ;;  %v10437_v12 = vld [vmem:[#allocation5 + $0xbc8] ss:$16 sps:$4 sm:$0xff]  }
 0x2eb   : > { %5215 = vmatmul.mubr.bf16.gmra.mrb[4].mxu0 %v10316_v13  ;;  %6566 = vmatmul.mubr.bf16.gmra.mrb[4].mxu1 %v10316_v13  ;;  %v10445_v13 = vld [vmem:[#allocation5 + $0xbe4] ss:$16 sps:$4 sm:$0xff]  }
 0x2ec   : > { %5224 = vmatprep.mubr.bf16.mxu0 %v10323_v14  ;;  %6575 = vmatprep.mubr.bf16.mxu1 %v10323_v14  ;;  %v10448_v14 = vld [vmem:[#allocation5 + $0xbec] ss:$16 sps:$4 sm:$0xff]  }
 0x2ed   : > { %5370 = vmatpush1.bf16.msra.mxu0 %v10326_v15  ;;  %6721 = vmatpush1.bf16.msra.mxu1 %v10329_v16  ;;  %v10443_v15 = vld [vmem:[#allocation5 + $0xbe0] ss:$16 sps:$4 sm:$0xff]   ;;  %v10446_v16 = vld [vmem:[#allocation5 + $0xbe8] ss:$16 sps:$4 sm:$0xff]  }
 0x2ee   : > { %5371 = vmatprep.subr.bf16.mxu0 %v10337_v17  ;;  %6722 = vmatprep.subr.bf16.mxu1 %v10340_v18  ;;  %v10454_v17 = vld [vmem:[#allocation5 + $0xc04] ss:$16 sps:$4 sm:$0xff]   ;;  %v10457_v18 = vld [vmem:[#allocation5 + $0xc0c] ss:$16 sps:$4 sm:$0xff]  }
 0x2f1   : > { %5372 = vmatpush1.bf16.msra.mxu0 %v10335_v19  ;;  %6723 = vmatpush1.bf16.msra.mxu1 %v10338_v20  ;;  %v10379_v19 = vld [vmem:[%s11146_s13 + $0x3a0] ss:$56 sps:$4 sm:$0xff]   ;;  %v10386_v20 = vld [vmem:[%s11146_s13 + $0x414] ss:$56 sps:$4 sm:$0xff]  }
 0x2f2   : > { %5373 = vmatprep.subr.bf16.mxu0 %v10346_v21  ;;  %6724 = vmatprep.subr.bf16.mxu1 %v10349_v22  ;;  %v10388_v21 = vld [vmem:[%s11146_s13 + $0x410] ss:$56 sps:$4 sm:$0xff]   ;;  %v10395_v22 = vld [vmem:[%s11146_s13 + $0x484] ss:$56 sps:$4 sm:$0xff]  }
 0x2f3   : > { %5225 = vmatmul.mubr.bf16.gmra.mrb[8].mxu0 %v10325_v23  ;;  %6576 = vmatmul.mubr.bf16.gmra.mrb[8].mxu1 %v10325_v23  ;;  %v10397_v23 = vld [vmem:[%s11146_s13 + $0x480] ss:$56 sps:$4 sm:$0xff]  }
 0x2f4   : > { %5234 = vmatprep.mubr.bf16.mxu0 %v10332_v24  ;;  %6585 = vmatprep.mubr.bf16.mxu1 %v10332_v24  ;;  %v10404_v24 = vld [vmem:[%s11146_s13 + $0x4f4] ss:$56 sps:$4 sm:$0xff]  }
 0x2f5   : > { %5374 = vmatpush1.bf16.msra.mxu0 %v10344_v25  ;;  %6725 = vmatpush1.bf16.msra.mxu1 %v10347_v26  ;;  %v10406_v25 = vld [vmem:[%s11146_s13 + $0x4f0] ss:$56 sps:$4 sm:$0xff]   ;;  %v10413_v26 = vld [vmem:[%s11146_s13 + $0x564] ss:$56 sps:$4 sm:$0xff]  }
 0x2f6   : > { %5375 = vmatprep.subr.bf16.mxu0 %v10355_v27  ;;  %6726 = vmatprep.subr.bf16.mxu1 %v10358_v28  ;;  %v10415_v27 = vld [vmem:[%s11146_s13 + $0x560] ss:$56 sps:$4 sm:$0xff]   ;;  %v10422_v28 = vld [vmem:[%s11146_s13 + $0x5d4] ss:$56 sps:$4 sm:$0xff]  }
 0x2f9   : > { %5376 = vmatpush1.bf16.msra.mxu0 %v10353_v29  ;;  %6727 = vmatpush1.bf16.msra.mxu1 %v10356_v30  ;;  %v10424_v29 = vld [vmem:[%s11146_s13 + $0x5d0] ss:$56 sps:$4 sm:$0xff]   ;;  %v10431_v30 = vld [vmem:[%s11146_s13 + $0x644] ss:$56 sps:$4 sm:$0xff]  }
 0x2fa   : > { %5377 = vmatprep.subr.bf16.mxu0 %v10364_v31  ;;  %6728 = vmatprep.subr.bf16.mxu1 %v10367_v32  ;;  %v10433_v31 = vld [vmem:[%s11146_s13 + $0x640] ss:$56 sps:$4 sm:$0xff]   ;;  %v10440_v32 = vld [vmem:[%s11146_s13 + $0x6b4] ss:$56 sps:$4 sm:$0xff]  }
 0x2fb   : > { %5235 = vmatmul.mubr.bf16.gmra.mrb[12].mxu0 %v10334_v33  ;;  %6586 = vmatmul.mubr.bf16.gmra.mrb[12].mxu1 %v10334_v33  ;;  %v10442_v33 = vld [vmem:[%s11146_s13 + $0x6b0] ss:$56 sps:$4 sm:$0xff]  }
 0x2fc   : > { %5244 = vmatprep.mubr.bf16.mxu0 %v10341_v34  ;;  %6595 = vmatprep.mubr.bf16.mxu1 %v10341_v34  ;;  %v10451_v34 = vld [vmem:[%s11146_s13 + $0x2c] ss:$56 sps:$4 sm:$0xff]  }
 0x2fd   : > { %5378 = vmatpush1.bf16.msra.mxu0 %v10362_v35  ;;  %6729 = vmatpush1.bf16.msra.mxu1 %v10365_v36  ;;  %v10449_v35 = vld [vmem:[%s11146_s13 + $0x28] ss:$56 sps:$4 sm:$0xff]  }
 0x2fe   : > { %5379 = vmatprep.subr.bf16.mxu0 %v10373_v37  ;;  %6730 = vmatprep.subr.bf16.mxu1 %v10376_v38  ;;  %v10452_v36 = vld [vmem:[#allocation5 + $0xc00] ss:$16 sps:$4 sm:$0xff]   ;;  %v10455_v37 = vld [vmem:[#allocation5 + $0xc08] ss:$16 sps:$4 sm:$0xff]   ;;  %v10458_v38 = vld [vmem:[%s11146_s13 + $0x9c] ss:$56 sps:$4 sm:$0xff]  }
 0x301   : > { %5380 = vmatpush1.bf16.msra.mxu0 %v10371_v39  ;;  %6731 = vmatpush1.bf16.msra.mxu1 %v10374_v40  ;;  %v10463_v39 = vld [vmem:[#allocation5 + $0xc24] ss:$16 sps:$4 sm:$0xff]   ;;  %v10466_v40 = vld [vmem:[#allocation5 + $0xc2c] ss:$16 sps:$4 sm:$0xff]  }
 0x302   : > { %5381 = vmatprep.subr.bf16.mxu0 %v10382_v41  ;;  %6732 = vmatprep.subr.bf16.mxu1 %v10385_v42  ;;  %v10461_v41 = vld [vmem:[#allocation5 + $0xc20] ss:$16 sps:$4 sm:$0xff]   ;;  %v10464_v42 = vld [vmem:[#allocation5 + $0xc28] ss:$16 sps:$4 sm:$0xff]  }
 0x303   : > { %5245 = vmatmul.mubr.bf16.gmra.mrb[16].mxu0 %v10343_v43  ;;  %6596 = vmatmul.mubr.bf16.gmra.mrb[16].mxu1 %v10343_v43  ;;  %v10472_v43 = vld [vmem:[#allocation5 + $0xc44] ss:$16 sps:$4 sm:$0xff]  }
 0x304   : > { %5254 = vmatprep.mubr.bf16.mxu0 %v10350_v44  ;;  %6605 = vmatprep.mubr.bf16.mxu1 %v10350_v44  ;;  %v10475_v44 = vld [vmem:[#allocation5 + $0xc4c] ss:$16 sps:$4 sm:$0xff]  }
 0x305   : > { %5382 = vmatpush1.bf16.msra.mxu0 %v10380_v45  ;;  %6733 = vmatpush1.bf16.msra.mxu1 %v10383_v46  ;;  %v10460_v45 = vld [vmem:[%s11146_s13 + $0x98] ss:$56 sps:$4 sm:$0xff]   ;;  %v10467_v46 = vld [vmem:[%s11146_s13 + $0x10c] ss:$56 sps:$4 sm:$0xff]  }
 0x306   : > { %5383 = vmatprep.subr.bf16.mxu0 %v10391_v47  ;;  %6734 = vmatprep.subr.bf16.mxu1 %v10394_v48  ;;  %v10470_v47 = vld [vmem:[#allocation5 + $0xc40] ss:$16 sps:$4 sm:$0xff]   ;;  %v10473_v48 = vld [vmem:[#allocation5 + $0xc48] ss:$16 sps:$4 sm:$0xff]  }
 0x309   : > { %5384 = vmatpush1.bf16.msra.mxu0 %v10389_v49  ;;  %6735 = vmatpush1.bf16.msra.mxu1 %v10392_v50  ;;  %v10481_v49 = vld [vmem:[#allocation5 + $0xc64] ss:$16 sps:$4 sm:$0xff]   ;;  %v10484_v50 = vld [vmem:[#allocation5 + $0xc6c] ss:$16 sps:$4 sm:$0xff]  }
 0x30a   : > { %5385 = vmatprep.subr.bf16.mxu0 %v10400_v51  ;;  %6736 = vmatprep.subr.bf16.mxu1 %v10403_v52  ;;  %v10479_v51 = vld [vmem:[#allocation5 + $0xc60] ss:$16 sps:$4 sm:$0xff]   ;;  %v10482_v52 = vld [vmem:[#allocation5 + $0xc68] ss:$16 sps:$4 sm:$0xff]  }
 0x30b   : > { %5255 = vmatmul.mubr.bf16.gmra.mrb[20].mxu0 %v10352_v53  ;;  %6606 = vmatmul.mubr.bf16.gmra.mrb[20].mxu1 %v10352_v53  ;;  %v10490_v53 = vld [vmem:[#allocation5 + $0xc84] ss:$16 sps:$4 sm:$0xff]  }
 0x30c   : > { %5264 = vmatprep.mubr.bf16.mxu0 %v10359_v54  ;;  %6615 = vmatprep.mubr.bf16.mxu1 %v10359_v54  ;;  %v10493_v54 = vld [vmem:[#allocation5 + $0xc8c] ss:$16 sps:$4 sm:$0xff]  }
 0x30d   : > { %5386 = vmatpush1.bf16.msra.mxu0 %v10398_v55  ;;  %6737 = vmatpush1.bf16.msra.mxu1 %v10401_v56  ;;  %v10469_v55 = vld [vmem:[%s11146_s13 + $0x108] ss:$56 sps:$4 sm:$0xff]   ;;  %v10476_v56 = vld [vmem:[%s11146_s13 + $0x17c] ss:$56 sps:$4 sm:$0xff]  }
 0x30e   : > { %5387 = vmatprep.subr.bf16.mxu0 %v10409_v57  ;;  %6738 = vmatprep.subr.bf16.mxu1 %v10412_v58  ;;  %v10488_v57 = vld [vmem:[#allocation5 + $0xc80] ss:$16 sps:$4 sm:$0xff]   ;;  %v10491_v58 = vld [vmem:[#allocation5 + $0xc88] ss:$16 sps:$4 sm:$0xff]  }
 0x311   : > { %5388 = vmatpush1.bf16.msra.mxu0 %v10407_v59  ;;  %6739 = vmatpush1.bf16.msra.mxu1 %v10410_v60  ;;  %v10499_v59 = vld [vmem:[#allocation5 + $0xca4] ss:$16 sps:$4 sm:$0xff]   ;;  %v10502_v60 = vld [vmem:[#allocation5 + $0xcac] ss:$16 sps:$4 sm:$0xff]  }
 0x312   : > { %5389 = vmatprep.subr.bf16.mxu0 %v10418_v61  ;;  %6740 = vmatprep.subr.bf16.mxu1 %v10421_v62  ;;  %v10497_v61 = vld [vmem:[#allocation5 + $0xca0] ss:$16 sps:$4 sm:$0xff]   ;;  %v10500_v62 = vld [vmem:[#allocation5 + $0xca8] ss:$16 sps:$4 sm:$0xff]  }
 0x313   : > { %5265 = vmatmul.mubr.bf16.gmra.mrb[24].mxu0 %v10361_v63  ;;  %6616 = vmatmul.mubr.bf16.gmra.mrb[24].mxu1 %v10361_v63  ;;  %v10508_v63 = vld [vmem:[#allocation5 + $0xcc4] ss:$16 sps:$4 sm:$0xff]  }
 0x314   : > { %5274 = vmatprep.mubr.bf16.mxu0 %v10368_v0  ;;  %6625 = vmatprep.mubr.bf16.mxu1 %v10368_v0  ;;  %v10511_v0 = vld [vmem:[#allocation5 + $0xccc] ss:$16 sps:$4 sm:$0xff]  }
 0x315   : > { %5390 = vmatpush1.bf16.msra.mxu0 %v10416_v1  ;;  %6741 = vmatpush1.bf16.msra.mxu1 %v10419_v2  ;;  %v10478_v1 = vld [vmem:[%s11146_s13 + $0x178] ss:$56 sps:$4 sm:$0xff]   ;;  %v10485_v2 = vld [vmem:[%s11146_s13 + $0x1ec] ss:$56 sps:$4 sm:$0xff]  }
 0x316   : > { %5391 = vmatprep.subr.bf16.mxu0 %v10427_v3  ;;  %6742 = vmatprep.subr.bf16.mxu1 %v10430_v4  ;;  %v10506_v3 = vld [vmem:[#allocation5 + $0xcc0] ss:$16 sps:$4 sm:$0xff]   ;;  %v10509_v4 = vld [vmem:[#allocation5 + $0xcc8] ss:$16 sps:$4 sm:$0xff]  }
 0x319   : > { %5392 = vmatpush1.bf16.msra.mxu0 %v10425_v5  ;;  %6743 = vmatpush1.bf16.msra.mxu1 %v10428_v6  ;;  %v10517_v5 = vld [vmem:[#allocation5 + $0xce4] ss:$16 sps:$4 sm:$0xff]   ;;  %v10520_v6 = vld [vmem:[#allocation5 + $0xcec] ss:$16 sps:$4 sm:$0xff]  }
 0x31a   : > { %5393 = vmatprep.subr.bf16.mxu0 %v10436_v7  ;;  %6744 = vmatprep.subr.bf16.mxu1 %v10439_v8  ;;  %v10515_v7 = vld [vmem:[#allocation5 + $0xce0] ss:$16 sps:$4 sm:$0xff]   ;;  %v10518_v8 = vld [vmem:[#allocation5 + $0xce8] ss:$16 sps:$4 sm:$0xff]  }
 0x31b   : > { %5275 = vmatmul.mubr.bf16.gmra.mrb[28].mxu0 %v10370_v9  ;;  %6626 = vmatmul.mubr.bf16.gmra.mrb[28].mxu1 %v10370_v9  ;;  %v10526_v9 = vld [vmem:[#allocation5 + $0xd04] ss:$16 sps:$4 sm:$0xff]  }
 0x31c   : > { %5284 = vmatprep.mubr.bf16.mxu0 %v10377_v10  ;;  %6635 = vmatprep.mubr.bf16.mxu1 %v10377_v10  ;;  %v10529_v10 = vld [vmem:[#allocation5 + $0xd0c] ss:$16 sps:$4 sm:$0xff]  }
 0x31d   : > { %5394 = vmatpush1.bf16.msra.mxu0 %v10434_v11  ;;  %6745 = vmatpush1.bf16.msra.mxu1 %v10437_v12  ;;  %v10487_v11 = vld [vmem:[%s11146_s13 + $0x1e8] ss:$56 sps:$4 sm:$0xff]   ;;  %v10494_v12 = vld [vmem:[%s11146_s13 + $0x25c] ss:$56 sps:$4 sm:$0xff]  }
 0x31e   : > { %5395 = vmatprep.subr.bf16.mxu0 %v10445_v13  ;;  %6746 = vmatprep.subr.bf16.mxu1 %v10448_v14  ;;  %v10524_v13 = vld [vmem:[#allocation5 + $0xd00] ss:$16 sps:$4 sm:$0xff]   ;;  %v10527_v14 = vld [vmem:[#allocation5 + $0xd08] ss:$16 sps:$4 sm:$0xff]  }
 0x321   : > { %5396 = vmatpush1.bf16.msra.mxu0 %v10443_v15  ;;  %6747 = vmatpush1.bf16.msra.mxu1 %v10446_v16  ;;  %v10535_v15 = vld [vmem:[#allocation5 + $0xd24] ss:$16 sps:$4 sm:$0xff]   ;;  %v10538_v16 = vld [vmem:[#allocation5 + $0xd2c] ss:$16 sps:$4 sm:$0xff]  }
 0x322   : > { %5558 = vmatprep.subr.bf16.mxu0 %v10454_v17  ;;  %6909 = vmatprep.subr.bf16.mxu1 %v10457_v18  ;;  %v10533_v17 = vld [vmem:[#allocation5 + $0xd20] ss:$16 sps:$4 sm:$0xff]   ;;  %v10536_v18 = vld [vmem:[#allocation5 + $0xd28] ss:$16 sps:$4 sm:$0xff]  }
 0x323   : > { %5285 = vmatmul.mubr.bf16.gmra.mrb[32].mxu0 %v10379_v19  ;;  %6636 = vmatmul.mubr.bf16.gmra.mrb[32].mxu1 %v10379_v19  ;;  %v10544_v19 = vld [vmem:[#allocation5 + $0xd44] ss:$16 sps:$4 sm:$0xff]  }
 0x324   : > { %5294 = vmatprep.mubr.bf16.mxu0 %v10386_v20  ;;  %6645 = vmatprep.mubr.bf16.mxu1 %v10386_v20  ;;  %v10547_v20 = vld [vmem:[#allocation5 + $0xd4c] ss:$16 sps:$4 sm:$0xff]  }
 0x32b   : > { %5295 = vmatmul.mubr.bf16.gmra.mrb[36].mxu0 %v10388_v21  ;;  %6646 = vmatmul.mubr.bf16.gmra.mrb[36].mxu1 %v10388_v21  ;;  %v10496_v21 = vld [vmem:[%s11146_s13 + $0x258] ss:$56 sps:$4 sm:$0xff]  }
 0x32c   : > { %5304 = vmatprep.mubr.bf16.mxu0 %v10395_v22  ;;  %6655 = vmatprep.mubr.bf16.mxu1 %v10395_v22  ;;  %v10503_v22 = vld [vmem:[%s11146_s13 + $0x2cc] ss:$56 sps:$4 sm:$0xff]  }
 0x333   : > { %5305 = vmatmul.mubr.bf16.gmra.mrb[40].mxu0 %v10397_v23  ;;  %6656 = vmatmul.mubr.bf16.gmra.mrb[40].mxu1 %v10397_v23  ;;  %v10542_v23 = vld [vmem:[#allocation5 + $0xd40] ss:$16 sps:$4 sm:$0xff]  }
 0x334   : > { %5314 = vmatprep.mubr.bf16.mxu0 %v10404_v24  ;;  %6665 = vmatprep.mubr.bf16.mxu1 %v10404_v24  ;;  %v10545_v24 = vld [vmem:[#allocation5 + $0xd48] ss:$16 sps:$4 sm:$0xff]  }
 0x33b   : > { %5315 = vmatmul.mubr.bf16.gmra.mrb[44].mxu0 %v10406_v25  ;;  %6666 = vmatmul.mubr.bf16.gmra.mrb[44].mxu1 %v10406_v25  ;;  %v10553_v25 = vld [vmem:[#allocation5 + $0xd64] ss:$16 sps:$4 sm:$0xff]  }
 0x33c   : > { %5324 = vmatprep.mubr.bf16.mxu0 %v10413_v26  ;;  %6675 = vmatprep.mubr.bf16.mxu1 %v10413_v26  ;;  %v10556_v26 = vld [vmem:[#allocation5 + $0xd6c] ss:$16 sps:$4 sm:$0xff]  }
 0x343   : > { %5325 = vmatmul.mubr.bf16.gmra.mrb[48].mxu0 %v10415_v27  ;;  %6676 = vmatmul.mubr.bf16.gmra.mrb[48].mxu1 %v10415_v27  ;;  %v10551_v27 = vld [vmem:[#allocation5 + $0xd60] ss:$16 sps:$4 sm:$0xff]  }
 0x344   : > { %5334 = vmatprep.mubr.bf16.mxu0 %v10422_v28  ;;  %6685 = vmatprep.mubr.bf16.mxu1 %v10422_v28  ;;  %v10554_v28 = vld [vmem:[#allocation5 + $0xd68] ss:$16 sps:$4 sm:$0xff]  }
 0x34b   : > { %5335 = vmatmul.mubr.bf16.gmra.mrb[52].mxu0 %v10424_v29  ;;  %6686 = vmatmul.mubr.bf16.gmra.mrb[52].mxu1 %v10424_v29  ;;  %v10562_v29 = vld [vmem:[#allocation5 + $0xd84] ss:$16 sps:$4 sm:$0xff]  }
 0x34c   : > { %5344 = vmatprep.mubr.bf16.mxu0 %v10431_v30  ;;  %6695 = vmatprep.mubr.bf16.mxu1 %v10431_v30  ;;  %v10565_v30 = vld [vmem:[#allocation5 + $0xd8c] ss:$16 sps:$4 sm:$0xff]  }
 0x353   : > { %5345 = vmatmul.mubr.bf16.gmra.mrb[56].mxu0 %v10433_v31  ;;  %6696 = vmatmul.mubr.bf16.gmra.mrb[56].mxu1 %v10433_v31  ;;  %v10505_v31 = vld [vmem:[%s11146_s13 + $0x2c8] ss:$56 sps:$4 sm:$0xff]  }
 0x354   : > { %5354 = vmatprep.mubr.bf16.mxu0 %v10440_v32  ;;  %6705 = vmatprep.mubr.bf16.mxu1 %v10440_v32  ;;  %v10512_v32 = vld [vmem:[%s11146_s13 + $0x33c] ss:$56 sps:$4 sm:$0xff]  }
 0x35b   : > { %5355 = vmatmul.mubr.bf16.gmra.mrb[60].mxu0 %v10442_v33  ;;  %6706 = vmatmul.mubr.bf16.gmra.mrb[60].mxu1 %v10442_v33  ;;  %v10560_v33 = vld [vmem:[#allocation5 + $0xd80] ss:$16 sps:$4 sm:$0xff]  }
 0x35c   : > { %5397 = vmatprep.mubr.bf16.mxu0 %v10451_v34  ;;  %6748 = vmatprep.mubr.bf16.mxu1 %v10451_v34  ;;  %v10563_v34 = vld [vmem:[#allocation5 + $0xd88] ss:$16 sps:$4 sm:$0xff]  }
 0x363   : > { %5398 = vmatmul.mubr.bf16.vlgmr.msra.gmra.mrb[0].mxu0 %v10449_v35  ;;  %6749 = vmatmul.mubr.bf16.vlgmr.msra.gmra.mrb[0].mxu1 %v10449_v35  ;;  %v10571_v35 = vld [vmem:[#allocation5 + $0xda4] ss:$16 sps:$4 sm:$0xff]  }
 0x364   : > { %5559 = vmatpush1.bf16.msra.mxu0 %v10452_v36  ;;  %6910 = vmatpush1.bf16.msra.mxu1 %v10455_v37  ;;  %v10574_v36 = vld [vmem:[#allocation5 + $0xdac] ss:$16 sps:$4 sm:$0xff]   ;;  %v10569_v37 = vld [vmem:[#allocation5 + $0xda0] ss:$16 sps:$4 sm:$0xff]  }
 0x365   : > { %5407 = vmatprep.mubr.bf16.mxu0 %v10458_v38  ;;  %6758 = vmatprep.mubr.bf16.mxu1 %v10458_v38  ;;  %v10572_v38 = vld [vmem:[#allocation5 + $0xda8] ss:$16 sps:$4 sm:$0xff]  }
 0x366   : > { %5560 = vmatprep.subr.bf16.mxu0 %v10463_v39  ;;  %6911 = vmatprep.subr.bf16.mxu1 %v10466_v40  ;;  %v10580_v39 = vld [vmem:[#allocation5 + $0xdc4] ss:$16 sps:$4 sm:$0xff]   ;;  %v10583_v40 = vld [vmem:[#allocation5 + $0xdcc] ss:$16 sps:$4 sm:$0xff]  }
 0x368   : > { %5561 = vmatpush1.bf16.msra.mxu0 %v10461_v41  ;;  %6912 = vmatpush1.bf16.msra.mxu1 %v10464_v42  ;;  %v10514_v41 = vld [vmem:[%s11146_s13 + $0x338] ss:$56 sps:$4 sm:$0xff]   ;;  %v10521_v42 = vld [vmem:[%s11146_s13 + $0x3ac] ss:$56 sps:$4 sm:$0xff]  }
 0x369   : > { %5562 = vmatprep.subr.bf16.mxu0 %v10472_v43  ;;  %6913 = vmatprep.subr.bf16.mxu1 %v10475_v44  ;;  %v10578_v43 = vld [vmem:[#allocation5 + $0xdc0] ss:$16 sps:$4 sm:$0xff]   ;;  %v10581_v44 = vld [vmem:[#allocation5 + $0xdc8] ss:$16 sps:$4 sm:$0xff]  }
 0x36b   : > { %5408 = vmatmul.mubr.bf16.gmra.mrb[4].mxu0 %v10460_v45  ;;  %6759 = vmatmul.mubr.bf16.gmra.mrb[4].mxu1 %v10460_v45  ;;  %v10589_v45 = vld [vmem:[#allocation5 + $0xde4] ss:$16 sps:$4 sm:$0xff]  }
 0x36c   : > { %5417 = vmatprep.mubr.bf16.mxu0 %v10467_v46  ;;  %6768 = vmatprep.mubr.bf16.mxu1 %v10467_v46  ;;  %v10592_v46 = vld [vmem:[#allocation5 + $0xdec] ss:$16 sps:$4 sm:$0xff]  }
 0x36d   : > { %5563 = vmatpush1.bf16.msra.mxu0 %v10470_v47  ;;  %6914 = vmatpush1.bf16.msra.mxu1 %v10473_v48  ;;  %v10587_v47 = vld [vmem:[#allocation5 + $0xde0] ss:$16 sps:$4 sm:$0xff]   ;;  %v10590_v48 = vld [vmem:[#allocation5 + $0xde8] ss:$16 sps:$4 sm:$0xff]  }
 0x36e   : > { %5564 = vmatprep.subr.bf16.mxu0 %v10481_v49  ;;  %6915 = vmatprep.subr.bf16.mxu1 %v10484_v50  ;;  %v10523_v49 = vld [vmem:[%s11146_s13 + $0x3a8] ss:$56 sps:$4 sm:$0xff]   ;;  %v10530_v50 = vld [vmem:[%s11146_s13 + $0x41c] ss:$56 sps:$4 sm:$0xff]  }
 0x371   : > { %5565 = vmatpush1.bf16.msra.mxu0 %v10479_v51  ;;  %6916 = vmatpush1.bf16.msra.mxu1 %v10482_v52  ;;  %v10532_v51 = vld [vmem:[%s11146_s13 + $0x418] ss:$56 sps:$4 sm:$0xff]   ;;  %v10539_v52 = vld [vmem:[%s11146_s13 + $0x48c] ss:$56 sps:$4 sm:$0xff]  }
 0x372   : > { %5566 = vmatprep.subr.bf16.mxu0 %v10490_v53  ;;  %6917 = vmatprep.subr.bf16.mxu1 %v10493_v54  ;;  %v10541_v53 = vld [vmem:[%s11146_s13 + $0x488] ss:$56 sps:$4 sm:$0xff]   ;;  %v10548_v54 = vld [vmem:[%s11146_s13 + $0x4fc] ss:$56 sps:$4 sm:$0xff]  }
 0x373   : > { %5418 = vmatmul.mubr.bf16.gmra.mrb[8].mxu0 %v10469_v55  ;;  %6769 = vmatmul.mubr.bf16.gmra.mrb[8].mxu1 %v10469_v55  ;;  %v10550_v55 = vld [vmem:[%s11146_s13 + $0x4f8] ss:$56 sps:$4 sm:$0xff]  }
 0x374   : > { %5427 = vmatprep.mubr.bf16.mxu0 %v10476_v56  ;;  %6778 = vmatprep.mubr.bf16.mxu1 %v10476_v56  ;;  %v10557_v56 = vld [vmem:[%s11146_s13 + $0x56c] ss:$56 sps:$4 sm:$0xff]  }
 0x375   : > { %5567 = vmatpush1.bf16.msra.mxu0 %v10488_v57  ;;  %6918 = vmatpush1.bf16.msra.mxu1 %v10491_v58  ;;  %v10559_v57 = vld [vmem:[%s11146_s13 + $0x568] ss:$56 sps:$4 sm:$0xff]   ;;  %v10566_v58 = vld [vmem:[%s11146_s13 + $0x5dc] ss:$56 sps:$4 sm:$0xff]  }
 0x376   : > { %5568 = vmatprep.subr.bf16.mxu0 %v10499_v59  ;;  %6919 = vmatprep.subr.bf16.mxu1 %v10502_v60  ;;  %v10568_v59 = vld [vmem:[%s11146_s13 + $0x5d8] ss:$56 sps:$4 sm:$0xff]   ;;  %v10575_v60 = vld [vmem:[%s11146_s13 + $0x64c] ss:$56 sps:$4 sm:$0xff]  }
 0x379   : > { %5569 = vmatpush1.bf16.msra.mxu0 %v10497_v61  ;;  %6920 = vmatpush1.bf16.msra.mxu1 %v10500_v62  ;;  %v10577_v61 = vld [vmem:[%s11146_s13 + $0x648] ss:$56 sps:$4 sm:$0xff]   ;;  %v10584_v62 = vld [vmem:[%s11146_s13 + $0x6bc] ss:$56 sps:$4 sm:$0xff]  }
 0x37a   : > { %5570 = vmatprep.subr.bf16.mxu0 %v10508_v63  ;;  %6921 = vmatprep.subr.bf16.mxu1 %v10511_v0  ;;  %v10586_v63 = vld [vmem:[%s11146_s13 + $0x6b8] ss:$56 sps:$4 sm:$0xff]   ;;  %v10595_v0 = vld [vmem:[%s11146_s13 + $0x34] ss:$56 sps:$4 sm:$0xff]  }
 0x37b   : > { %5428 = vmatmul.mubr.bf16.gmra.mrb[12].mxu0 %v10478_v1  ;;  %6779 = vmatmul.mubr.bf16.gmra.mrb[12].mxu1 %v10478_v1  ;;  %v10593_v1 = vld [vmem:[%s11146_s13 + $0x30] ss:$56 sps:$4 sm:$0xff]  }
 0x37c   : > { %5437 = vmatprep.mubr.bf16.mxu0 %v10485_v2  ;;  %6788 = vmatprep.mubr.bf16.mxu1 %v10485_v2  ;;  %v10596_v2 = vld [vmem:[%s11146_s13 + $0xa4] ss:$56 sps:$4 sm:$0xff]  }
 0x37d   : > { %5571 = vmatpush1.bf16.msra.mxu0 %v10506_v3  ;;  %6922 = vmatpush1.bf16.msra.mxu1 %v10509_v4  ;;  %v10598_v3 = vld [vmem:[%s11146_s13 + $0xa0] ss:$56 sps:$4 sm:$0xff]   ;;  %v10599_v4 = vld [vmem:[%s11146_s13 + $0x114] ss:$56 sps:$4 sm:$0xff]  }
 0x37e   : > { %5572 = vmatprep.subr.bf16.mxu0 %v10517_v5  ;;  %6923 = vmatprep.subr.bf16.mxu1 %v10520_v6  ;;  %v10601_v5 = vld [vmem:[%s11146_s13 + $0x110] ss:$56 sps:$4 sm:$0xff]   ;;  %v10602_v6 = vld [vmem:[%s11146_s13 + $0x184] ss:$56 sps:$4 sm:$0xff]  }
 0x381   : > { %5573 = vmatpush1.bf16.msra.mxu0 %v10515_v7  ;;  %6924 = vmatpush1.bf16.msra.mxu1 %v10518_v8  ;;  %v10604_v7 = vld [vmem:[%s11146_s13 + $0x180] ss:$56 sps:$4 sm:$0xff]   ;;  %v10605_v8 = vld [vmem:[%s11146_s13 + $0x1f4] ss:$56 sps:$4 sm:$0xff]  }
 0x382   : > { %5574 = vmatprep.subr.bf16.mxu0 %v10526_v9  ;;  %6925 = vmatprep.subr.bf16.mxu1 %v10529_v10  ;;  %v10607_v9 = vld [vmem:[%s11146_s13 + $0x1f0] ss:$56 sps:$4 sm:$0xff]   ;;  %v10608_v10 = vld [vmem:[%s11146_s13 + $0x264] ss:$56 sps:$4 sm:$0xff]  }
 0x383   : > { %5438 = vmatmul.mubr.bf16.gmra.mrb[16].mxu0 %v10487_v11  ;;  %6789 = vmatmul.mubr.bf16.gmra.mrb[16].mxu1 %v10487_v11  ;;  %v10610_v11 = vld [vmem:[%s11146_s13 + $0x260] ss:$56 sps:$4 sm:$0xff]  }
 0x384   : > { %5447 = vmatprep.mubr.bf16.mxu0 %v10494_v12  ;;  %6798 = vmatprep.mubr.bf16.mxu1 %v10494_v12  ;;  %v10611_v12 = vld [vmem:[%s11146_s13 + $0x2d4] ss:$56 sps:$4 sm:$0xff]  }
 0x385   : > { %5575 = vmatpush1.bf16.msra.mxu0 %v10524_v13  ;;  %6926 = vmatpush1.bf16.msra.mxu1 %v10527_v14  ;;  %v10613_v13 = vld [vmem:[%s11146_s13 + $0x2d0] ss:$56 sps:$4 sm:$0xff]   ;;  %v10614_v14 = vld [vmem:[%s11146_s13 + $0x344] ss:$56 sps:$4 sm:$0xff]  }
 0x386   : > { %5576 = vmatprep.subr.bf16.mxu0 %v10535_v15  ;;  %6927 = vmatprep.subr.bf16.mxu1 %v10538_v16  ;;  %v10616_v15 = vld [vmem:[%s11146_s13 + $0x340] ss:$56 sps:$4 sm:$0xff]   ;;  %v10617_v16 = vld [vmem:[%s11146_s13 + $0x3b4] ss:$56 sps:$4 sm:$0xff]  }
 0x389   : > { %5577 = vmatpush1.bf16.msra.mxu0 %v10533_v17  ;;  %6928 = vmatpush1.bf16.msra.mxu1 %v10536_v18  ;;  %v10619_v17 = vld [vmem:[%s11146_s13 + $0x3b0] ss:$56 sps:$4 sm:$0xff]   ;;  %v10620_v18 = vld [vmem:[%s11146_s13 + $0x424] ss:$56 sps:$4 sm:$0xff]  }
 0x38a   : > { %5578 = vmatprep.subr.bf16.mxu0 %v10544_v19  ;;  %6929 = vmatprep.subr.bf16.mxu1 %v10547_v20  ;;  %v10622_v19 = vld [vmem:[%s11146_s13 + $0x420] ss:$56 sps:$4 sm:$0xff]   ;;  %v10623_v20 = vld [vmem:[%s11146_s13 + $0x494] ss:$56 sps:$4 sm:$0xff]  }
 0x38b   : > { %5448 = vmatmul.mubr.bf16.gmra.mrb[20].mxu0 %v10496_v21  ;;  %6799 = vmatmul.mubr.bf16.gmra.mrb[20].mxu1 %v10496_v21  ;;  %v10625_v21 = vld [vmem:[%s11146_s13 + $0x490] ss:$56 sps:$4 sm:$0xff]  }
 0x38c   : > { %5457 = vmatprep.mubr.bf16.mxu0 %v10503_v22  ;;  %6808 = vmatprep.mubr.bf16.mxu1 %v10503_v22  ;;  %v10626_v22 = vld [vmem:[%s11146_s13 + $0x504] ss:$56 sps:$4 sm:$0xff]  }
 0x38d   : > { %5579 = vmatpush1.bf16.msra.mxu0 %v10542_v23  ;;  %6930 = vmatpush1.bf16.msra.mxu1 %v10545_v24  ;;  %v10628_v23 = vld [vmem:[%s11146_s13 + $0x500] ss:$56 sps:$4 sm:$0xff]   ;;  %v10629_v24 = vld [vmem:[%s11146_s13 + $0x574] ss:$56 sps:$4 sm:$0xff]  }
 0x38e   : > { %5580 = vmatprep.subr.bf16.mxu0 %v10553_v25  ;;  %6931 = vmatprep.subr.bf16.mxu1 %v10556_v26  ;;  %v10631_v25 = vld [vmem:[%s11146_s13 + $0x570] ss:$56 sps:$4 sm:$0xff]   ;;  %v10632_v26 = vld [vmem:[%s11146_s13 + $0x5e4] ss:$56 sps:$4 sm:$0xff]  }
 0x391   : > { %5581 = vmatpush1.bf16.msra.mxu0 %v10551_v27  ;;  %6932 = vmatpush1.bf16.msra.mxu1 %v10554_v28  ;;  %v10634_v27 = vld [vmem:[%s11146_s13 + $0x5e0] ss:$56 sps:$4 sm:$0xff]   ;;  %v10635_v28 = vld [vmem:[%s11146_s13 + $0x654] ss:$56 sps:$4 sm:$0xff]  }
 0x392   : > { %5582 = vmatprep.subr.bf16.mxu0 %v10562_v29  ;;  %6933 = vmatprep.subr.bf16.mxu1 %v10565_v30  ;;  %v10637_v29 = vld [vmem:[%s11146_s13 + $0x650] ss:$56 sps:$4 sm:$0xff]   ;;  %v10638_v30 = vld [vmem:[%s11146_s13 + $0x6c4] ss:$56 sps:$4 sm:$0xff]  }
 0x393   : > { %5458 = vmatmul.mubr.bf16.gmra.mrb[24].mxu0 %v10505_v31  ;;  %6809 = vmatmul.mubr.bf16.gmra.mrb[24].mxu1 %v10505_v31  ;;  %v10640_v31 = vld [vmem:[%s11146_s13 + $0x6c0] ss:$56 sps:$4 sm:$0xff]  }
 0x394   : > { %5467 = vmatprep.mubr.bf16.mxu0 %v10512_v32  ;;  %6818 = vmatprep.mubr.bf16.mxu1 %v10512_v32  ;;  %v1020_v32 = vlaneseq }
 0x395   : > { %5583 = vmatpush1.bf16.msra.mxu0 %v10560_v33  ;;  %6934 = vmatpush1.bf16.msra.mxu1 %v10563_v34 }
 0x396   : > { %5584 = vmatprep.subr.bf16.mxu0 %v10571_v35  ;;  %6935 = vmatprep.subr.bf16.mxu1 %v10574_v36  ;;  %v1021_v33 = vshrl.u32 %v1020_v32, 7  ;;  %v1018_v36 = vld [vmem:[#allocation7] sm:$0xf] }
 0x398   : > { %v1022_v34 = vsub.s32 0, %v1021_v33  ;;  %v1030_v35 = vsub.s32 2, %v1021_v33 }
 0x399   : > { %5585 = vmatpush1.bf16.msra.mxu0 %v10569_v37  ;;  %6936 = vmatpush1.bf16.msra.mxu1 %v10572_v38  ;;  %v1026_v37 = vsub.s32 1, %v1021_v33  ;;  %v1034_v38 = vsub.s32 3, %v1021_v33 }
 0x39a   : > { %5586 = vmatprep.subr.bf16.mxu0 %v10580_v39  ;;  %6937 = vmatprep.subr.bf16.mxu1 %v10583_v40  ;;  %v11384_v39 = vrot.slane %v1018_v36, %v1022_v34  ;;  %v7230_v40 = vld [vmem:[#allocation8] sm:$0xf] }
 0x39b   : > { %5468 = vmatmul.mubr.bf16.gmra.mrb[28].mxu0 %v10514_v41  ;;  %6819 = vmatmul.mubr.bf16.gmra.mrb[28].mxu1 %v10514_v41  ;;  %v11386_v41 = vrot.slane %v1018_v36, %v1030_v35 }
 0x39c   : > { %5477 = vmatprep.mubr.bf16.mxu0 %v10521_v42  ;;  %6828 = vmatprep.mubr.bf16.mxu1 %v10521_v42  ;;  %v7380_v42 = vld [vmem:[#allocation10] sm:$0xf] }
 0x39d   : > { %5587 = vmatpush1.bf16.msra.mxu0 %v10578_v43  ;;  %6938 = vmatpush1.bf16.msra.mxu1 %v10581_v44  ;;  %v11388_v43 = vrot.slane %v1018_v36, %v1026_v37  ;;  %v11390_v44 = vrot.slane %v1018_v36, %v1034_v38 }
 0x39e   : > { %5588 = vmatprep.subr.bf16.mxu0 %v10589_v45  ;;  %6939 = vmatprep.subr.bf16.mxu1 %v10592_v46  ;;  %v11392_v46 = vrot.slane %v7230_v40, %v1022_v34 }
 0x3a1   : > { %5589 = vmatpush1.bf16.msra.mxu0 %v10587_v47  ;;  %6940 = vmatpush1.bf16.msra.mxu1 %v10590_v48  ;;  %v11394_v48 = vrot.slane %v7230_v40, %v1030_v35 }
 0x3a3   : > { %5478 = vmatmul.mubr.bf16.gmra.mrb[32].mxu0 %v10523_v49  ;;  %6829 = vmatmul.mubr.bf16.gmra.mrb[32].mxu1 %v10523_v49  ;;  %v11396_v49 = vrot.slane %v7230_v40, %v1026_v37 }
 0x3a4   : > { %5487 = vmatprep.mubr.bf16.mxu0 %v10530_v50  ;;  %6838 = vmatprep.mubr.bf16.mxu1 %v10530_v50  ;;  %v11398_v50 = vrot.slane %v7230_v40, %v1034_v38 }
 0x3ab   : > { %5488 = vmatmul.mubr.bf16.gmra.mrb[36].mxu0 %v10532_v51  ;;  %6839 = vmatmul.mubr.bf16.gmra.mrb[36].mxu1 %v10532_v51 }
 0x3ac   : > { %5497 = vmatprep.mubr.bf16.mxu0 %v10539_v52  ;;  %6848 = vmatprep.mubr.bf16.mxu1 %v10539_v52  ;;  %v11401_v52 = vrot.slane %v7380_v42, %v1022_v34 }
 0x3b3   : > { %5498 = vmatmul.mubr.bf16.gmra.mrb[40].mxu0 %v10541_v53  ;;  %6849 = vmatmul.mubr.bf16.gmra.mrb[40].mxu1 %v10541_v53 }
 0x3b4   : > { %5507 = vmatprep.mubr.bf16.mxu0 %v10548_v54  ;;  %6858 = vmatprep.mubr.bf16.mxu1 %v10548_v54  ;;  %v11404_v54 = vrot.slane %v7380_v42, %v1030_v35 }
 0x3bb   : > { %5508 = vmatmul.mubr.bf16.gmra.mrb[44].mxu0 %v10550_v55  ;;  %6859 = vmatmul.mubr.bf16.gmra.mrb[44].mxu1 %v10550_v55 }
 0x3bc   : > { %5517 = vmatprep.mubr.bf16.mxu0 %v10557_v56  ;;  %6868 = vmatprep.mubr.bf16.mxu1 %v10557_v56 }
 0x3c3   : > { %5518 = vmatmul.mubr.bf16.gmra.mrb[48].mxu0 %v10559_v57  ;;  %6869 = vmatmul.mubr.bf16.gmra.mrb[48].mxu1 %v10559_v57 }
 0x3c4   : > { %5527 = vmatprep.mubr.bf16.mxu0 %v10566_v58  ;;  %6878 = vmatprep.mubr.bf16.mxu1 %v10566_v58  ;;  %v11407_v58 = vrot.slane %v7380_v42, %v1026_v37 }
 0x3cb   : > { %5528 = vmatmul.mubr.bf16.gmra.mrb[52].mxu0 %v10568_v59  ;;  %6879 = vmatmul.mubr.bf16.gmra.mrb[52].mxu1 %v10568_v59 }
 0x3cc   : > { %5537 = vmatprep.mubr.bf16.mxu0 %v10575_v60  ;;  %6888 = vmatprep.mubr.bf16.mxu1 %v10575_v60  ;;  %v11410_v60 = vrot.slane %v7380_v42, %v1034_v38 }
 0x3d3   : > { %5538 = vmatmul.mubr.bf16.gmra.mrb[56].mxu0 %v10577_v61  ;;  %6889 = vmatmul.mubr.bf16.gmra.mrb[56].mxu1 %v10577_v61 }
 0x3d4   : > { %5547 = vmatprep.mubr.bf16.mxu0 %v10584_v62  ;;  %6898 = vmatprep.mubr.bf16.mxu1 %v10584_v62 }
 0x3db   : > { %5548 = vmatmul.mubr.bf16.gmra.mrb[60].mxu0 %v10586_v63  ;;  %6899 = vmatmul.mubr.bf16.gmra.mrb[60].mxu1 %v10586_v63 }
 0x3dc   : > { %5590 = vmatprep.mubr.bf16.mxu0 %v10595_v0  ;;  %6941 = vmatprep.mubr.bf16.mxu1 %v10595_v0 }
 0x3e3   : > { %5591 = vmatmul.mubr.bf16.vlgmr.msra.gmra.mrb[0].mxu0 %v10593_v1  ;;  %6942 = vmatmul.mubr.bf16.vlgmr.msra.gmra.mrb[0].mxu1 %v10593_v1 }
 0x3e4   : > { %5600 = vmatprep.mubr.bf16.mxu0 %v10596_v2  ;;  %6951 = vmatprep.mubr.bf16.mxu1 %v10596_v2 }
 0x3eb   : > { %5601 = vmatmul.mubr.bf16.gmra.mrb[4].mxu0 %v10598_v3  ;;  %6952 = vmatmul.mubr.bf16.gmra.mrb[4].mxu1 %v10598_v3 }
 0x3ec   : > { %5610 = vmatprep.mubr.bf16.mxu0 %v10599_v4  ;;  %6961 = vmatprep.mubr.bf16.mxu1 %v10599_v4 }
 0x3f3   : > { %5611 = vmatmul.mubr.bf16.gmra.mrb[8].mxu0 %v10601_v5  ;;  %6962 = vmatmul.mubr.bf16.gmra.mrb[8].mxu1 %v10601_v5 }
 0x3f4   : > { %5620 = vmatprep.mubr.bf16.mxu0 %v10602_v6  ;;  %6971 = vmatprep.mubr.bf16.mxu1 %v10602_v6 }
 0x3fb   : > { %5621 = vmatmul.mubr.bf16.gmra.mrb[12].mxu0 %v10604_v7  ;;  %6972 = vmatmul.mubr.bf16.gmra.mrb[12].mxu1 %v10604_v7 }
 0x3fc   : > { %5630 = vmatprep.mubr.bf16.mxu0 %v10605_v8  ;;  %6981 = vmatprep.mubr.bf16.mxu1 %v10605_v8 }
 0x403   : > { %5631 = vmatmul.mubr.bf16.gmra.mrb[16].mxu0 %v10607_v9  ;;  %6982 = vmatmul.mubr.bf16.gmra.mrb[16].mxu1 %v10607_v9 }
 0x404   : > { %5640 = vmatprep.mubr.bf16.mxu0 %v10608_v10  ;;  %6991 = vmatprep.mubr.bf16.mxu1 %v10608_v10 }
 0x40b   : > { %5641 = vmatmul.mubr.bf16.gmra.mrb[20].mxu0 %v10610_v11  ;;  %6992 = vmatmul.mubr.bf16.gmra.mrb[20].mxu1 %v10610_v11 }
 0x40c   : > { %5650 = vmatprep.mubr.bf16.mxu0 %v10611_v12  ;;  %7001 = vmatprep.mubr.bf16.mxu1 %v10611_v12 }
 0x413   : > { %5651 = vmatmul.mubr.bf16.gmra.mrb[24].mxu0 %v10613_v13  ;;  %7002 = vmatmul.mubr.bf16.gmra.mrb[24].mxu1 %v10613_v13 }
 0x414   : > { %5660 = vmatprep.mubr.bf16.mxu0 %v10614_v14  ;;  %7011 = vmatprep.mubr.bf16.mxu1 %v10614_v14 }
 0x41b   : > { %5661 = vmatmul.mubr.bf16.gmra.mrb[28].mxu0 %v10616_v15  ;;  %7012 = vmatmul.mubr.bf16.gmra.mrb[28].mxu1 %v10616_v15 }
 0x41c   : > { %5670 = vmatprep.mubr.bf16.mxu0 %v10617_v16  ;;  %7021 = vmatprep.mubr.bf16.mxu1 %v10617_v16 }
 0x423   : > { %5671 = vmatmul.mubr.bf16.gmra.mrb[32].mxu0 %v10619_v17  ;;  %7022 = vmatmul.mubr.bf16.gmra.mrb[32].mxu1 %v10619_v17 }
 0x424   : > { %5680 = vmatprep.mubr.bf16.mxu0 %v10620_v18  ;;  %7031 = vmatprep.mubr.bf16.mxu1 %v10620_v18 }
 0x42b   : > { %5681 = vmatmul.mubr.bf16.gmra.mrb[36].mxu0 %v10622_v19  ;;  %7032 = vmatmul.mubr.bf16.gmra.mrb[36].mxu1 %v10622_v19 }
 0x42c   : > { %5690 = vmatprep.mubr.bf16.mxu0 %v10623_v20  ;;  %7041 = vmatprep.mubr.bf16.mxu1 %v10623_v20 }
 0x433   : > { %5691 = vmatmul.mubr.bf16.gmra.mrb[40].mxu0 %v10625_v21  ;;  %7042 = vmatmul.mubr.bf16.gmra.mrb[40].mxu1 %v10625_v21 }
 0x434   : > { %5700 = vmatprep.mubr.bf16.mxu0 %v10626_v22  ;;  %7051 = vmatprep.mubr.bf16.mxu1 %v10626_v22 }
 0x43b   : > { %5701 = vmatmul.mubr.bf16.gmra.mrb[44].mxu0 %v10628_v23  ;;  %7052 = vmatmul.mubr.bf16.gmra.mrb[44].mxu1 %v10628_v23 }
 0x43c   : > { %5710 = vmatprep.mubr.bf16.mxu0 %v10629_v24  ;;  %7061 = vmatprep.mubr.bf16.mxu1 %v10629_v24 }
 0x443   : > { %5711 = vmatmul.mubr.bf16.gmra.mrb[48].mxu0 %v10631_v25  ;;  %7062 = vmatmul.mubr.bf16.gmra.mrb[48].mxu1 %v10631_v25 }
 0x444   : > { %5720 = vmatprep.mubr.bf16.mxu0 %v10632_v26  ;;  %7071 = vmatprep.mubr.bf16.mxu1 %v10632_v26 }
 0x44b   : > { %5721 = vmatmul.mubr.bf16.gmra.mrb[52].mxu0 %v10634_v27  ;;  %7072 = vmatmul.mubr.bf16.gmra.mrb[52].mxu1 %v10634_v27 }
 0x44c   : > { %5730 = vmatprep.mubr.bf16.mxu0 %v10635_v28  ;;  %7081 = vmatprep.mubr.bf16.mxu1 %v10635_v28 }
 0x453   : > { %5731 = vmatmul.mubr.bf16.gmra.mrb[56].mxu0 %v10637_v29  ;;  %7082 = vmatmul.mubr.bf16.gmra.mrb[56].mxu1 %v10637_v29 }
 0x454   : > { %5740 = vmatprep.mubr.bf16.mxu0 %v10638_v30  ;;  %7091 = vmatprep.mubr.bf16.mxu1 %v10638_v30 }
 0x45b   : > { %5741 = vmatmul.mubr.bf16.gmra.mrb[60].mxu0 %v10640_v31  ;;  %7092 = vmatmul.mubr.bf16.gmra.mrb[60].mxu1 %v10640_v31 }
 0x4b6   : > { %v5592_v45 = vpop.f32.mrb[0].mxu0  ;;  %v6943_v47 = vpop.f32.mrb[0].mxu1 }
 0x4b7   : > { %v8625_v51 = vadd.f32 %v5592_v45, %v11384_v39  ;;  %v8689_v53 = vadd.f32 %v6943_v47, %v11386_v41  ;;  %v5594_v55 = vpop.f32.mrb[1].mxu0  ;;  %v6945_v56 = vpop.f32.mrb[1].mxu1 }
 0x4b8   : > { %v8626_v57 = vadd.f32 %v5594_v55, %v11388_v43  ;;  %v8690_v59 = vadd.f32 %v6945_v56, %v11390_v44  ;;  %v5596_v61 = vpop.f32.mrb[2].mxu0  ;;  %v6947_v62 = vpop.f32.mrb[2].mxu1 }
 0x4b9   : > { %v7102_v63 = vmax.f32 %v8625_v51, 0.0  ;;  %v7104_v0 = vmax.f32 %v8689_v53, 0.0  ;;  %v8627_v1 = vadd.f32 %v5596_v61, %v11384_v39  ;;  %v8691_v2 = vadd.f32 %v6947_v62, %v11386_v41  ;;  %v5598_v3 = vpop.f32.mrb[3].mxu0  ;;  %v6949_v4 = vpop.f32.mrb[3].mxu1 }
 0x4ba   : > { %v7103_v5 = vmax.f32 %v8626_v57, 0.0  ;;  %v7105_v6 = vmax.f32 %v8690_v59, 0.0  ;;  %v8628_v7 = vadd.f32 %v5598_v3, %v11388_v43  ;;  %v8692_v8 = vadd.f32 %v6949_v4, %v11390_v44 }
 0x4bb   : > { %v7252_v9 = vmul.f32 %v11392_v46, %v7102_v63  ;;  %v7254_v10 = vmul.f32 %v11394_v48, %v7104_v0  ;;  %v7106_v11 = vmax.f32 %v8627_v1, 0.0  ;;  %v7108_v12 = vmax.f32 %v8691_v2, 0.0 }
 0x4bc   : > { %v7253_v13 = vmul.f32 %v11396_v49, %v7103_v5  ;;  %v7255_v14 = vmul.f32 %v11398_v50, %v7105_v6  ;;  %v7107_v15 = vmax.f32 %v8628_v7, 0.0  ;;  %v7109_v16 = vmax.f32 %v8692_v8, 0.0 }
 0x4bd   : > { %v11421_v17 = vadd.f32 %v11401_v52, %v7252_v9  ;;  %v11424_v18 = vadd.f32 %v11404_v54, %v7254_v10  ;;  %v7256_v19 = vmul.f32 %v11392_v46, %v7106_v11  ;;  %v7258_v20 = vmul.f32 %v11394_v48, %v7108_v12 }
 0x4be   : > { %v11429_v21 = vadd.f32 %v11407_v58, %v7253_v13  ;;  %v11432_v22 = vadd.f32 %v11410_v60, %v7255_v14  ;;  %v7257_v23 = vmul.f32 %v11396_v49, %v7107_v15  ;;  %v7259_v24 = vmul.f32 %v11398_v50, %v7109_v16  ;;  %v5602_v25 = vpop.f32.mrb[4].mxu0  ;;  %v6953_v26 = vpop.f32.mrb[4].mxu1 }
 0x4bf   : > { %v11439_v29 = vadd.f32 %v11401_v52, %v7256_v19  ;;  %v11442_v30 = vadd.f32 %v11404_v54, %v7258_v20  ;;  %v5604_v31 = vpop.f32.mrb[5].mxu0  ;;  %v6955_v32 = vpop.f32.mrb[5].mxu1  ;;  %v8629_v45 = vadd.f32 %v5602_v25, %v11384_v39  ;;  %v8693_v47 = vadd.f32 %v6953_v26, %v11386_v41 }
 0x4c0   : > { %v11447_v35 = vadd.f32 %v11407_v58, %v7257_v23  ;;  %v11450_v36 = vadd.f32 %v11410_v60, %v7259_v24  ;;  %v5606_v37 = vpop.f32.mrb[6].mxu0  ;;  %v6957_v38 = vpop.f32.mrb[6].mxu1  ;;  %v8630_v57 = vadd.f32 %v5604_v31, %v11388_v43  ;;  %v8694_v59 = vadd.f32 %v6955_v32, %v11390_v44 }
 0x4c1   : > { %v5608_v51 = vpop.f32.mrb[7].mxu0  ;;  %v6959_v53 = vpop.f32.mrb[7].mxu1  ;;  %v7110_v61 = vmax.f32 %v8629_v45, 0.0  ;;  %v7112_v62 = vmax.f32 %v8693_v47, 0.0  ;;  %v8631_v63 = vadd.f32 %v5606_v37, %v11384_v39  ;;  %v8695_v0 = vadd.f32 %v6957_v38, %v11386_v41 }
 0x4c2   : > { %v7111_v1 = vmax.f32 %v8630_v57, 0.0  ;;  %v7113_v2 = vmax.f32 %v8694_v59, 0.0  ;;  %v8632_v3 = vadd.f32 %v5608_v51, %v11388_v43  ;;  %v8696_v4 = vadd.f32 %v6959_v53, %v11390_v44 }
 0x4c3   : > { %v7260_v5 = vmul.f32 %v11392_v46, %v7110_v61  ;;  %v7262_v6 = vmul.f32 %v11394_v48, %v7112_v62  ;;  %v7114_v7 = vmax.f32 %v8631_v63, 0.0  ;;  %v7116_v8 = vmax.f32 %v8695_v0, 0.0 }
 0x4c4   : > { %v7261_v9 = vmul.f32 %v11396_v49, %v7111_v1  ;;  %v7263_v10 = vmul.f32 %v11398_v50, %v7113_v2  ;;  %v7115_v11 = vmax.f32 %v8632_v3, 0.0  ;;  %v7117_v12 = vmax.f32 %v8696_v4, 0.0 }
 0x4c5   : > { %v11469_v15 = vadd.f32 %v11401_v52, %v7260_v5  ;;  %v11472_v16 = vadd.f32 %v11404_v54, %v7262_v6  ;;  %v7264_v19 = vmul.f32 %v11392_v46, %v7114_v7  ;;  %v7266_v20 = vmul.f32 %v11394_v48, %v7116_v8 }
 0x4c6   : > { %v5612_v13 = vpop.f32.mrb[8].mxu0  ;;  %v6963_v14 = vpop.f32.mrb[8].mxu1  ;;  %v11477_v25 = vadd.f32 %v11407_v58, %v7261_v9  ;;  %v11480_v26 = vadd.f32 %v11410_v60, %v7263_v10  ;;  %v7265_v31 = vmul.f32 %v11396_v49, %v7115_v11  ;;  %v7267_v32 = vmul.f32 %v11398_v50, %v7117_v12 }
 0x4c7   : > { %v5614_v23 = vpop.f32.mrb[9].mxu0  ;;  %v6965_v24 = vpop.f32.mrb[9].mxu1  ;;  %v11487_v51 = vadd.f32 %v11401_v52, %v7264_v19  ;;  %v11490_v53 = vadd.f32 %v11404_v54, %v7266_v20  ;;  %v8633_v3 = vadd.f32 %v5612_v13, %v11384_v39  ;;  %v8697_v4 = vadd.f32 %v6963_v14, %v11386_v41 }
 0x4c8   : > { %v5616_v37 = vpop.f32.mrb[10].mxu0  ;;  %v6967_v38 = vpop.f32.mrb[10].mxu1  ;;  %v11495_v63 = vadd.f32 %v11407_v58, %v7265_v31  ;;  %v11498_v0 = vadd.f32 %v11410_v60, %v7267_v32  ;;  %v8634_v7 = vadd.f32 %v5614_v23, %v11388_v43  ;;  %v8698_v8 = vadd.f32 %v6965_v24, %v11390_v44 }
 0x4c9   : > { %v5618_v57 = vpop.f32.mrb[11].mxu0  ;;  %v6969_v59 = vpop.f32.mrb[11].mxu1  ;;  %v7118_v9 = vmax.f32 %v8633_v3, 0.0  ;;  %v7120_v10 = vmax.f32 %v8697_v4, 0.0  ;;  %v8635_v11 = vadd.f32 %v5616_v37, %v11384_v39  ;;  %v8699_v12 = vadd.f32 %v6967_v38, %v11386_v41 }
 0x4ca   : > { %v7119_v19 = vmax.f32 %v8634_v7, 0.0  ;;  %v7121_v20 = vmax.f32 %v8698_v8, 0.0  ;;  %v8636_v13 = vadd.f32 %v5618_v57, %v11388_v43  ;;  %v8700_v14 = vadd.f32 %v6969_v59, %v11390_v44 }
 0x4cb   : > { %v7268_v6 = vmul.f32 %v11392_v46, %v7118_v9  ;;  %v7270_v23 = vmul.f32 %v11394_v48, %v7120_v10  ;;  %v7122_v5 = vmax.f32 %v8635_v11, 0.0  ;;  %v7124_v24 = vmax.f32 %v8699_v12, 0.0 }
 0x4cc   : > { %v7269_v37 = vmul.f32 %v11396_v49, %v7119_v19  ;;  %v7271_v38 = vmul.f32 %v11398_v50, %v7121_v20  ;;  %v7123_v7 = vmax.f32 %v8636_v13, 0.0  ;;  %v7125_v8 = vmax.f32 %v8700_v14, 0.0 }
 0x4cd   : > { %v11517_v59 = vadd.f32 %v11401_v52, %v7268_v6  ;;  %v11520_v1 = vadd.f32 %v11404_v54, %v7270_v23  ;;  %v7272_v9 = vmul.f32 %v11392_v46, %v7122_v5  ;;  %v7274_v10 = vmul.f32 %v11394_v48, %v7124_v24 }
 0x4ce   : > { %v5622_v31 = vpop.f32.mrb[12].mxu0  ;;  %v6973_v32 = vpop.f32.mrb[12].mxu1  ;;  %v11525_v19 = vadd.f32 %v11407_v58, %v7269_v37  ;;  %v11528_v20 = vadd.f32 %v11410_v60, %v7271_v38  ;;  %v7273_v13 = vmul.f32 %v11396_v49, %v7123_v7  ;;  %v7275_v6 = vmul.f32 %v11398_v50, %v7125_v8 }
 0x4cf   : > { %v5624_v3 = vpop.f32.mrb[13].mxu0  ;;  %v6975_v4 = vpop.f32.mrb[13].mxu1  ;;  %v11535_v5 = vadd.f32 %v11401_v52, %v7272_v9  ;;  %v11538_v24 = vadd.f32 %v11404_v54, %v7274_v10  ;;  %v8637_v9 = vadd.f32 %v5622_v31, %v11384_v39  ;;  %v8701_v14 = vadd.f32 %v6973_v32, %v11386_v41 }
 0x4d0   : > { %v5626_v2 = vpop.f32.mrb[14].mxu0  ;;  %v6977_v57 = vpop.f32.mrb[14].mxu1  ;;  %12607 = vst [vmem:[#allocation18_spill] sm:$0xff] %v11525_v19  ;;  %12608 = vst [vmem:[#allocation19_spill] sm:$0xff] %v11528_v20  ;;  %v11543_v38 = vadd.f32 %v11407_v58, %v7273_v13  ;;  %v11546_v7 = vadd.f32 %v11410_v60, %v7275_v6  ;;  %v8638_v62 = vadd.f32 %v5624_v3, %v11388_v43  ;;  %v12625_v20 = vmax.f32 %v11432_v22, 0.0 }
 0x4d1   : > { %v5628_v11 = vpop.f32.mrb[15].mxu0  ;;  %v6979_v12 = vpop.f32.mrb[15].mxu1  ;;  %12609 = vst [vmem:[#allocation20_spill] sm:$0xff] %v11535_v5  ;;  %12610 = vst [vmem:[#allocation21_spill] sm:$0xff] %v11538_v24  ;;  %v8702_v13 = vadd.f32 %v6975_v4, %v11390_v44  ;;  %v7126_v6 = vmax.f32 %v8637_v9, 0.0  ;;  %v7128_v45 = vmax.f32 %v8701_v14, 0.0  ;;  %v8639_v8 = vadd.f32 %v5626_v2, %v11384_v39 }
 0x4d2   : > { %12611 = vst [vmem:[#allocation22_spill] sm:$0xff] %v11543_v38  ;;  %12612 = vst [vmem:[#allocation23_spill] sm:$0xff] %v11546_v7  ;;  %v8703_v23 = vadd.f32 %v6977_v57, %v11386_v41  ;;  %v7127_v55 = vmax.f32 %v8638_v62, 0.0  ;;  %v8640_v10 = vadd.f32 %v5628_v11, %v11388_v43  ;;  %v8704_v37 = vadd.f32 %v6979_v12, %v11390_v44 }
 0x4d3   : > { %v7129_v32 = vmax.f32 %v8702_v13, 0.0  ;;  %v7276_v4 = vmul.f32 %v11392_v46, %v7126_v6  ;;  %v7278_v40 = vmul.f32 %v11394_v48, %v7128_v45  ;;  %v7130_v9 = vmax.f32 %v8639_v8, 0.0 }
 0x4d4   : > { %v7132_v14 = vmax.f32 %v8703_v23, 0.0  ;;  %v7277_v57 = vmul.f32 %v11396_v49, %v7127_v55  ;;  %v7131_v62 = vmax.f32 %v8640_v10, 0.0  ;;  %v7133_v13 = vmax.f32 %v8704_v37, 0.0 }
 0x4d5   : > { %v7279_v33 = vmul.f32 %v11398_v50, %v7129_v32  ;;  %v11565_v11 = vadd.f32 %v11401_v52, %v7276_v4  ;;  %v11568_v12 = vadd.f32 %v11404_v54, %v7278_v40  ;;  %v7280_v6 = vmul.f32 %v11392_v46, %v7130_v9 }
 0x4d6   : > { %v5632_v61 = vpop.f32.mrb[16].mxu0  ;;  %v6983_v47 = vpop.f32.mrb[16].mxu1  ;;  %v7282_v45 = vmul.f32 %v11394_v48, %v7132_v14  ;;  %v11573_v23 = vadd.f32 %v11407_v58, %v7277_v57  ;;  %v7281_v55 = vmul.f32 %v11396_v49, %v7131_v62  ;;  %v7283_v37 = vmul.f32 %v11398_v50, %v7133_v13 }
 0x4d7   : > { %v5634_v56 = vpop.f32.mrb[17].mxu0  ;;  %v6985_v31 = vpop.f32.mrb[17].mxu1  ;;  %12613 = vst [vmem:[#allocation24_spill] sm:$0xff] %v11565_v11  ;;  %12614 = vst [vmem:[#allocation25_spill] sm:$0xff] %v11568_v12  ;;  %v11576_v8 = vadd.f32 %v11410_v60, %v7279_v33  ;;  %v11583_v40 = vadd.f32 %v11401_v52, %v7280_v6  ;;  %v8705_v9 = vadd.f32 %v6983_v47, %v11386_v41  ;;  %v12631_v22 = vmax.f32 %v11447_v35, 0.0 }
 0x4d8   : > { %v5636_v42 = vpop.f32.mrb[18].mxu0  ;;  %v6987_v3 = vpop.f32.mrb[18].mxu1  ;;  %12615 = vst [vmem:[#allocation26_spill] sm:$0xff] %v11573_v23  ;;  %v11586_v4 = vadd.f32 %v11404_v54, %v7282_v45  ;;  %v11591_v33 = vadd.f32 %v11407_v58, %v7281_v55  ;;  %v11594_v57 = vadd.f32 %v11410_v60, %v7283_v37  ;;  %v8641_v45 = vadd.f32 %v5632_v61, %v11384_v39 }
 0x4d9   : > { %v5638_v34 = vpop.f32.mrb[19].mxu0  ;;  %v6989_v2 = vpop.f32.mrb[19].mxu1  ;;  %12616 = vst [vmem:[#allocation27_spill] sm:$0xff] %v11576_v8  ;;  %12617 = vst [vmem:[#allocation28_spill] sm:$0xff] %v11583_v40  ;;  %v8642_v28 = vadd.f32 %v5634_v56, %v11388_v43  ;;  %v8706_v27 = vadd.f32 %v6985_v31, %v11390_v44  ;;  %v7136_v32 = vmax.f32 %v8705_v9, 0.0  ;;  %v8643_v61 = vadd.f32 %v5636_v42, %v11384_v39 }
 0x4da   : > { %12618 = vst [vmem:[#allocation29_spill] sm:$0xff] %v11586_v4  ;;  %12619 = vst [vmem:[#allocation30_spill] sm:$0xff] %v11591_v33  ;;  %v7134_v40 = vmax.f32 %v8641_v45, 0.0  ;;  %v8707_v47 = vadd.f32 %v6987_v3, %v11386_v41  ;;  %v8644_v55 = vadd.f32 %v5638_v34, %v11388_v43  ;;  %v8708_v37 = vadd.f32 %v6989_v2, %v11390_v44 }
 0x4db   : > { %12620 = vst [vmem:[#allocation31_spill] sm:$0xff] %v11594_v57  ;;  %v7135_v12 = vmax.f32 %v8642_v28, 0.0  ;;  %v7137_v11 = vmax.f32 %v8706_v27, 0.0  ;;  %v7286_v31 = vmul.f32 %v11394_v48, %v7136_v32  ;;  %v7138_v57 = vmax.f32 %v8643_v61, 0.0 }
 0x4dc   : > { %v7284_v56 = vmul.f32 %v11392_v46, %v7134_v40  ;;  %v7140_v33 = vmax.f32 %v8707_v47, 0.0  ;;  %v7139_v45 = vmax.f32 %v8644_v55, 0.0  ;;  %v7141_v3 = vmax.f32 %v8708_v37, 0.0 }
 0x4dd   : > { %v7285_v9 = vmul.f32 %v11396_v49, %v7135_v12  ;;  %v7287_v42 = vmul.f32 %v11398_v50, %v7137_v11  ;;  %v7436_v27 = vadd.f32 %v11404_v54, %v7286_v31  ;;  %v7288_v28 = vmul.f32 %v11392_v46, %v7138_v57 }
 0x4de   : > { %v11596_v62 = vpop.f32.mrb[20].mxu0  ;;  %v11598_v13 = vpop.f32.mrb[20].mxu1  ;;  %v7434_v7 = vadd.f32 %v11401_v52, %v7284_v56  ;;  %v7290_v34 = vmul.f32 %v11394_v48, %v7140_v33  ;;  %v7289_v40 = vmul.f32 %v11396_v49, %v7139_v45  ;;  %v7291_v12 = vmul.f32 %v11398_v50, %v7141_v3 }
 0x4df   : > { %v11604_v10 = vpop.f32.mrb[21].mxu0  ;;  %v11606_v14 = vpop.f32.mrb[21].mxu1  ;;  %v7435_v2 = vadd.f32 %v11407_v58, %v7285_v9  ;;  %v7437_v32 = vadd.f32 %v11410_v60, %v7287_v42  ;;  %v7564_v37 = vmax.f32 %v7436_v27, 0.0  ;;  %v7438_v47 = vadd.f32 %v11401_v52, %v7288_v28 }
 0x4e0   : > { %v5646_v8 = vpop.f32.mrb[22].mxu0  ;;  %v6997_v6 = vpop.f32.mrb[22].mxu1  ;;  %v7562_v55 = vmax.f32 %v7434_v7, 0.0  ;;  %v7440_v57 = vadd.f32 %v11404_v54, %v7290_v34  ;;  %v7439_v42 = vadd.f32 %v11407_v58, %v7289_v40  ;;  %v7441_v45 = vadd.f32 %v11410_v60, %v7291_v12 }
 0x4e1   : > { %v5648_v4 = vpop.f32.mrb[23].mxu0  ;;  %v6999_v23 = vpop.f32.mrb[23].mxu1  ;;  %v7563_v31 = vmax.f32 %v7435_v2, 0.0  ;;  %v7565_v9 = vmax.f32 %v7437_v32, 0.0  ;;  %v12621_v7 = vmax.f32 %v11421_v17, 0.0  ;;  %v12622_v28 = vmax.f32 %v11424_v18, 0.0 }
 0x4e2   : > { %v7566_v24 = vmax.f32 %v7438_v47, 0.0  ;;  %v7568_v5 = vmax.f32 %v7440_v57, 0.0  ;;  %v12623_v40 = vmax.f32 %v11429_v21, 0.0  ;;  %v7567_v17 = vmax.f32 %v7439_v42, 0.0 }
 0x4e3   : > { %v11646_v27 = vmax.f32 %v12621_v7, %v7562_v55  ;;  %v11650_v34 = vmax.f32 %v12622_v28, %v7564_v37  ;;  %v11662_v19 = vmax.f32 %v12625_v20, %v7565_v9  ;;  %v7569_v55 = vmax.f32 %v7441_v45, 0.0 }
 0x4e4   : > { %v11658_v12 = vmax.f32 %v12623_v40, %v7563_v31  ;;  %v12627_v18 = vmax.f32 %v11439_v29, 0.0  ;;  %v12629_v47 = vmax.f32 %v11442_v30, 0.0  ;;  %v8645_v7 = vadd.f32 %v11596_v62, %v11384_v39 }
 0x4e5   : > { %12626 = vst [vmem:[#allocation33_spill] sm:$0xff] %v11662_v19  ;;  %v8709_v21 = vadd.f32 %v11598_v13, %v11386_v41  ;;  %v11678_v20 = vmax.f32 %v12631_v22, %v7567_v17  ;;  %v12633_v31 = vmax.f32 %v11450_v36, 0.0  ;;  %v8646_v29 = vadd.f32 %v11604_v10, %v11388_v43 }
 0x4e6   : > { %v11628_v61 = vpop.f32.mrb[24].mxu0  ;;  %v11630_v11 = vpop.f32.mrb[24].mxu1  ;;  %12624 = vst [vmem:[#allocation32_spill] sm:$0xff] %v11658_v12  ;;  %v11666_v37 = vmax.f32 %v12627_v18, %v7566_v24  ;;  %v11670_v57 = vmax.f32 %v12629_v47, %v7568_v5  ;;  %v8710_v30 = vadd.f32 %v11606_v14, %v11390_v44  ;;  %v7142_v5 = vmax.f32 %v8645_v7, 0.0 }
 0x4e7   : > { %v11634_v56 = vpop.f32.mrb[25].mxu0  ;;  %v11636_v33 = vpop.f32.mrb[25].mxu1  ;;  %12632 = vst [vmem:[#allocation36_spill] sm:$0xff] %v11678_v20  ;;  %v11682_v9 = vmax.f32 %v12633_v31, %v7569_v55  ;;  %v7144_v24 = vmax.f32 %v8709_v21, 0.0  ;;  %v8647_v62 = vadd.f32 %v5646_v8, %v11384_v39  ;;  %v8711_v13 = vadd.f32 %v6997_v6, %v11386_v41 }
 0x4e8   : > { %v11640_v3 = vpop.f32.mrb[26].mxu0  ;;  %v11642_v38 = vpop.f32.mrb[26].mxu1  ;;  %12628 = vst [vmem:[#allocation34_spill] sm:$0xff] %v11666_v37  ;;  %12630 = vst [vmem:[#allocation35_spill] sm:$0xff] %v11670_v57  ;;  %v7143_v42 = vmax.f32 %v8646_v29, 0.0  ;;  %v7145_v35 = vmax.f32 %v8710_v30, 0.0  ;;  %v8648_v45 = vadd.f32 %v5648_v4, %v11388_v43  ;;  %v8712_v36 = vadd.f32 %v6999_v23, %v11390_v44 }
 0x4e9   : > { %v11652_v2 = vpop.f32.mrb[27].mxu0  ;;  %v11654_v32 = vpop.f32.mrb[27].mxu1  ;;  %12634 = vst [vmem:[#allocation37_spill] sm:$0xff] %v11682_v9  ;;  %v7292_v10 = vmul.f32 %v11392_v46, %v7142_v5  ;;  %v7294_v14 = vmul.f32 %v11394_v48, %v7144_v24  ;;  %v7146_v17 = vmax.f32 %v8647_v62, 0.0  ;;  %v7148_v55 = vmax.f32 %v8711_v13, 0.0 }
 0x4ea   : > { %v7293_v6 = vmul.f32 %v11396_v49, %v7143_v42  ;;  %v7295_v4 = vmul.f32 %v11398_v50, %v7145_v35  ;;  %v7147_v47 = vmax.f32 %v8648_v45, 0.0  ;;  %v7149_v23 = vmax.f32 %v8712_v36, 0.0 }
 0x4eb   : > { %v7442_v22 = vadd.f32 %v11401_v52, %v7292_v10  ;;  %v7444_v31 = vadd.f32 %v11404_v54, %v7294_v14  ;;  %v7296_v29 = vmul.f32 %v11392_v46, %v7146_v17  ;;  %v7298_v30 = vmul.f32 %v11394_v48, %v7148_v55 }
 0x4ec   : > { %v7443_v62 = vadd.f32 %v11407_v58, %v7293_v6  ;;  %v7445_v13 = vadd.f32 %v11410_v60, %v7295_v4  ;;  %v7297_v42 = vmul.f32 %v11396_v49, %v7147_v47  ;;  %v7299_v35 = vmul.f32 %v11398_v50, %v7149_v23 }
 0x4ed   : > { %v7570_v45 = vmax.f32 %v7442_v22, 0.0  ;;  %v7572_v36 = vmax.f32 %v7444_v31, 0.0  ;;  %v7446_v10 = vadd.f32 %v11401_v52, %v7296_v29  ;;  %v7448_v14 = vadd.f32 %v11404_v54, %v7298_v30 }
 0x4ee   : > { %v11692_v28 = vpop.f32.mrb[28].mxu0  ;;  %v11694_v40 = vpop.f32.mrb[28].mxu1  ;;  %v7571_v17 = vmax.f32 %v7443_v62, 0.0  ;;  %v7573_v55 = vmax.f32 %v7445_v13, 0.0  ;;  %v7447_v9 = vadd.f32 %v11407_v58, %v7297_v42  ;;  %v7449_v20 = vadd.f32 %v11410_v60, %v7299_v35 }
 0x4ef   : > { %v11698_v18 = vpop.f32.mrb[29].mxu0  ;;  %v11700_v8 = vpop.f32.mrb[29].mxu1  ;;  %v12635_v6 = vmax.f32 %v11469_v15, 0.0  ;;  %v12637_v4 = vmax.f32 %v11472_v16, 0.0  ;;  %v7574_v23 = vmax.f32 %v7446_v10, 0.0  ;;  %v7576_v22 = vmax.f32 %v7448_v14, 0.0 }
 0x4f0   : > { %v11704_v7 = vpop.f32.mrb[30].mxu0  ;;  %v11706_v21 = vpop.f32.mrb[30].mxu1  ;;  %v12639_v31 = vmax.f32 %v11477_v25, 0.0  ;;  %v12641_v30 = vmax.f32 %v11480_v26, 0.0  ;;  %v7575_v13 = vmax.f32 %v7447_v9, 0.0  ;;  %v7577_v42 = vmax.f32 %v7449_v20, 0.0 }
 0x4f1   : > { %v11712_v5 = vpop.f32.mrb[31].mxu0  ;;  %v11714_v24 = vpop.f32.mrb[31].mxu1  ;;  %v11726_v57 = vmax.f32 %v12635_v6, %v7570_v45  ;;  %v11730_v47 = vmax.f32 %v12637_v4, %v7572_v36  ;;  %v12643_v16 = vmax.f32 %v11487_v51, 0.0  ;;  %v12645_v36 = vmax.f32 %v11490_v53, 0.0 }
 0x4f2   : > { %v11734_v29 = vmax.f32 %v12639_v31, %v7571_v17  ;;  %v11738_v62 = vmax.f32 %v12641_v30, %v7573_v55  ;;  %v8649_v25 = vadd.f32 %v11628_v61, %v11384_v39  ;;  %v8713_v26 = vadd.f32 %v11630_v11, %v11386_v41 }
 0x4f3   : > { %12636 = vst [vmem:[#allocation38_spill] sm:$0xff] %v11726_v57  ;;  %12638 = vst [vmem:[#allocation39_spill] sm:$0xff] %v11730_v47  ;;  %v11746_v45 = vmax.f32 %v12643_v16, %v7574_v23  ;;  %v11750_v10 = vmax.f32 %v12645_v36, %v7576_v22  ;;  %v12647_v14 = vmax.f32 %v11495_v63, 0.0  ;;  %v12649_v51 = vmax.f32 %v11498_v0, 0.0 }
 0x4f4   : > { %12640 = vst [vmem:[#allocation40_spill] sm:$0xff] %v11734_v29  ;;  %12642 = vst [vmem:[#allocation41_spill] sm:$0xff] %v11738_v62  ;;  %v8650_v53 = vadd.f32 %v11634_v56, %v11388_v43  ;;  %v8714_v61 = vadd.f32 %v11636_v33, %v11390_v44  ;;  %v7150_v4 = vmax.f32 %v8649_v25, 0.0  ;;  %v7152_v23 = vmax.f32 %v8713_v26, 0.0  ;;  %v12658_v62 = vld [vmem:[#allocation19_spill] sm:$0xff] }
 0x4f5   : > { %12644 = vst [vmem:[#allocation42_spill] sm:$0xff] %v11746_v45  ;;  %12646 = vst [vmem:[#allocation43_spill] sm:$0xff] %v11750_v10  ;;  %v11762_v17 = vmax.f32 %v12647_v14, %v7575_v13  ;;  %v11766_v55 = vmax.f32 %v12649_v51, %v7577_v42  ;;  %v8651_v63 = vadd.f32 %v11640_v3, %v11384_v39  ;;  %v12659_v29 = vmax.f32 %v12658_v62, 0.0 }
 0x4f6   : > { %v11740_v35 = vpop.f32.mrb[32].mxu0  ;;  %v11742_v15 = vpop.f32.mrb[32].mxu1  ;;  %v8715_v0 = vadd.f32 %v11642_v38, %v11386_v41  ;;  %v7151_v56 = vmax.f32 %v8650_v53, 0.0  ;;  %v7153_v30 = vmax.f32 %v8714_v61, 0.0  ;;  %v8652_v33 = vadd.f32 %v11652_v2, %v11388_v43 }
 0x4f7   : > { %v11756_v9 = vpop.f32.mrb[33].mxu0  ;;  %v11758_v20 = vpop.f32.mrb[33].mxu1  ;;  %12648 = vst [vmem:[#allocation44_spill] sm:$0xff] %v11762_v17  ;;  %12650 = vst [vmem:[#allocation45_spill] sm:$0xff] %v11766_v55  ;;  %v8716_v13 = vadd.f32 %v11654_v32, %v11390_v44  ;;  %v7300_v42 = vmul.f32 %v11392_v46, %v7150_v4  ;;  %v7302_v16 = vmul.f32 %v11394_v48, %v7152_v23  ;;  %v7154_v3 = vmax.f32 %v8651_v63, 0.0 }
 0x4f8   : > { %v11772_v6 = vpop.f32.mrb[34].mxu0  ;;  %v11774_v11 = vpop.f32.mrb[34].mxu1  ;;  %v7156_v36 = vmax.f32 %v8715_v0, 0.0  ;;  %v7301_v38 = vmul.f32 %v11396_v49, %v7151_v56  ;;  %v7303_v25 = vmul.f32 %v11398_v50, %v7153_v30  ;;  %v7155_v26 = vmax.f32 %v8652_v33, 0.0 }
 0x4f9   : > { %v11780_v22 = vpop.f32.mrb[35].mxu0  ;;  %v11782_v31 = vpop.f32.mrb[35].mxu1  ;;  %v7157_v14 = vmax.f32 %v8716_v13, 0.0  ;;  %v7450_v51 = vadd.f32 %v11401_v52, %v7300_v42  ;;  %v7452_v53 = vadd.f32 %v11404_v54, %v7302_v16  ;;  %v7304_v2 = vmul.f32 %v11392_v46, %v7154_v3 }
 0x4fa   : > { %v7306_v32 = vmul.f32 %v11394_v48, %v7156_v36  ;;  %v7451_v61 = vadd.f32 %v11407_v58, %v7301_v38  ;;  %v7453_v4 = vadd.f32 %v11410_v60, %v7303_v25  ;;  %v7305_v23 = vmul.f32 %v11396_v49, %v7155_v26 }
 0x4fb   : > { %v7307_v63 = vmul.f32 %v11398_v50, %v7157_v14  ;;  %v7578_v30 = vmax.f32 %v7450_v51, 0.0  ;;  %v7580_v33 = vmax.f32 %v7452_v53, 0.0  ;;  %v7454_v13 = vadd.f32 %v11401_v52, %v7304_v2 }
 0x4fc   : > { %v7456_v42 = vadd.f32 %v11404_v54, %v7306_v32  ;;  %v7579_v36 = vmax.f32 %v7451_v61, 0.0  ;;  %v7581_v38 = vmax.f32 %v7453_v4, 0.0  ;;  %v7455_v25 = vadd.f32 %v11407_v58, %v7305_v23  ;;  %v12655_v23 = vld [vmem:[#allocation18_spill] sm:$0xff] }
 0x4fd   : > { %v7457_v26 = vadd.f32 %v11410_v60, %v7307_v63  ;;  %v12651_v51 = vmax.f32 %v11517_v59, 0.0  ;;  %v12653_v2 = vmax.f32 %v11520_v1, 0.0  ;;  %v7582_v17 = vmax.f32 %v7454_v13, 0.0  ;;  %v12664_v13 = vld [vmem:[#allocation21_spill] sm:$0xff] }
 0x4fe   : > { %v11800_v0 = vpop.f32.mrb[36].mxu0  ;;  %v11802_v56 = vpop.f32.mrb[36].mxu1  ;;  %v7584_v10 = vmax.f32 %v7456_v42, 0.0  ;;  %v12656_v63 = vmax.f32 %v12655_v23, 0.0  ;;  %v11834_v47 = vmax.f32 %v12659_v29, %v7581_v38  ;;  %v7583_v59 = vmax.f32 %v7455_v25, 0.0  ;;  %v12667_v23 = vld [vmem:[#allocation22_spill] sm:$0xff] }
 0x4ff   : > { %v11806_v16 = vpop.f32.mrb[37].mxu0  ;;  %v11808_v3 = vpop.f32.mrb[37].mxu1  ;;  %v11818_v53 = vmax.f32 %v12651_v51, %v7578_v30  ;;  %v11822_v32 = vmax.f32 %v12653_v2, %v7580_v33  ;;  %v7585_v30 = vmax.f32 %v7457_v26, 0.0  ;;  %v12661_v51 = vld [vmem:[#allocation20_spill] sm:$0xff]  ;;  %v12665_v42 = vmax.f32 %v12664_v13, 0.0  ;;  %v12670_v38 = vld [vmem:[#allocation23_spill] sm:$0xff] }
 0x500   : > { %v11812_v14 = vpop.f32.mrb[38].mxu0  ;;  %v11814_v55 = vpop.f32.mrb[38].mxu1  ;;  %v11830_v45 = vmax.f32 %v12656_v63, %v7579_v36  ;;  %12660 = vst [vmem:[#allocation19_spill] sm:$0xff] %v11834_v47  ;;  %v12662_v1 = vmax.f32 %v12661_v51, 0.0  ;;  %v8717_v36 = vadd.f32 %v11694_v40, %v11386_v41  ;;  %v12668_v62 = vmax.f32 %v12667_v23, 0.0 }
 0x501   : > { %12652 = vst [vmem:[#allocation46_spill] sm:$0xff] %v11818_v53  ;;  %12654 = vst [vmem:[#allocation47_spill] sm:$0xff] %v11822_v32  ;;  %v11824_v61 = vpop.f32.mrb[39].mxu0  ;;  %v11826_v4 = vpop.f32.mrb[39].mxu1  ;;  %v11842_v2 = vmax.f32 %v12665_v42, %v7584_v10  ;;  %v8653_v32 = vadd.f32 %v11692_v28, %v11384_v39  ;;  %v12671_v25 = vmax.f32 %v12670_v38, 0.0  ;;  %v8718_v10 = vadd.f32 %v11700_v8, %v11390_v44 }
 0x502   : > { %12657 = vst [vmem:[#allocation18_spill] sm:$0xff] %v11830_v45  ;;  %v11838_v33 = vmax.f32 %v12662_v1, %v7582_v17  ;;  %v11850_v29 = vmax.f32 %v12668_v62, %v7583_v59  ;;  %v8654_v17 = vadd.f32 %v11698_v18, %v11388_v43  ;;  %v7160_v51 = vmax.f32 %v8717_v36, 0.0  ;;  %v12673_v45 = vld [vmem:[#allocation24_spill] sm:$0xff] }
 0x503   : > { %12666 = vst [vmem:[#allocation21_spill] sm:$0xff] %v11842_v2  ;;  %v11854_v26 = vmax.f32 %v12671_v25, %v7585_v30  ;;  %v7158_v63 = vmax.f32 %v8653_v32, 0.0  ;;  %v8655_v28 = vadd.f32 %v11704_v7, %v11384_v39  ;;  %v8719_v40 = vadd.f32 %v11706_v21, %v11386_v41 }
 0x504   : > { %12663 = vst [vmem:[#allocation20_spill] sm:$0xff] %v11838_v33  ;;  %12669 = vst [vmem:[#allocation22_spill] sm:$0xff] %v11850_v29  ;;  %v7159_v59 = vmax.f32 %v8654_v17, 0.0  ;;  %v7161_v1 = vmax.f32 %v8718_v10, 0.0  ;;  %v8656_v30 = vadd.f32 %v11712_v5, %v11388_v43  ;;  %v8720_v13 = vadd.f32 %v11714_v24, %v11390_v44 }
 0x505   : > { %12672 = vst [vmem:[#allocation23_spill] sm:$0xff] %v11854_v26  ;;  %v7308_v8 = vmul.f32 %v11392_v46, %v7158_v63  ;;  %v7310_v32 = vmul.f32 %v11394_v48, %v7160_v51  ;;  %v7162_v7 = vmax.f32 %v8655_v28, 0.0  ;;  %v7164_v36 = vmax.f32 %v8719_v40, 0.0 }
 0x506   : > { %v11868_v18 = vpop.f32.mrb[40].mxu0  ;;  %v11870_v42 = vpop.f32.mrb[40].mxu1  ;;  %v7309_v62 = vmul.f32 %v11396_v49, %v7159_v59  ;;  %v7311_v5 = vmul.f32 %v11398_v50, %v7161_v1  ;;  %v7163_v38 = vmax.f32 %v8656_v30, 0.0  ;;  %v7165_v24 = vmax.f32 %v8720_v13, 0.0 }
 0x507   : > { %v11874_v23 = vpop.f32.mrb[41].mxu0  ;;  %v11876_v21 = vpop.f32.mrb[41].mxu1  ;;  %v7458_v10 = vadd.f32 %v11401_v52, %v7308_v8  ;;  %v7460_v63 = vadd.f32 %v11404_v54, %v7310_v32  ;;  %v7312_v51 = vmul.f32 %v11392_v46, %v7162_v7  ;;  %v7314_v28 = vmul.f32 %v11394_v48, %v7164_v36 }
 0x508   : > { %v11880_v25 = vpop.f32.mrb[42].mxu0  ;;  %v11882_v17 = vpop.f32.mrb[42].mxu1  ;;  %v7459_v59 = vadd.f32 %v11407_v58, %v7309_v62  ;;  %v7461_v1 = vadd.f32 %v11410_v60, %v7311_v5  ;;  %v7313_v30 = vmul.f32 %v11396_v49, %v7163_v38  ;;  %v7315_v13 = vmul.f32 %v11398_v50, %v7165_v24  ;;  %v12676_v5 = vld [vmem:[#allocation25_spill] sm:$0xff] }
 0x509   : > { %v11888_v40 = vpop.f32.mrb[43].mxu0  ;;  %v11890_v26 = vpop.f32.mrb[43].mxu1  ;;  %v7586_v29 = vmax.f32 %v7458_v10, 0.0  ;;  %v7588_v8 = vmax.f32 %v7460_v63, 0.0  ;;  %v7462_v32 = vadd.f32 %v11401_v52, %v7312_v51  ;;  %v7464_v7 = vadd.f32 %v11404_v54, %v7314_v28  ;;  %v12679_v63 = vld [vmem:[#allocation26_spill] sm:$0xff]  ;;  %v12682_v28 = vld [vmem:[#allocation27_spill] sm:$0xff] }
 0x50a   : > { %v7587_v2 = vmax.f32 %v7459_v59, 0.0  ;;  %v7589_v36 = vmax.f32 %v7461_v1, 0.0  ;;  %v7463_v33 = vadd.f32 %v11407_v58, %v7313_v30  ;;  %v7465_v47 = vadd.f32 %v11410_v60, %v7315_v13 }
 0x50b   : > { %v12674_v62 = vmax.f32 %v12673_v45, 0.0  ;;  %v12677_v38 = vmax.f32 %v12676_v5, 0.0  ;;  %v7590_v24 = vmax.f32 %v7462_v32, 0.0  ;;  %v7592_v10 = vmax.f32 %v7464_v7, 0.0  ;;  %v12688_v32 = vld [vmem:[#allocation29_spill] sm:$0xff] }
 0x50c   : > { %v12680_v51 = vmax.f32 %v12679_v63, 0.0  ;;  %v12683_v59 = vmax.f32 %v12682_v28, 0.0  ;;  %v7591_v30 = vmax.f32 %v7463_v33, 0.0  ;;  %v7593_v13 = vmax.f32 %v7465_v47, 0.0 }
 0x50d   : > { %v11902_v53 = vmax.f32 %v12674_v62, %v7586_v29  ;;  %v11906_v57 = vmax.f32 %v12677_v38, %v7588_v8  ;;  %v12685_v29 = vld [vmem:[#allocation28_spill] sm:$0xff]  ;;  %v12689_v7 = vmax.f32 %v12688_v32, 0.0  ;;  %v12691_v38 = vld [vmem:[#allocation30_spill] sm:$0xff] }
 0x50e   : > { %v11910_v37 = vmax.f32 %v12680_v51, %v7587_v2  ;;  %v11914_v1 = vmax.f32 %v12683_v59, %v7589_v36  ;;  %v11916_v19 = vpop.f32.mrb[44].mxu0  ;;  %v11918_v45 = vpop.f32.mrb[44].mxu1  ;;  %v12686_v62 = vmax.f32 %v12685_v29, 0.0  ;;  %v8657_v2 = vadd.f32 %v11740_v35, %v11384_v39 }
 0x50f   : > { %12675 = vst [vmem:[#allocation24_spill] sm:$0xff] %v11902_v53  ;;  %12678 = vst [vmem:[#allocation25_spill] sm:$0xff] %v11906_v57  ;;  %v11926_v5 = vmax.f32 %v12689_v7, %v7592_v10  ;;  %v8721_v36 = vadd.f32 %v11742_v15, %v11386_v41  ;;  %v11932_v33 = vpop.f32.mrb[45].mxu0  ;;  %v11934_v47 = vpop.f32.mrb[45].mxu1  ;;  %v12692_v63 = vmax.f32 %v12691_v38, 0.0  ;;  %v8658_v10 = vadd.f32 %v11756_v9, %v11388_v43 }
 0x510   : > { %12681 = vst [vmem:[#allocation26_spill] sm:$0xff] %v11910_v37  ;;  %12684 = vst [vmem:[#allocation27_spill] sm:$0xff] %v11914_v1  ;;  %v11922_v8 = vmax.f32 %v12686_v62, %v7590_v24  ;;  %v12694_v24 = vld [vmem:[#allocation31_spill] sm:$0xff]  ;;  %v8722_v35 = vadd.f32 %v11758_v20, %v11390_v44  ;;  %v11948_v29 = vpop.f32.mrb[46].mxu0  ;;  %v11950_v15 = vpop.f32.mrb[46].mxu1  ;;  %v7166_v62 = vmax.f32 %v8657_v2, 0.0  ;;  %v8723_v7 = vadd.f32 %v11774_v11, %v11386_v41 }
 0x511   : > { %12690 = vst [vmem:[#allocation29_spill] sm:$0xff] %v11926_v5  ;;  %v11938_v51 = vmax.f32 %v12692_v63, %v7591_v30  ;;  %v12695_v28 = vmax.f32 %v12694_v24, 0.0  ;;  %v7168_v32 = vmax.f32 %v8721_v36, 0.0  ;;  %v8659_v30 = vadd.f32 %v11772_v6, %v11384_v39  ;;  %v11958_v38 = vpop.f32.mrb[47].mxu1 }
 0x512   : > { %12687 = vst [vmem:[#allocation28_spill] sm:$0xff] %v11922_v8  ;;  %v7167_v9 = vmax.f32 %v8658_v10, 0.0  ;;  %v7169_v63 = vmax.f32 %v8722_v35, 0.0  ;;  %v8660_v20 = vadd.f32 %v11780_v22, %v11388_v43  ;;  %v8724_v24 = vadd.f32 %v11782_v31, %v11390_v44 }
 0x513   : > { %12693 = vst [vmem:[#allocation30_spill] sm:$0xff] %v11938_v51  ;;  %v11942_v59 = vmax.f32 %v12695_v28, %v7593_v13  ;;  %v11956_v13 = vpop.f32.mrb[47].mxu0  ;;  %v7316_v2 = vmul.f32 %v11392_v46, %v7166_v62  ;;  %v7318_v36 = vmul.f32 %v11394_v48, %v7168_v32  ;;  %v7170_v6 = vmax.f32 %v8659_v30, 0.0 }
 0x514   : > { %v7172_v28 = vmax.f32 %v8723_v7, 0.0  ;;  %v7317_v11 = vmul.f32 %v11396_v49, %v7167_v9  ;;  %v7171_v51 = vmax.f32 %v8660_v20, 0.0  ;;  %v7173_v5 = vmax.f32 %v8724_v24, 0.0 }
 0x515   : > { %12696 = vst [vmem:[#allocation31_spill] sm:$0xff] %v11942_v59  ;;  %v7319_v59 = vmul.f32 %v11398_v50, %v7169_v63  ;;  %v11969_v10 = vadd.f32 %v11401_v52, %v7316_v2  ;;  %v11972_v22 = vadd.f32 %v11404_v54, %v7318_v36  ;;  %v7320_v31 = vmul.f32 %v11392_v46, %v7170_v6 }
 0x516   : > { %v7322_v35 = vmul.f32 %v11394_v48, %v7172_v28  ;;  %v11977_v62 = vadd.f32 %v11407_v58, %v7317_v11  ;;  %v7321_v30 = vmul.f32 %v11396_v49, %v7171_v51  ;;  %v7323_v7 = vmul.f32 %v11398_v50, %v7173_v5  ;;  %v11984_v9 = vpop.f32.mrb[48].mxu0  ;;  %v11986_v63 = vpop.f32.mrb[48].mxu1 }
 0x517   : > { %v11980_v32 = vadd.f32 %v11410_v60, %v7319_v59  ;;  %v11991_v2 = vadd.f32 %v11401_v52, %v7320_v31  ;;  %v11996_v59 = vpop.f32.mrb[49].mxu0  ;;  %v11998_v6 = vpop.f32.mrb[49].mxu1  ;;  %v8661_v8 = vadd.f32 %v11800_v0, %v11384_v39  ;;  %v8725_v51 = vadd.f32 %v11802_v56, %v11386_v41 }
 0x518   : > { %v11994_v36 = vadd.f32 %v11404_v54, %v7322_v35  ;;  %v12003_v28 = vadd.f32 %v11407_v58, %v7321_v30  ;;  %v12006_v11 = vadd.f32 %v11410_v60, %v7323_v7  ;;  %v12008_v24 = vpop.f32.mrb[50].mxu0  ;;  %v12010_v31 = vpop.f32.mrb[50].mxu1  ;;  %v8662_v37 = vadd.f32 %v11806_v16, %v11388_v43 }
 0x519   : > { %v12018_v5 = vpop.f32.mrb[51].mxu0  ;;  %v12020_v30 = vpop.f32.mrb[51].mxu1  ;;  %v8726_v20 = vadd.f32 %v11808_v3, %v11390_v44  ;;  %v7174_v35 = vmax.f32 %v8661_v8, 0.0  ;;  %v7176_v57 = vmax.f32 %v8725_v51, 0.0  ;;  %v8663_v0 = vadd.f32 %v11812_v14, %v11384_v39 }
 0x51a   : > { %12697 = vst [vmem:[#allocation48_spill] sm:$0xff] %v12003_v28  ;;  %12698 = vst [vmem:[#allocation49_spill] sm:$0xff] %v12006_v11  ;;  %v8727_v56 = vadd.f32 %v11814_v55, %v11386_v41  ;;  %v7175_v53 = vmax.f32 %v8662_v37, 0.0  ;;  %v8664_v7 = vadd.f32 %v11824_v61, %v11388_v43  ;;  %v8728_v1 = vadd.f32 %v11826_v4, %v11390_v44 }
 0x51b   : > { %v7177_v12 = vmax.f32 %v8726_v20, 0.0  ;;  %v7324_v16 = vmul.f32 %v11392_v46, %v7174_v35  ;;  %v7326_v3 = vmul.f32 %v11394_v48, %v7176_v57  ;;  %v7178_v8 = vmax.f32 %v8663_v0, 0.0 }
 0x51c   : > { %v7180_v51 = vmax.f32 %v8727_v56, 0.0  ;;  %v7325_v11 = vmul.f32 %v11396_v49, %v7175_v53  ;;  %v7179_v28 = vmax.f32 %v8664_v7, 0.0  ;;  %v7181_v55 = vmax.f32 %v8728_v1, 0.0 }
 0x51d   : > { %v7327_v14 = vmul.f32 %v11398_v50, %v7177_v12  ;;  %v12045_v61 = vadd.f32 %v11401_v52, %v7324_v16  ;;  %v12048_v4 = vadd.f32 %v11404_v54, %v7326_v3  ;;  %v7328_v57 = vmul.f32 %v11392_v46, %v7178_v8 }
 0x51e   : > { %v12040_v37 = vpop.f32.mrb[52].mxu0  ;;  %v12042_v20 = vpop.f32.mrb[52].mxu1  ;;  %v7330_v35 = vmul.f32 %v11394_v48, %v7180_v51  ;;  %v12057_v12 = vadd.f32 %v11407_v58, %v7325_v11  ;;  %v7329_v7 = vmul.f32 %v11396_v49, %v7179_v28  ;;  %v7331_v56 = vmul.f32 %v11398_v50, %v7181_v55 }
 0x51f   : > { %12699 = vst [vmem:[#allocation50_spill] sm:$0xff] %v12048_v4  ;;  %v12052_v0 = vpop.f32.mrb[53].mxu0  ;;  %v12054_v53 = vpop.f32.mrb[53].mxu1  ;;  %v12060_v1 = vadd.f32 %v11410_v60, %v7327_v14  ;;  %v8729_v4 = vadd.f32 %v11870_v42, %v11386_v41  ;;  %v8667_v51 = vadd.f32 %v11880_v25, %v11384_v39  ;;  %v8668_v28 = vadd.f32 %v11888_v40, %v11388_v43 }
 0x520   : > { %12700 = vst [vmem:[#allocation51_spill] sm:$0xff] %v12052_v0  ;;  %12701 = vst [vmem:[#allocation52_spill] sm:$0xff] %v12054_v53  ;;  %v12064_v16 = vpop.f32.mrb[54].mxu0  ;;  %v12066_v3 = vpop.f32.mrb[54].mxu1  ;;  %v12071_v53 = vadd.f32 %v11401_v52, %v7328_v57  ;;  %v12074_v11 = vadd.f32 %v11404_v54, %v7330_v35  ;;  %v12086_v8 = vadd.f32 %v11410_v60, %v7331_v56 }
 0x521   : > { %12702 = vst [vmem:[#allocation53_spill] sm:$0xff] %v12060_v1  ;;  %12703 = vst [vmem:[#allocation54_spill] sm:$0xff] %v12066_v3  ;;  %v12076_v14 = vpop.f32.mrb[55].mxu0  ;;  %v12078_v0 = vpop.f32.mrb[55].mxu1  ;;  %v12083_v3 = vadd.f32 %v11407_v58, %v7329_v7  ;;  %v8665_v35 = vadd.f32 %v11868_v18, %v11384_v39  ;;  %v8666_v7 = vadd.f32 %v11874_v23, %v11388_v43  ;;  %v7184_v57 = vmax.f32 %v8729_v4, 0.0 }
 0x522   : > { %12704 = vst [vmem:[#allocation55_spill] sm:$0xff] %v12071_v53  ;;  %12705 = vst [vmem:[#allocation56_spill] sm:$0xff] %v12074_v11  ;;  %v8730_v56 = vadd.f32 %v11876_v21, %v11390_v44  ;;  %v8731_v18 = vadd.f32 %v11882_v17, %v11386_v41  ;;  %v8732_v55 = vadd.f32 %v11890_v26, %v11390_v44  ;;  %v7186_v25 = vmax.f32 %v8667_v51, 0.0 }
 0x523   : > { %12706 = vst [vmem:[#allocation57_spill] sm:$0xff] %v12083_v3  ;;  %12707 = vst [vmem:[#allocation58_spill] sm:$0xff] %v12086_v8  ;;  %v7182_v1 = vmax.f32 %v8665_v35, 0.0  ;;  %v7183_v11 = vmax.f32 %v8666_v7, 0.0  ;;  %v7334_v4 = vmul.f32 %v11394_v48, %v7184_v57 }
 0x524   : > { %v7185_v42 = vmax.f32 %v8730_v56, 0.0  ;;  %v7188_v35 = vmax.f32 %v8731_v18, 0.0  ;;  %v7187_v56 = vmax.f32 %v8668_v28, 0.0  ;;  %v7189_v26 = vmax.f32 %v8732_v55, 0.0 }
 0x525   : > { %v7332_v21 = vmul.f32 %v11392_v46, %v7182_v1  ;;  %v7333_v7 = vmul.f32 %v11396_v49, %v7183_v11  ;;  %v12128_v51 = vadd.f32 %v11404_v54, %v7334_v4  ;;  %v7336_v57 = vmul.f32 %v11392_v46, %v7186_v25 }
 0x526   : > { %v12108_v23 = vpop.f32.mrb[56].mxu0  ;;  %v12110_v8 = vpop.f32.mrb[56].mxu1  ;;  %v7335_v40 = vmul.f32 %v11398_v50, %v7185_v42  ;;  %v7338_v18 = vmul.f32 %v11394_v48, %v7188_v35  ;;  %v7337_v42 = vmul.f32 %v11396_v49, %v7187_v56 }
 0x527   : > { %12708 = vst [vmem:[#allocation59_spill] sm:$0xff] %v12108_v23  ;;  %v12114_v3 = vpop.f32.mrb[57].mxu0  ;;  %v12116_v17 = vpop.f32.mrb[57].mxu1  ;;  %v12125_v1 = vadd.f32 %v11401_v52, %v7332_v21  ;;  %v12137_v28 = vadd.f32 %v11407_v58, %v7333_v7  ;;  %v7339_v21 = vmul.f32 %v11398_v50, %v7189_v26  ;;  %v12147_v35 = vadd.f32 %v11401_v52, %v7336_v57 }
 0x528   : > { %12709 = vst [vmem:[#allocation60_spill] sm:$0xff] %v12116_v17  ;;  %v12120_v53 = vpop.f32.mrb[58].mxu0  ;;  %v12122_v23 = vpop.f32.mrb[58].mxu1  ;;  %v12140_v55 = vadd.f32 %v11410_v60, %v7335_v40  ;;  %v12155_v40 = vadd.f32 %v11407_v58, %v7337_v42  ;;  %v8669_v57 = vadd.f32 %v11916_v19, %v11384_v39  ;;  %v8670_v42 = vadd.f32 %v11932_v33, %v11388_v43 }
 0x529   : > { %v12132_v17 = vpop.f32.mrb[59].mxu0  ;;  %v12134_v11 = vpop.f32.mrb[59].mxu1  ;;  %v12158_v56 = vadd.f32 %v11410_v60, %v7339_v21  ;;  %v8734_v21 = vadd.f32 %v11934_v47, %v11390_v44  ;;  %v8671_v19 = vadd.f32 %v11948_v29, %v11384_v39  ;;  %v8672_v47 = vadd.f32 %v11956_v13, %v11388_v43 }
 0x52a   : > { %12710 = vst [vmem:[#allocation61_spill] sm:$0xff] %v12132_v17  ;;  %12711 = vst [vmem:[#allocation62_spill] sm:$0xff] %v12134_v11  ;;  %v12150_v17 = vadd.f32 %v11404_v54, %v7338_v18  ;;  %v8733_v18 = vadd.f32 %v11918_v45, %v11386_v41  ;;  %v7190_v25 = vmax.f32 %v8669_v57, 0.0  ;;  %v8735_v45 = vadd.f32 %v11950_v15, %v11386_v41 }
 0x52b   : > { %12713 = vst [vmem:[#allocation64_spill] sm:$0xff] %v12155_v40  ;;  %12714 = vst [vmem:[#allocation65_spill] sm:$0xff] %v12158_v56  ;;  %v7191_v33 = vmax.f32 %v8670_v42, 0.0  ;;  %v7193_v56 = vmax.f32 %v8734_v21, 0.0 }
 0x52c   : > { %12712 = vst [vmem:[#allocation63_spill] sm:$0xff] %v12150_v17  ;;  %v7192_v17 = vmax.f32 %v8733_v18, 0.0  ;;  %v7340_v29 = vmul.f32 %v11392_v46, %v7190_v25 }
 0x52d   : > { %v7341_v21 = vmul.f32 %v11396_v49, %v7191_v33  ;;  %v7343_v13 = vmul.f32 %v11398_v50, %v7193_v56 }
 0x52e   : > { %v12172_v4 = vpop.f32.mrb[60].mxu0  ;;  %v12174_v26 = vpop.f32.mrb[60].mxu1  ;;  %v7342_v15 = vmul.f32 %v11394_v48, %v7192_v17 }
 0x52f   : > { %12715 = vst [vmem:[#allocation66_spill] sm:$0xff] %v12172_v4  ;;  %12716 = vst [vmem:[#allocation67_spill] sm:$0xff] %v12174_v26  ;;  %v12180_v7 = vpop.f32.mrb[61].mxu0  ;;  %v12182_v11 = vpop.f32.mrb[61].mxu1  ;;  %v8736_v26 = vadd.f32 %v11958_v38, %v11390_v44  ;;  %v7194_v4 = vmax.f32 %v8671_v19, 0.0  ;;  %v12209_v19 = vadd.f32 %v11407_v58, %v7341_v21 }
 0x530   : > { %12717 = vst [vmem:[#allocation68_spill] sm:$0xff] %v12180_v7  ;;  %12718 = vst [vmem:[#allocation69_spill] sm:$0xff] %v12182_v11  ;;  %v12188_v57 = vpop.f32.mrb[62].mxu0  ;;  %v12190_v18 = vpop.f32.mrb[62].mxu1  ;;  %v7196_v7 = vmax.f32 %v8735_v45, 0.0  ;;  %v7195_v11 = vmax.f32 %v8672_v47, 0.0  ;;  %v12212_v45 = vadd.f32 %v11410_v60, %v7343_v13 }
 0x531   : > { %12719 = vst [vmem:[#allocation70_spill] sm:$0xff] %v12188_v57  ;;  %12720 = vst [vmem:[#allocation71_spill] sm:$0xff] %v12190_v18  ;;  %v12194_v40 = vpop.f32.mrb[63].mxu0  ;;  %v12196_v42 = vpop.f32.mrb[63].mxu1  ;;  %v7197_v38 = vmax.f32 %v8736_v26, 0.0  ;;  %v12201_v57 = vadd.f32 %v11401_v52, %v7340_v29  ;;  %v12204_v18 = vadd.f32 %v11404_v54, %v7342_v15  ;;  %v7344_v17 = vmul.f32 %v11392_v46, %v7194_v4 }
 0x532   : > { %v7346_v25 = vmul.f32 %v11394_v48, %v7196_v7  ;;  %v7345_v56 = vmul.f32 %v11396_v49, %v7195_v11  ;;  %v8676_v7 = vadd.f32 %v12018_v5, %v11388_v43  ;;  %v8740_v15 = vadd.f32 %v12020_v30, %v11390_v44 }
 0x533   : > { %v7347_v26 = vmul.f32 %v11398_v50, %v7197_v38  ;;  %v12219_v29 = vadd.f32 %v11401_v52, %v7344_v17  ;;  %v8673_v17 = vadd.f32 %v11984_v9, %v11384_v39  ;;  %v8675_v38 = vadd.f32 %v12008_v24, %v11384_v39 }
 0x534   : > { %v12222_v4 = vadd.f32 %v11404_v54, %v7346_v25  ;;  %v12227_v21 = vadd.f32 %v11407_v58, %v7345_v56  ;;  %v8737_v25 = vadd.f32 %v11986_v63, %v11386_v41  ;;  %v8674_v56 = vadd.f32 %v11996_v59, %v11388_v43 }
 0x535   : > { %12721 = vst [vmem:[#allocation72_spill] sm:$0xff] %v12219_v29  ;;  %v12230_v11 = vadd.f32 %v11410_v60, %v7347_v26  ;;  %v8738_v26 = vadd.f32 %v11998_v6, %v11390_v44  ;;  %v7198_v47 = vmax.f32 %v8673_v17, 0.0  ;;  %v8739_v9 = vadd.f32 %v12010_v31, %v11386_v41 }
 0x536   : > { %12722 = vst [vmem:[#allocation73_spill] sm:$0xff] %v12222_v4  ;;  %12723 = vst [vmem:[#allocation74_spill] sm:$0xff] %v12227_v21  ;;  %v7200_v13 = vmax.f32 %v8737_v25, 0.0  ;;  %v7199_v33 = vmax.f32 %v8674_v56, 0.0  ;;  %v7202_v17 = vmax.f32 %v8675_v38, 0.0  ;;  %v7203_v31 = vmax.f32 %v8676_v7, 0.0 }
 0x537   : > { %12724 = vst [vmem:[#allocation75_spill] sm:$0xff] %v12230_v11  ;;  %v7201_v63 = vmax.f32 %v8738_v26, 0.0  ;;  %v7348_v59 = vmul.f32 %v11392_v46, %v7198_v47  ;;  %v7204_v25 = vmax.f32 %v8739_v9, 0.0  ;;  %v7205_v56 = vmax.f32 %v8740_v15, 0.0 }
 0x538   : > { %v7350_v6 = vmul.f32 %v11394_v48, %v7200_v13  ;;  %v7349_v24 = vmul.f32 %v11396_v49, %v7199_v33  ;;  %v7352_v21 = vmul.f32 %v11392_v46, %v7202_v17  ;;  %v7353_v38 = vmul.f32 %v11396_v49, %v7203_v31 }
 0x539   : > { %v7351_v11 = vmul.f32 %v11398_v50, %v7201_v63  ;;  %v7498_v26 = vadd.f32 %v11401_v52, %v7348_v59  ;;  %v7354_v30 = vmul.f32 %v11394_v48, %v7204_v25  ;;  %v7355_v33 = vmul.f32 %v11398_v50, %v7205_v56 }
 0x53a   : > { %v7500_v5 = vadd.f32 %v11404_v54, %v7350_v6  ;;  %v7499_v47 = vadd.f32 %v11407_v58, %v7349_v24  ;;  %v7502_v15 = vadd.f32 %v11401_v52, %v7352_v21  ;;  %v7503_v17 = vadd.f32 %v11407_v58, %v7353_v38 }
 0x53b   : > { %v7501_v13 = vadd.f32 %v11410_v60, %v7351_v11  ;;  %v7626_v9 = vmax.f32 %v7498_v26, 0.0  ;;  %v7504_v63 = vadd.f32 %v11404_v54, %v7354_v30  ;;  %v7505_v25 = vadd.f32 %v11410_v60, %v7355_v33 }
 0x53c   : > { %v7628_v7 = vmax.f32 %v7500_v5, 0.0  ;;  %v7627_v59 = vmax.f32 %v7499_v47, 0.0  ;;  %v12725_v24 = vmax.f32 %v11969_v10, 0.0  ;;  %v12726_v31 = vmax.f32 %v11972_v22, 0.0 }
 0x53d   : > { %v7629_v6 = vmax.f32 %v7501_v13, 0.0  ;;  %v7630_v56 = vmax.f32 %v7502_v15, 0.0  ;;  %v7632_v29 = vmax.f32 %v7504_v63, 0.0  ;;  %v12727_v26 = vmax.f32 %v11977_v62, 0.0  ;;  %v12731_v15 = vld [vmem:[#allocation32_spill] sm:$0xff] }
 0x53e   : > { %v7690_v11 = vmax.f32 %v12725_v24, %v7626_v9  ;;  %v7692_v4 = vmax.f32 %v12726_v31, %v7628_v7  ;;  %v12728_v21 = vmax.f32 %v11980_v32, 0.0  ;;  %v7631_v47 = vmax.f32 %v7503_v17, 0.0  ;;  %v12732_v24 = vld [vmem:[#allocation33_spill] sm:$0xff] }
 0x53f   : > { %v7691_v5 = vmax.f32 %v12727_v26, %v7627_v59  ;;  %v7633_v13 = vmax.f32 %v7505_v25, 0.0  ;;  %v12729_v10 = vmax.f32 %v11991_v2, 0.0  ;;  %v12730_v22 = vmax.f32 %v11994_v36, 0.0  ;;  %v12733_v59 = vld [vmem:[#allocation48_spill] sm:$0xff]  ;;  %v12738_v2 = vld [vmem:[#allocation35_spill] sm:$0xff]  ;;  %v12740_v26 = vld [vmem:[#allocation37_spill] sm:$0xff] }
 0x540   : > { %v7693_v30 = vmax.f32 %v12728_v21, %v7629_v6  ;;  %v7722_v38 = vmax.f32 %v11646_v27, %v7690_v11  ;;  %v7724_v33 = vmax.f32 %v11650_v34, %v7692_v4  ;;  %v12734_v31 = vmax.f32 %v12733_v59, 0.0  ;;  %v12735_v6 = vld [vmem:[#allocation49_spill] sm:$0xff]  ;;  %v12737_v27 = vld [vmem:[#allocation34_spill] sm:$0xff]  ;;  %v12739_v11 = vld [vmem:[#allocation36_spill] sm:$0xff] }
 0x541   : > { %v7694_v9 = vmax.f32 %v12729_v10, %v7630_v56  ;;  %v7696_v7 = vmax.f32 %v12730_v22, %v7632_v29  ;;  %v7723_v63 = vmax.f32 %v12731_v15, %v7691_v5  ;;  %v12736_v17 = vmax.f32 %v12735_v6, 0.0  ;;  %v12741_v21 = vld [vmem:[#allocation51_spill] sm:$0xff] }
 0x542   : > { %v7725_v62 = vmax.f32 %v12732_v24, %v7693_v30  ;;  %v7695_v32 = vmax.f32 %v12734_v31, %v7631_v47  ;;  %7754 = vst [vmem:[%s12289_s28] sm:$0xff] %v7722_v38  ;;  %7756 = vst [vmem:[%s12289_s28 + $0x10] sm:$0xff] %v7724_v33  ;;  %v8677_v29 = vadd.f32 %v12040_v37, %v11384_v39  ;;  %v12742_v47 = vld [vmem:[#allocation52_spill] sm:$0xff] }
 0x543   : > { %v7697_v25 = vmax.f32 %v12736_v17, %v7633_v13  ;;  %v7726_v34 = vmax.f32 %v12737_v27, %v7694_v9  ;;  %v7728_v36 = vmax.f32 %v12738_v2, %v7696_v7  ;;  %v8741_v4 = vadd.f32 %v12042_v20, %v11386_v41  ;;  %7755 = vst [vmem:[%s12289_s28 + $0x8] sm:$0xff] %v7723_v63  ;;  %v12743_v20 = vld [vmem:[#allocation54_spill] sm:$0xff] }
 0x544   : > { %7757 = vst [vmem:[%s12289_s28 + $0x18] sm:$0xff] %v7725_v62  ;;  %v7727_v56 = vmax.f32 %v12739_v11, %v7695_v32  ;;  %v8678_v30 = vadd.f32 %v12741_v21, %v11388_v43  ;;  %v8742_v13 = vadd.f32 %v12742_v47, %v11390_v44  ;;  %v7206_v38 = vmax.f32 %v8677_v29, 0.0 }
 0x545   : > { %v7729_v5 = vmax.f32 %v12740_v26, %v7697_v25  ;;  %7758 = vst [vmem:[%s12289_s28 + $0x20] sm:$0xff] %v7726_v34  ;;  %7760 = vst [vmem:[%s12289_s28 + $0x30] sm:$0xff] %v7728_v36  ;;  %v7208_v33 = vmax.f32 %v8741_v4, 0.0  ;;  %v8679_v37 = vadd.f32 %v12064_v16, %v11384_v39  ;;  %v8743_v10 = vadd.f32 %v12743_v20, %v11386_v41 }
 0x546   : > { %7759 = vst [vmem:[%s12289_s28 + $0x28] sm:$0xff] %v7727_v56  ;;  %v7207_v9 = vmax.f32 %v8678_v30, 0.0  ;;  %v7209_v22 = vmax.f32 %v8742_v13, 0.0  ;;  %v8680_v7 = vadd.f32 %v12076_v14, %v11388_v43  ;;  %v8744_v15 = vadd.f32 %v12078_v0, %v11390_v44 }
 0x547   : > { %7761 = vst [vmem:[%s12289_s28 + $0x38] sm:$0xff] %v7729_v5  ;;  %v7356_v63 = vmul.f32 %v11392_v46, %v7206_v38  ;;  %v7358_v24 = vmul.f32 %v11394_v48, %v7208_v33  ;;  %v7210_v62 = vmax.f32 %v8679_v37, 0.0  ;;  %v7212_v59 = vmax.f32 %v8743_v10, 0.0  ;;  %v12745_v38 = vld [vmem:[#allocation50_spill] sm:$0xff] }
 0x548   : > { %v7357_v16 = vmul.f32 %v11396_v49, %v7207_v9  ;;  %v7359_v31 = vmul.f32 %v11398_v50, %v7209_v22  ;;  %v7211_v32 = vmax.f32 %v8680_v7, 0.0  ;;  %v7213_v6 = vmax.f32 %v8744_v15, 0.0  ;;  %v12748_v7 = vld [vmem:[#allocation53_spill] sm:$0xff] }
 0x549   : > { %v7506_v17 = vadd.f32 %v11401_v52, %v7356_v63  ;;  %v7508_v25 = vadd.f32 %v11404_v54, %v7358_v24  ;;  %v7360_v14 = vmul.f32 %v11392_v46, %v7210_v62  ;;  %v7362_v0 = vmul.f32 %v11394_v48, %v7212_v59  ;;  %v12750_v59 = vld [vmem:[#allocation38_spill] sm:$0xff] }
 0x54a   : > { %v7507_v27 = vadd.f32 %v11407_v58, %v7357_v16  ;;  %v7509_v34 = vadd.f32 %v11410_v60, %v7359_v31  ;;  %v7361_v2 = vmul.f32 %v11396_v49, %v7211_v32  ;;  %v7363_v36 = vmul.f32 %v11398_v50, %v7213_v6  ;;  %v12751_v16 = vld [vmem:[#allocation39_spill] sm:$0xff] }
 0x54b   : > { %v7634_v29 = vmax.f32 %v7506_v17, 0.0  ;;  %v7636_v4 = vmax.f32 %v7508_v25, 0.0  ;;  %v7510_v11 = vadd.f32 %v11401_v52, %v7360_v14  ;;  %v7512_v56 = vadd.f32 %v11404_v54, %v7362_v0  ;;  %v12752_v32 = vld [vmem:[#allocation55_spill] sm:$0xff]  ;;  %v12754_v25 = vld [vmem:[#allocation56_spill] sm:$0xff] }
 0x54c   : > { %v7635_v26 = vmax.f32 %v7507_v27, 0.0  ;;  %v7637_v5 = vmax.f32 %v7509_v34, 0.0  ;;  %v7511_v21 = vadd.f32 %v11407_v58, %v7361_v2  ;;  %v7513_v30 = vadd.f32 %v11410_v60, %v7363_v36  ;;  %v12756_v27 = vld [vmem:[#allocation40_spill] sm:$0xff]  ;;  %v12757_v34 = vld [vmem:[#allocation41_spill] sm:$0xff] }
 0x54d   : > { %v12744_v47 = vmax.f32 %v12045_v61, 0.0  ;;  %v12746_v33 = vmax.f32 %v12745_v38, 0.0  ;;  %v7638_v20 = vmax.f32 %v7510_v11, 0.0  ;;  %v7640_v10 = vmax.f32 %v7512_v56, 0.0  ;;  %v12758_v36 = vld [vmem:[#allocation57_spill] sm:$0xff]  ;;  %v12760_v11 = vld [vmem:[#allocation58_spill] sm:$0xff] }
 0x54e   : > { %v12747_v9 = vmax.f32 %v12057_v12, 0.0  ;;  %v12749_v15 = vmax.f32 %v12748_v7, 0.0  ;;  %v7639_v24 = vmax.f32 %v7511_v21, 0.0  ;;  %v7641_v62 = vmax.f32 %v7513_v30, 0.0  ;;  %v12763_v30 = vld [vmem:[#allocation43_spill] sm:$0xff]  ;;  %v12767_v7 = vld [vmem:[#allocation60_spill] sm:$0xff] }
 0x54f   : > { %v7698_v13 = vmax.f32 %v12744_v47, %v7634_v29  ;;  %v7700_v37 = vmax.f32 %v12746_v33, %v7636_v4  ;;  %v12753_v6 = vmax.f32 %v12752_v32, 0.0  ;;  %v12755_v14 = vmax.f32 %v12754_v25, 0.0 }
 0x550   : > { %v7699_v22 = vmax.f32 %v12747_v9, %v7635_v26  ;;  %v7701_v63 = vmax.f32 %v12749_v15, %v7637_v5  ;;  %v12759_v29 = vmax.f32 %v12758_v36, 0.0  ;;  %v12761_v56 = vmax.f32 %v12760_v11, 0.0  ;;  %v12762_v5 = vld [vmem:[#allocation42_spill] sm:$0xff] }
 0x551   : > { %v7730_v61 = vmax.f32 %v12750_v59, %v7698_v13  ;;  %v7732_v31 = vmax.f32 %v12751_v16, %v7700_v37  ;;  %v7702_v17 = vmax.f32 %v12753_v6, %v7638_v20  ;;  %v7704_v0 = vmax.f32 %v12755_v14, %v7640_v10  ;;  %v12764_v13 = vld [vmem:[#allocation59_spill] sm:$0xff]  ;;  %v12765_v37 = vld [vmem:[#allocation44_spill] sm:$0xff]  ;;  %v12766_v10 = vld [vmem:[#allocation45_spill] sm:$0xff] }
 0x552   : > { %v7731_v12 = vmax.f32 %v12756_v27, %v7699_v22  ;;  %v7733_v2 = vmax.f32 %v12757_v34, %v7701_v63  ;;  %v7703_v4 = vmax.f32 %v12759_v29, %v7639_v24  ;;  %v7705_v26 = vmax.f32 %v12761_v56, %v7641_v62  ;;  %v12768_v16 = vld [vmem:[#allocation61_spill] sm:$0xff] }
 0x553   : > { %7762 = vst [vmem:[%s12289_s28 + $0x40] sm:$0xff] %v7730_v61  ;;  %7764 = vst [vmem:[%s12289_s28 + $0x50] sm:$0xff] %v7732_v31  ;;  %v7734_v21 = vmax.f32 %v12762_v5, %v7702_v17  ;;  %v7736_v47 = vmax.f32 %v12763_v30, %v7704_v0  ;;  %v8681_v38 = vadd.f32 %v12764_v13, %v11384_v39  ;;  %v12769_v31 = vld [vmem:[#allocation62_spill] sm:$0xff] }
 0x554   : > { %v8745_v33 = vadd.f32 %v12110_v8, %v11386_v41  ;;  %7763 = vst [vmem:[%s12289_s28 + $0x48] sm:$0xff] %v7731_v12  ;;  %7765 = vst [vmem:[%s12289_s28 + $0x58] sm:$0xff] %v7733_v2  ;;  %v7735_v20 = vmax.f32 %v12765_v37, %v7703_v4  ;;  %v7737_v9 = vmax.f32 %v12766_v10, %v7705_v26  ;;  %v12770_v37 = vmax.f32 %v12125_v1, 0.0 }
 0x555   : > { %v8682_v22 = vadd.f32 %v12114_v3, %v11388_v43  ;;  %v8746_v15 = vadd.f32 %v12767_v7, %v11390_v44  ;;  %7766 = vst [vmem:[%s12289_s28 + $0x60] sm:$0xff] %v7734_v21  ;;  %7768 = vst [vmem:[%s12289_s28 + $0x70] sm:$0xff] %v7736_v47  ;;  %v7214_v63 = vmax.f32 %v8681_v38, 0.0  ;;  %v8683_v62 = vadd.f32 %v12120_v53, %v11384_v39 }
 0x556   : > { %v7216_v24 = vmax.f32 %v8745_v33, 0.0  ;;  %v8747_v8 = vadd.f32 %v12122_v23, %v11386_v41  ;;  %7767 = vst [vmem:[%s12289_s28 + $0x68] sm:$0xff] %v7735_v20  ;;  %7769 = vst [vmem:[%s12289_s28 + $0x78] sm:$0xff] %v7737_v9  ;;  %v8684_v3 = vadd.f32 %v12768_v16, %v11388_v43  ;;  %v8748_v32 = vadd.f32 %v12769_v31, %v11390_v44  ;;  %v12775_v16 = vld [vmem:[#allocation47_spill] sm:$0xff] }
 0x557   : > { %v7215_v59 = vmax.f32 %v8682_v22, 0.0  ;;  %v7217_v61 = vmax.f32 %v8746_v15, 0.0  ;;  %v7364_v6 = vmul.f32 %v11392_v46, %v7214_v63  ;;  %v7218_v25 = vmax.f32 %v8683_v62, 0.0 }
 0x558   : > { %v7366_v17 = vmul.f32 %v11394_v48, %v7216_v24  ;;  %v7220_v14 = vmax.f32 %v8747_v8, 0.0  ;;  %v7219_v0 = vmax.f32 %v8684_v3, 0.0  ;;  %v7221_v27 = vmax.f32 %v8748_v32, 0.0  ;;  %v12777_v32 = vld [vmem:[#allocation63_spill] sm:$0xff] }
 0x559   : > { %v7365_v53 = vmul.f32 %v11396_v49, %v7215_v59  ;;  %v7367_v23 = vmul.f32 %v11398_v50, %v7217_v61  ;;  %v7514_v12 = vadd.f32 %v11401_v52, %v7364_v6  ;;  %v7368_v2 = vmul.f32 %v11392_v46, %v7218_v25  ;;  %v12774_v61 = vld [vmem:[#allocation46_spill] sm:$0xff] }
 0x55a   : > { %v7516_v34 = vadd.f32 %v11404_v54, %v7366_v17  ;;  %v7370_v36 = vmul.f32 %v11394_v48, %v7220_v14  ;;  %v7369_v11 = vmul.f32 %v11396_v49, %v7219_v0  ;;  %v7371_v56 = vmul.f32 %v11398_v50, %v7221_v27  ;;  %v12779_v25 = vld [vmem:[#allocation18_spill] sm:$0xff]  ;;  %v12780_v14 = vld [vmem:[#allocation19_spill] sm:$0xff]  ;;  %v12783_v27 = vld [vmem:[#allocation65_spill] sm:$0xff] }
 0x55b   : > { %v7515_v29 = vadd.f32 %v11407_v58, %v7365_v53  ;;  %v7517_v4 = vadd.f32 %v11410_v60, %v7367_v23  ;;  %v7642_v26 = vmax.f32 %v7514_v12, 0.0  ;;  %v7518_v21 = vadd.f32 %v11401_v52, %v7368_v2  ;;  %v12781_v53 = vld [vmem:[#allocation64_spill] sm:$0xff] }
 0x55c   : > { %v7644_v5 = vmax.f32 %v7516_v34, 0.0  ;;  %v7520_v30 = vadd.f32 %v11404_v54, %v7370_v36  ;;  %v7519_v38 = vadd.f32 %v11407_v58, %v7369_v11  ;;  %v7521_v33 = vadd.f32 %v11410_v60, %v7371_v56  ;;  %v12785_v2 = vld [vmem:[#allocation20_spill] sm:$0xff]  ;;  %v12786_v36 = vld [vmem:[#allocation21_spill] sm:$0xff]  ;;  %v12788_v56 = vld [vmem:[#allocation67_spill] sm:$0xff] }
 0x55d   : > { %v7643_v47 = vmax.f32 %v7515_v29, 0.0  ;;  %v7645_v13 = vmax.f32 %v7517_v4, 0.0  ;;  %v7706_v20 = vmax.f32 %v12770_v37, %v7642_v26  ;;  %v12771_v10 = vmax.f32 %v12128_v51, 0.0  ;;  %v12787_v4 = vld [vmem:[#allocation66_spill] sm:$0xff] }
 0x55e   : > { %v7646_v22 = vmax.f32 %v7518_v21, 0.0  ;;  %v7648_v7 = vmax.f32 %v7520_v30, 0.0  ;;  %v12772_v15 = vmax.f32 %v12137_v28, 0.0  ;;  %v12773_v24 = vmax.f32 %v12140_v55, 0.0  ;;  %v12790_v30 = vld [vmem:[#allocation23_spill] sm:$0xff] }
 0x55f   : > { %v7708_v9 = vmax.f32 %v12771_v10, %v7644_v5  ;;  %v7647_v8 = vmax.f32 %v7519_v38, 0.0  ;;  %v7649_v59 = vmax.f32 %v7521_v33, 0.0  ;;  %v7738_v1 = vmax.f32 %v12774_v61, %v7706_v20  ;;  %v12789_v5 = vld [vmem:[#allocation22_spill] sm:$0xff]  ;;  %v12792_v33 = vld [vmem:[#allocation69_spill] sm:$0xff] }
 0x560   : > { %v7707_v63 = vmax.f32 %v12772_v15, %v7643_v47  ;;  %v7709_v62 = vmax.f32 %v12773_v24, %v7645_v13  ;;  %v12776_v51 = vmax.f32 %v12147_v35, 0.0  ;;  %v12778_v6 = vmax.f32 %v12777_v32, 0.0  ;;  %v12791_v13 = vld [vmem:[#allocation68_spill] sm:$0xff] }
 0x561   : > { %v7740_v3 = vmax.f32 %v12775_v16, %v7708_v9  ;;  %v12782_v23 = vmax.f32 %v12781_v53, 0.0  ;;  %v12784_v12 = vmax.f32 %v12783_v27, 0.0  ;;  %7770 = vst [vmem:[%s12289_s28 + $0x80] sm:$0xff] %v7738_v1  ;;  %v8685_v11 = vadd.f32 %v12787_v4, %v11384_v39  ;;  %v12793_v9 = vld [vmem:[#allocation70_spill] sm:$0xff]  ;;  %v12801_v4 = vld [vmem:[#allocation72_spill] sm:$0xff] }
 0x562   : > { %v7710_v31 = vmax.f32 %v12776_v51, %v7646_v22  ;;  %v7712_v17 = vmax.f32 %v12778_v6, %v7648_v7  ;;  %v7739_v28 = vmax.f32 %v12779_v25, %v7707_v63  ;;  %v7741_v55 = vmax.f32 %v12780_v14, %v7709_v62  ;;  %v12794_v7 = vld [vmem:[#allocation71_spill] sm:$0xff] }
 0x563   : > { %v7711_v0 = vmax.f32 %v12782_v23, %v7647_v8  ;;  %v7713_v34 = vmax.f32 %v12784_v12, %v7649_v59  ;;  %7772 = vst [vmem:[%s12289_s28 + $0x90] sm:$0xff] %v7740_v3  ;;  %v8749_v26 = vadd.f32 %v12788_v56, %v11386_v41  ;;  %v8686_v38 = vadd.f32 %v12791_v13, %v11388_v43  ;;  %v12807_v13 = vld [vmem:[#allocation74_spill] sm:$0xff] }
 0x564   : > { %v7742_v35 = vmax.f32 %v12785_v2, %v7710_v31  ;;  %v7744_v29 = vmax.f32 %v12786_v36, %v7712_v17  ;;  %7771 = vst [vmem:[%s12289_s28 + $0x88] sm:$0xff] %v7739_v28  ;;  %7773 = vst [vmem:[%s12289_s28 + $0x98] sm:$0xff] %v7741_v55  ;;  %v8750_v37 = vadd.f32 %v12792_v33, %v11390_v44  ;;  %v7222_v20 = vmax.f32 %v8685_v11, 0.0 }
 0x565   : > { %v7743_v21 = vmax.f32 %v12789_v5, %v7711_v0  ;;  %v7745_v47 = vmax.f32 %v12790_v30, %v7713_v34  ;;  %v7224_v10 = vmax.f32 %v8749_v26, 0.0  ;;  %v8687_v22 = vadd.f32 %v12793_v9, %v11384_v39  ;;  %v12803_v26 = vld [vmem:[#allocation73_spill] sm:$0xff]  ;;  %v12806_v30 = vld [vmem:[#allocation27_spill] sm:$0xff]  ;;  %v12811_v9 = vld [vmem:[#allocation28_spill] sm:$0xff] }
 0x566   : > { %7774 = vst [vmem:[%s12289_s28 + $0xa0] sm:$0xff] %v7742_v35  ;;  %7776 = vst [vmem:[%s12289_s28 + $0xb0] sm:$0xff] %v7744_v29  ;;  %v8751_v15 = vadd.f32 %v12794_v7, %v11386_v41  ;;  %v7223_v63 = vmax.f32 %v8686_v38, 0.0  ;;  %v7225_v24 = vmax.f32 %v8750_v37, 0.0  ;;  %v8688_v62 = vadd.f32 %v12194_v40, %v11388_v43  ;;  %v12809_v37 = vld [vmem:[#allocation75_spill] sm:$0xff]  ;;  %v12812_v7 = vld [vmem:[#allocation29_spill] sm:$0xff] }
 0x567   : > { %7775 = vst [vmem:[%s12289_s28 + $0xa8] sm:$0xff] %v7743_v21  ;;  %7777 = vst [vmem:[%s12289_s28 + $0xb8] sm:$0xff] %v7745_v47  ;;  %v8752_v8 = vadd.f32 %v12196_v42, %v11390_v44  ;;  %v7372_v59 = vmul.f32 %v11392_v46, %v7222_v20  ;;  %v7374_v61 = vmul.f32 %v11394_v48, %v7224_v10  ;;  %v7226_v1 = vmax.f32 %v8687_v22, 0.0  ;;  %v12805_v21 = vld [vmem:[#allocation26_spill] sm:$0xff] }
 0x568   : > { %v7228_v16 = vmax.f32 %v8751_v15, 0.0  ;;  %v7373_v39 = vmul.f32 %v11396_v49, %v7223_v63  ;;  %v7375_v41 = vmul.f32 %v11398_v50, %v7225_v24  ;;  %v7227_v3 = vmax.f32 %v8688_v62, 0.0  ;;  %v12813_v63 = vld [vmem:[#allocation30_spill] sm:$0xff]  ;;  %v12814_v62 = vld [vmem:[#allocation31_spill] sm:$0xff] }
 0x569   : > { %v7229_v51 = vmax.f32 %v8752_v8, 0.0  ;;  %v7522_v31 = vadd.f32 %v11401_v52, %v7372_v59  ;;  %v7524_v32 = vadd.f32 %v11404_v54, %v7374_v61  ;;  %v7376_v43 = vmul.f32 %v11392_v46, %v7226_v1 }
 0x56a   : > { %v7378_v44 = vmul.f32 %v11394_v48, %v7228_v16  ;;  %v7523_v40 = vadd.f32 %v11407_v58, %v7373_v39  ;;  %v7525_v42 = vadd.f32 %v11410_v60, %v7375_v41  ;;  %v7377_v6 = vmul.f32 %v11396_v49, %v7227_v3 }
 0x56b   : > { %v7379_v17 = vmul.f32 %v11398_v50, %v7229_v51  ;;  %v7650_v25 = vmax.f32 %v7522_v31, 0.0  ;;  %v7652_v28 = vmax.f32 %v7524_v32, 0.0  ;;  %v7526_v14 = vadd.f32 %v11401_v52, %v7376_v43 }
 0x56c   : > { %v7528_v55 = vadd.f32 %v11404_v54, %v7378_v44  ;;  %v7651_v53 = vmax.f32 %v7523_v40, 0.0  ;;  %v7653_v46 = vmax.f32 %v7525_v42, 0.0  ;;  %v7527_v48 = vadd.f32 %v11407_v58, %v7377_v6 }
 0x56d   : > { %v7529_v23 = vadd.f32 %v11410_v60, %v7379_v17  ;;  %v12795_v0 = vmax.f32 %v12201_v57, 0.0  ;;  %v12796_v49 = vmax.f32 %v12204_v18, 0.0  ;;  %v7654_v12 = vmax.f32 %v7526_v14, 0.0  ;;  %v12799_v60 = vld [vmem:[#allocation24_spill] sm:$0xff]  ;;  %v12800_v18 = vld [vmem:[#allocation25_spill] sm:$0xff] }
 0x56e   : > { %v7656_v34 = vmax.f32 %v7528_v55, 0.0  ;;  %v12797_v2 = vmax.f32 %v12209_v19, 0.0  ;;  %v12798_v54 = vmax.f32 %v12212_v45, 0.0  ;;  %v7655_v36 = vmax.f32 %v7527_v48, 0.0 }
 0x56f   : > { %v7714_v27 = vmax.f32 %v12795_v0, %v7650_v25  ;;  %v7716_v50 = vmax.f32 %v12796_v49, %v7652_v28  ;;  %v7657_v58 = vmax.f32 %v7529_v23, 0.0  ;;  %v12802_v11 = vmax.f32 %v12801_v4, 0.0 }
 0x570   : > { %v7715_v52 = vmax.f32 %v12797_v2, %v7651_v53  ;;  %v7717_v35 = vmax.f32 %v12798_v54, %v7653_v46  ;;  %v12804_v19 = vmax.f32 %v12803_v26, 0.0  ;;  %v12808_v38 = vmax.f32 %v12807_v13, 0.0 }
 0x571   : > { %v7746_v57 = vmax.f32 %v12799_v60, %v7714_v27  ;;  %v7748_v29 = vmax.f32 %v12800_v18, %v7716_v50  ;;  %v7718_v56 = vmax.f32 %v12802_v11, %v7654_v12  ;;  %v12810_v20 = vmax.f32 %v12809_v37, 0.0 }
 0x572   : > { %v7720_v5 = vmax.f32 %v12804_v19, %v7656_v34  ;;  %v7747_v45 = vmax.f32 %v12805_v21, %v7715_v52  ;;  %v7749_v47 = vmax.f32 %v12806_v30, %v7717_v35  ;;  %v7719_v33 = vmax.f32 %v12808_v38, %v7655_v36 }
 0x573   : > { %v7721_v10 = vmax.f32 %v12810_v20, %v7657_v58  ;;  %7778 = vst [vmem:[%s12289_s28 + $0xc0] sm:$0xff] %v7746_v57  ;;  %7780 = vst [vmem:[%s12289_s28 + $0xd0] sm:$0xff] %v7748_v29  ;;  %v7750_v22 = vmax.f32 %v12811_v9, %v7718_v56 }
 0x574   : > { %v7752_v15 = vmax.f32 %v12812_v7, %v7720_v5  ;;  %7779 = vst [vmem:[%s12289_s28 + $0xc8] sm:$0xff] %v7747_v45  ;;  %7781 = vst [vmem:[%s12289_s28 + $0xd8] sm:$0xff] %v7749_v47  ;;  %v7751_v24 = vmax.f32 %v12813_v63, %v7719_v33 }
 0x575   : > { %v7753_v8 = vmax.f32 %v12814_v62, %v7721_v10  ;;  %7782 = vst [vmem:[%s12289_s28 + $0xe0] sm:$0xff] %v7750_v22 }
 0x576   : > { %7784 = vst [vmem:[%s12289_s28 + $0xf0] sm:$0xff] %v7752_v15  ;;  %7783 = vst [vmem:[%s12289_s28 + $0xe8] sm:$0xff] %v7751_v24 }
 0x577   : > { %7785 = vst [vmem:[%s12289_s28 + $0xf8] sm:$0xff] %v7753_v8 }
 0x578   : > { %10796 = shalt.err (!%p10793_p0)
}
 0x579   : > { %s10797_s25 = scalar_lea.hbm %s12492_s17, 4096  ;;  %s10801_s18 = scalar_lea.hbm %s12556_s5, 8192 }
 0x57a   : > { %p10798_p4 = scmp.ne.s32.totalorder %s12492_s17, %s10797_s25  ;;  %p10802_p12 = scmp.lt.u32.totalorder %s12492_s17, %s12556_s5 }
 0x57b   : > { %p10803_p1 = scmp.lt.u32.totalorder %s10801_s18, %s10797_s25  ;;  %p10805_p2 = scmp.lt.u32.totalorder %s10797_s25, %s12492_s17 }
 0x57c   : > { %p10799_p13 = pnand %p10798_p4, %p11089_p5 }
 0x57d   : > { %p10804_p11 = por %p10803_p1, %p10802_p12 }
 0x57e   : > { %p10800_p6 = pneg %p10799_p13 }
 0x57f   : > { %p10806_p8 = por %p10805_p2, %p10804_p11 }
 0x581   : > { %p10807_p10 = pnand %p10806_p8, %p10800_p6 }
 0x583   : > { %10810 = shalt.err (!%p10807_p10)
}
 0x584   : > { %s10885_s28 = smov 512   ;;  %s10886_s30 = smov 32  }
 0x585   : > { %9542 = dma.vmem_to_hbm [thread:$0]  (%p11089_p5), %s12494_s29, 4096, %s12492_s17, %s7787_s12, %s10885_s28, %s10885_s28, %s10886_s30  }
 0x586 PF: > { %s12815_s21 = sld [smem:[#allocation16_spill]]  ;;  %s12816_s15 = sld [smem:[#allocation17_spill]] }
 0x587   : > { %p12818_p7 = scmp.ge.s32.totalorder %s10873_s23, 2 }
 0x58c   : > { %s7817_s7 = sand.u32 1, %s12815_s21   ;;  %p12817_p3 = scmp.ne.s32.totalorder %s12816_s15, 0 }
 0x58d   : > { %s7818_s14 = scalar_lea.sflag [#allocation4], %s7817_s7 }
 0x58e   : > { %p9562_p9 = pnand %p12818_p7, %p12817_p3 }
 0x590   : > { %10848 = dma.done.wait (!%p9562_p9), %s7818_s14, 4096  }
 0x591   : > { %10850 = vsyncadd (!%p9562_p9), %s7818_s14, 4294963200  ;;  %s23_s23 = sadd.s32 1, %s10873_s23   ;;  %s12819_s18 = smov %s10857_s19 }
 0x592   : > { %p20_p0 = scmp.ge.s32.totalorder %s23_s23, 4   ;;  %s12820_s19 = smov %s10861_s20 }
 0x593   : > { %s12821_s20 = smov %s11101_s11  ;;  %s12822_s21 = smov %s10869_s22 }
 0x594   : > { %s12823_s22 = smov %s12825_s24  ;;  %22 = sbr.rel (!%p20_p0) target bundleno = 8 (0x8), region = 105 }
 0x59b   :  { %7823 = vsyncpa [#allocation3], 1 }
 0x59c   :  { %7825 = vsyncpa [#allocation3 + $0x1], 1 }
 0x59d   :  { %7826 = vsyncpa [#allocation6], 1 }
 0x59e   :  { %7827 = vsyncpa [#allocation9], 1 }
 0x59f   :  { %7828 = vsyncpa [#allocation4], 1 }
 0x5a0   :  { %7830 = vsyncpa [#allocation4 + $0x1], 1 }

</bundles_post_ra>
